<compile_context>
chip_gen: v5e
topology: v5e:2x2
jax: 0.10.0
libtpu: 0.0.40
codegen_flags: <defaults>
</compile_context>

<pallas_src>
import itertools

import numpy as np
import jax
import jax.numpy as jnp
from jax import lax
from jax.experimental import pallas as pl
from jax.experimental.pallas import tpu as pltpu


# --------------------------------------------------------------------------
# Device introspection (best-effort; never raises).
# --------------------------------------------------------------------------
def _vmem_capacity_bytes():
    try:
        info = pltpu.get_tpu_info()
        for name in ("vmem_capacity_bytes", "vmem_bytes", "vmem_size_bytes"):
            v = getattr(info, name, None)
            if v:
                return int(v)
    except Exception:
        pass
    return 64 * 1024 * 1024  # conservative: v7x physical VMEM


def _num_tensorcores():
    n = 1
    try:
        info = pltpu.get_tpu_info()
        for name in ("num_cores", "core_count", "num_tensor_cores"):
            v = getattr(info, name, None)
            if v:
                n = max(n, int(v))
    except Exception:
        pass
    try:
        d = jax.devices()[0]
        for name in ("num_cores", "core_count"):
            v = getattr(d, name, None)
            if v:
                n = max(n, int(v))
    except Exception:
        pass
    return n


# --------------------------------------------------------------------------
# Kernel
# --------------------------------------------------------------------------
def _make_glr_kernel(edges, H, W, use_w_scratch):
    """edges: list of (dh, dw) static ints, order matching the E axis.

    Tile layout (lane axis = fused (batch*graph)-major, W-minor):
      x_ref  : (TC, H, LB)   signal tile (HBM dtype, e.g. bf16)
      w_ref  : (E,  H, LB)   edge-weight tile
      o_ref  : (TC, H, LB)   out = x - sum_e w_e * shift_e(x)
      wf_ref : (E,  H, LB)   f32 weight scratch (only when use_w_scratch)
    """
    dh_groups = sorted({dh for dh, _ in edges})

    def kernel(x_ref, w_ref, o_ref, *scratch):
        if use_w_scratch:
            wf_ref = scratch[0]

            # Convert the weights to f32 once per N-tile (ci == 0) and reuse
            # them across all C-tiles of that N-tile.
            @pl.when(pl.program_id(1) == 0)
            def _():
                wf_ref[...] = w_ref[...].astype(jnp.float32)

            def weight(e):
                return wf_ref[e]
        else:
            def weight(e):
                return w_ref[e].astype(jnp.float32)

        xf = x_ref[...].astype(jnp.float32)          # single upcast of the signal
        tc, h, lb = xf.shape
        row = lax.broadcasted_iota(jnp.int32, (tc, h, lb), 1)
        col = lax.broadcasted_iota(jnp.int32, (tc, h, lb), 2) % W   # w within patch

        # Single-step clamped shifts (replicate / "edge" padding semantics).
        # pltpu.roll matches jnp.roll: out[i] = v[(i - shift) mod n], so
        # shift = (-s) mod size gives out[i] = v[i + s] in the interior; the
        # boundary (and any cross-patch wrap) is exactly the clamped position,
        # fixed with a same-position select.  Clamped steps compose, so
        # |delta| > 1 windows stay exact.
        def shift_h1(v, s):
            rolled = pltpu.roll(v, shift=(-s) % h, axis=1)
            return jnp.where(row == (h - 1 if s > 0 else 0), v, rolled)

        def shift_w1(v, s):
            rolled = pltpu.roll(v, shift=(-s) % lb, axis=2)
            return jnp.where(col == (W - 1 if s > 0 else 0), v, rolled)

        acc = xf
        for dh in dh_groups:                         # row-shifted copy built once per dh
            xh = xf
            for _ in range(abs(dh)):
                xh = shift_h1(xh, 1 if dh > 0 else -1)
            for e, (edh, edw) in enumerate(edges):
                if edh != dh:
                    continue
                nb = xh
                for _ in range(abs(edw)):
                    nb = shift_w1(nb, 1 if edw > 0 else -1)
                acc = acc - weight(e)[None] * nb     # broadcast weight over C-tile
        o_ref[...] = acc.astype(o_ref.dtype)

    return kernel


# --------------------------------------------------------------------------
# Tiling policy
# --------------------------------------------------------------------------
def _choose_tiles(C, N, H, W, E, x_isz, w_isz, o_isz, budget_bytes, num_cores):
    """Pick (TC, LB): channel tile and lane-axis block (LB = TN*W)."""
    L = N * W

    def block_bytes(tc, lb):
        x_b = tc * H * lb * x_isz
        w_b = E * H * lb * w_isz
        o_b = tc * H * lb * o_isz
        wf_scr = E * H * lb * 4            # f32 weight scratch (counted always)
        f32_tmp = 6 * tc * H * lb * 4      # xf/xh/nb/acc + iota temporaries
        return 2 * (x_b + w_b + o_b) + wf_scr + f32_tmp

    # Lane blocks: TN*W with TN | N and TN*W a multiple of 128 (lane-dense),
    # plus the always-legal full extent.
    lane_cands = sorted({tn * W for tn in range(1, N + 1)
                         if N % tn == 0 and (tn * W) % 128 == 0} | {L},
                        reverse=True)
    lb = lane_cands[-1]
    for cand in lane_cands:                # largest that fits the budget
        if block_bytes(1, cand) <= budget_bytes:
            lb = cand
            break

    tc = 1
    for cand in sorted((d for d in range(1, C + 1) if C % d == 0), reverse=True):
        if block_bytes(cand, lb) <= budget_bytes:
            tc = cand
            break

    # Megacore: only split into extra N-tiles when the chip actually has >= 2
    # TensorCores (on v5e/v6e extra grid steps are pure overhead).
    if num_cores >= 2 and (L // lb) < 2:
        smaller = [c for c in lane_cands
                   if (L // c) >= 2 and block_bytes(tc, c) <= budget_bytes]
        if smaller:
            lb = smaller[0]

    return tc, lb


# --------------------------------------------------------------------------
# Module
# --------------------------------------------------------------------------
class GLRFastPallas:
    """JAX/Pallas port of GLRFast (forward = op_L_norm)."""

    def __init__(self, n_channels, n_node_fts, n_graphs, connection_window,
                 M_diag_init=0.4):
        self.n_channels = n_channels
        self.n_node_fts = n_node_fts
        self.n_graphs = n_graphs
        self.n_edges = int((connection_window == 1).sum())
        self.connection_window = connection_window

        window_size = connection_window.shape[0]
        cw_flat = connection_window.reshape(-1)
        m = np.arange(window_size) - window_size // 2
        edge_delta = np.array(list(itertools.product(m, m)), dtype=np.int32)
        self.edge_delta = edge_delta[cw_flat == 1]
        self.pad_dim_hw = np.abs(self.edge_delta.min(axis=0))

        # Parameter from __init__ (unused in forward, kept for fidelity).
        self.multiM = jnp.ones((n_graphs, n_node_fts), dtype=jnp.float32) * M_diag_init

    def forward(self, patchs, edge_weights, node_degree=None):
        # node_degree is accepted but unused, exactly like the PyTorch forward.
        B, G, C, H, W = patchs.shape
        E = self.n_edges
        N = B * G
        L = N * W

        # Lane-major plumbing: (b, g) and w fold together onto the lane axis so
        # stores are always full-lane dense even when B*G is small.
        x_l = jnp.transpose(patchs, (2, 3, 0, 1, 4)).reshape(C, H, L)
        w_l = jnp.transpose(edge_weights, (2, 3, 0, 1, 4)).reshape(E, H, L)

        out_dtype = patchs.dtype
        vmem_cap = _vmem_capacity_bytes()
        budget = min(int(vmem_cap * 0.4), 48 * 1024 * 1024)
        tc, lb = _choose_tiles(
            C, N, H, W, E,
            jnp.dtype(x_l.dtype).itemsize,
            jnp.dtype(w_l.dtype).itemsize,
            jnp.dtype(out_dtype).itemsize,
            budget, _num_tensorcores())

        n_nt, n_ct = L // lb, C // tc
        use_w_scratch = n_ct > 1   # only pay for the f32 weight scratch if reused
        kernel = _make_glr_kernel(
            [(int(dh), int(dw)) for dh, dw in self.edge_delta], H, W, use_w_scratch)
        scratch = [pltpu.VMEM((E, H, lb), jnp.float32)] if use_w_scratch else []

        out_l = pl.pallas_call(
            kernel,
            out_shape=jax.ShapeDtypeStruct((C, H, L), out_dtype),
            grid_spec=pltpu.PrefetchScalarGridSpec(
                num_scalar_prefetch=0,
                grid=(n_nt, n_ct),   # ci fast => weight block fetched once per N-tile
                in_specs=[
                    pl.BlockSpec((tc, H, lb), lambda ni, ci: (ci, 0, ni)),
                    pl.BlockSpec((E, H, lb), lambda ni, ci: (0, 0, ni)),
                ],
                out_specs=pl.BlockSpec((tc, H, lb), lambda ni, ci: (ci, 0, ni)),
                scratch_shapes=scratch,
            ),
            compiler_params=pltpu.CompilerParams(
                # ni parallel -> megacore shards along N-tiles (each core keeps
                # its own weight reuse); ci arbitrary -> sequential, so the
                # weight scratch refreshed at ci==0 stays valid.
                dimension_semantics=("parallel", "arbitrary"),
                vmem_limit_bytes=int(min(vmem_cap * 3 // 4, 100 * 1024 * 1024)),
            ),
        )(x_l, w_l)

        # Back to the PyTorch (B, G, C, H, W) convention.
        out = out_l.reshape(C, H, B, G, W).transpose(2, 3, 0, 1, 4)
        return out


# --------------------------------------------------------------------------
# Pure-JAX reference (GLRFast.op_L_norm semantics, f32)
# --------------------------------------------------------------------------
def _reference_forward(patchs, edge_weights, edge_delta):
    B, G, C, H, W = patchs.shape
    padH = int(np.abs(edge_delta[:, 0]).max())
    padW = int(np.abs(edge_delta[:, 1]).max())
    xpad = jnp.pad(
        patchs, ((0, 0), (0, 0), (0, 0), (padH, padH), (padW, padW)), mode="edge")
    out = patchs
    for e, (dh, dw) in enumerate(edge_delta):
        dh, dw = int(dh), int(dw)
        nb = xpad[..., padH + dh:padH + dh + H, padW + dw:padW + dw + W]
        out = out - edge_weights[:, :, e][:, :, None, :, :] * nb
    return out


if __name__ == "__main__":
    # Small deterministic example; N = B*G = 32, fused lane axis = 512 lanes.
    B, G, C, H, W = 8, 4, 4, 16, 16
    n_node_fts = 8
    connection_window = np.ones((3, 3), dtype=np.int32)  # full 3x3 neighborhood

    model = GLRFastPallas(
        n_channels=C,
        n_node_fts=n_node_fts,
        n_graphs=G,
        connection_window=connection_window,
        M_diag_init=0.4,
    )
    E = model.n_edges  # 9

    key = jax.random.PRNGKey(0)
    k1, k2 = jax.random.split(key)
    # Inputs live in HBM as bf16; the kernel upcasts once and accumulates in f32.
    patchs = jax.random.normal(k1, (B, G, C, H, W), dtype=jnp.float32).astype(jnp.bfloat16)
    edge_logits = jax.random.normal(k2, (B, G, E, H, W), dtype=jnp.float32)
    edge_weights = jax.nn.softmax(edge_logits, axis=2).astype(jnp.bfloat16)
    node_degree = edge_weights.astype(jnp.float32).sum(axis=2)  # unused by forward

    out = model.forward(patchs, edge_weights, node_degree)
    out = jax.block_until_ready(out)

    assert out.shape == (B, G, C, H, W)
    assert out.dtype == patchs.dtype

    ref = _reference_forward(
        patchs.astype(jnp.float32), edge_weights.astype(jnp.float32), model.edge_delta)
    ref = jax.block_until_ready(ref)

    np.testing.assert_allclose(
        np.asarray(out.astype(jnp.float32)), np.asarray(ref), rtol=1e-2, atol=1e-2)

    print("KERNEL_OK")
</pallas_src>

<mosaic_0001>
module attributes {stable_mosaic.version = 11 : i64} {
  func.func @kernel(%arg0: i32, %arg1: i32, %arg2: memref<4x16x512xbf16, #tpu.memory_space<vmem>>, %arg3: memref<9x16x512xbf16, #tpu.memory_space<vmem>>, %arg4: memref<4x16x512xbf16, #tpu.memory_space<vmem>>) attributes {dimension_semantics = [#tpu.dimension_semantics<parallel>, #tpu.dimension_semantics<arbitrary>], iteration_bounds = array<i64: 1, 1>, scalar_prefetch = 0 : i64, scratch_operands = 0 : i64, tpu.core_type = #tpu.core_type<tc>, window_params = [{transform_indices = @transform_0, window_bounds = array<i64: 4, 16, 512>}, {transform_indices = @transform_1, window_bounds = array<i64: 9, 16, 512>}, {transform_indices = @transform_2, window_bounds = array<i64: 4, 16, 512>}]} {
    %c0 = arith.constant 0 : index
    %c0_0 = arith.constant 0 : index
    %c0_1 = arith.constant 0 : index
    %0 = vector.load %arg2[%c0, %c0_0, %c0_1] : memref<4x16x512xbf16, #tpu.memory_space<vmem>>, vector<4x16x512xbf16>
    %1 = arith.extf %0 : vector<4x16x512xbf16> to vector<4x16x512xf32>
    %2 = tpu.iota {dimensions = array<i32: 1>} : vector<4x16x512xi32>
    %3 = tpu.iota {dimensions = array<i32: 2>} : vector<4x16x512xi32>
    %c16_i32 = arith.constant 16 : i32
    %c0_i32 = arith.constant 0 : i32
    %4 = arith.cmpi eq, %c16_i32, %c0_i32 : i32
    %c1_i32 = arith.constant 1 : i32
    %5 = arith.select %4, %c1_i32, %c16_i32 : i32
    %6 = vector.broadcast %5 : i32 to vector<4x16x512xi32>
    %7 = arith.remsi %3, %6 : vector<4x16x512xi32>
    %c0_i32_2 = arith.constant 0 : i32
    %8 = vector.broadcast %c0_i32_2 : i32 to vector<4x16x512xi32>
    %9 = arith.cmpi ne, %7, %8 : vector<4x16x512xi32>
    %c0_i32_3 = arith.constant 0 : i32
    %10 = vector.broadcast %c0_i32_3 : i32 to vector<4x16x512xi32>
    %11 = arith.cmpi slt, %7, %10 : vector<4x16x512xi32>
    %c0_i32_4 = arith.constant 0 : i32
    %12 = arith.cmpi slt, %5, %c0_i32_4 : i32
    %13 = vector.broadcast %12 : i1 to vector<4x16x512xi1>
    %14 = vector.broadcast %13 : vector<4x16x512xi1> to vector<4x16x512xi1>
    %15 = arith.xori %11, %14 : vector<4x16x512xi1>
    %16 = arith.andi %15, %9 : vector<4x16x512xi1>
    %17 = vector.broadcast %5 : i32 to vector<4x16x512xi32>
    %18 = arith.addi %7, %17 : vector<4x16x512xi32>
    %19 = arith.select %16, %18, %7 : vector<4x16x512xi1>, vector<4x16x512xi32>
    %c1_i32_5 = arith.constant 1 : i32
    %20 = tpu.dynamic_rotate %1 by %c1_i32_5 dim 1 : vector<4x16x512xf32>, i32 -> vector<4x16x512xf32>
    %c0_i32_6 = arith.constant 0 : i32
    %21 = vector.broadcast %c0_i32_6 : i32 to vector<4x16x512xi32>
    %22 = arith.cmpi eq, %2, %21 : vector<4x16x512xi32>
    %23 = arith.select %22, %1, %20 : vector<4x16x512xi1>, vector<4x16x512xf32>
    %c1_i32_7 = arith.constant 1 : i32
    %24 = tpu.dynamic_rotate %23 by %c1_i32_7 dim 2 : vector<4x16x512xf32>, i32 -> vector<4x16x512xf32>
    %c0_i32_8 = arith.constant 0 : i32
    %25 = vector.broadcast %c0_i32_8 : i32 to vector<4x16x512xi32>
    %26 = arith.cmpi eq, %19, %25 : vector<4x16x512xi32>
    %27 = arith.select %26, %23, %24 : vector<4x16x512xi1>, vector<4x16x512xf32>
    %c0_9 = arith.constant 0 : index
    %c0_10 = arith.constant 0 : index
    %c0_11 = arith.constant 0 : index
    %28 = vector.load %arg3[%c0_9, %c0_10, %c0_11] : memref<9x16x512xbf16, #tpu.memory_space<vmem>>, vector<1x16x512xbf16>
    %29 = vector.shape_cast %28 : vector<1x16x512xbf16> to vector<16x512xbf16>
    %30 = arith.extf %29 : vector<16x512xbf16> to vector<16x512xf32>
    %31 = vector.shape_cast %30 : vector<16x512xf32> to vector<1x16x512xf32>
    %32 = vector.broadcast %31 : vector<1x16x512xf32> to vector<4x16x512xf32>
    %33 = arith.mulf %32, %27 : vector<4x16x512xf32>
    %34 = arith.subf %1, %33 : vector<4x16x512xf32>
    %c1 = arith.constant 1 : index
    %c0_12 = arith.constant 0 : index
    %c0_13 = arith.constant 0 : index
    %35 = vector.load %arg3[%c1, %c0_12, %c0_13] : memref<9x16x512xbf16, #tpu.memory_space<vmem>>, vector<1x16x512xbf16>
    %36 = vector.shape_cast %35 : vector<1x16x512xbf16> to vector<16x512xbf16>
    %37 = arith.extf %36 : vector<16x512xbf16> to vector<16x512xf32>
    %38 = vector.shape_cast %37 : vector<16x512xf32> to vector<1x16x512xf32>
    %39 = vector.broadcast %38 : vector<1x16x512xf32> to vector<4x16x512xf32>
    %40 = arith.mulf %39, %23 : vector<4x16x512xf32>
    %41 = arith.subf %34, %40 : vector<4x16x512xf32>
    %c511_i32 = arith.constant 511 : i32
    %42 = tpu.dynamic_rotate %23 by %c511_i32 dim 2 : vector<4x16x512xf32>, i32 -> vector<4x16x512xf32>
    %c15_i32 = arith.constant 15 : i32
    %43 = vector.broadcast %c15_i32 : i32 to vector<4x16x512xi32>
    %44 = arith.cmpi eq, %19, %43 : vector<4x16x512xi32>
    %45 = arith.select %44, %23, %42 : vector<4x16x512xi1>, vector<4x16x512xf32>
    %c2 = arith.constant 2 : index
    %c0_14 = arith.constant 0 : index
    %c0_15 = arith.constant 0 : index
    %46 = vector.load %arg3[%c2, %c0_14, %c0_15] : memref<9x16x512xbf16, #tpu.memory_space<vmem>>, vector<1x16x512xbf16>
    %47 = vector.shape_cast %46 : vector<1x16x512xbf16> to vector<16x512xbf16>
    %48 = arith.extf %47 : vector<16x512xbf16> to vector<16x512xf32>
    %49 = vector.shape_cast %48 : vector<16x512xf32> to vector<1x16x512xf32>
    %50 = vector.broadcast %49 : vector<1x16x512xf32> to vector<4x16x512xf32>
    %51 = arith.mulf %50, %45 : vector<4x16x512xf32>
    %52 = arith.subf %41, %51 : vector<4x16x512xf32>
    %c1_i32_16 = arith.constant 1 : i32
    %53 = tpu.dynamic_rotate %1 by %c1_i32_16 dim 2 : vector<4x16x512xf32>, i32 -> vector<4x16x512xf32>
    %c0_i32_17 = arith.constant 0 : i32
    %54 = vector.broadcast %c0_i32_17 : i32 to vector<4x16x512xi32>
    %55 = arith.cmpi eq, %19, %54 : vector<4x16x512xi32>
    %56 = arith.select %55, %1, %53 : vector<4x16x512xi1>, vector<4x16x512xf32>
    %c3 = arith.constant 3 : index
    %c0_18 = arith.constant 0 : index
    %c0_19 = arith.constant 0 : index
    %57 = vector.load %arg3[%c3, %c0_18, %c0_19] : memref<9x16x512xbf16, #tpu.memory_space<vmem>>, vector<1x16x512xbf16>
    %58 = vector.shape_cast %57 : vector<1x16x512xbf16> to vector<16x512xbf16>
    %59 = arith.extf %58 : vector<16x512xbf16> to vector<16x512xf32>
    %60 = vector.shape_cast %59 : vector<16x512xf32> to vector<1x16x512xf32>
    %61 = vector.broadcast %60 : vector<1x16x512xf32> to vector<4x16x512xf32>
    %62 = arith.mulf %61, %56 : vector<4x16x512xf32>
    %63 = arith.subf %52, %62 : vector<4x16x512xf32>
    %c4 = arith.constant 4 : index
    %c0_20 = arith.constant 0 : index
    %c0_21 = arith.constant 0 : index
    %64 = vector.load %arg3[%c4, %c0_20, %c0_21] : memref<9x16x512xbf16, #tpu.memory_space<vmem>>, vector<1x16x512xbf16>
    %65 = vector.shape_cast %64 : vector<1x16x512xbf16> to vector<16x512xbf16>
    %66 = arith.extf %65 : vector<16x512xbf16> to vector<16x512xf32>
    %67 = vector.shape_cast %66 : vector<16x512xf32> to vector<1x16x512xf32>
    %68 = vector.broadcast %67 : vector<1x16x512xf32> to vector<4x16x512xf32>
    %69 = arith.mulf %68, %1 : vector<4x16x512xf32>
    %70 = arith.subf %63, %69 : vector<4x16x512xf32>
    %c511_i32_22 = arith.constant 511 : i32
    %71 = tpu.dynamic_rotate %1 by %c511_i32_22 dim 2 : vector<4x16x512xf32>, i32 -> vector<4x16x512xf32>
    %c15_i32_23 = arith.constant 15 : i32
    %72 = vector.broadcast %c15_i32_23 : i32 to vector<4x16x512xi32>
    %73 = arith.cmpi eq, %19, %72 : vector<4x16x512xi32>
    %74 = arith.select %73, %1, %71 : vector<4x16x512xi1>, vector<4x16x512xf32>
    %c5 = arith.constant 5 : index
    %c0_24 = arith.constant 0 : index
    %c0_25 = arith.constant 0 : index
    %75 = vector.load %arg3[%c5, %c0_24, %c0_25] : memref<9x16x512xbf16, #tpu.memory_space<vmem>>, vector<1x16x512xbf16>
    %76 = vector.shape_cast %75 : vector<1x16x512xbf16> to vector<16x512xbf16>
    %77 = arith.extf %76 : vector<16x512xbf16> to vector<16x512xf32>
    %78 = vector.shape_cast %77 : vector<16x512xf32> to vector<1x16x512xf32>
    %79 = vector.broadcast %78 : vector<1x16x512xf32> to vector<4x16x512xf32>
    %80 = arith.mulf %79, %74 : vector<4x16x512xf32>
    %81 = arith.subf %70, %80 : vector<4x16x512xf32>
    %c15_i32_26 = arith.constant 15 : i32
    %82 = tpu.dynamic_rotate %1 by %c15_i32_26 dim 1 : vector<4x16x512xf32>, i32 -> vector<4x16x512xf32>
    %c15_i32_27 = arith.constant 15 : i32
    %83 = vector.broadcast %c15_i32_27 : i32 to vector<4x16x512xi32>
    %84 = arith.cmpi eq, %2, %83 : vector<4x16x512xi32>
    %85 = arith.select %84, %1, %82 : vector<4x16x512xi1>, vector<4x16x512xf32>
    %c1_i32_28 = arith.constant 1 : i32
    %86 = tpu.dynamic_rotate %85 by %c1_i32_28 dim 2 : vector<4x16x512xf32>, i32 -> vector<4x16x512xf32>
    %c0_i32_29 = arith.constant 0 : i32
    %87 = vector.broadcast %c0_i32_29 : i32 to vector<4x16x512xi32>
    %88 = arith.cmpi eq, %19, %87 : vector<4x16x512xi32>
    %89 = arith.select %88, %85, %86 : vector<4x16x512xi1>, vector<4x16x512xf32>
    %c6 = arith.constant 6 : index
    %c0_30 = arith.constant 0 : index
    %c0_31 = arith.constant 0 : index
    %90 = vector.load %arg3[%c6, %c0_30, %c0_31] : memref<9x16x512xbf16, #tpu.memory_space<vmem>>, vector<1x16x512xbf16>
    %91 = vector.shape_cast %90 : vector<1x16x512xbf16> to vector<16x512xbf16>
    %92 = arith.extf %91 : vector<16x512xbf16> to vector<16x512xf32>
    %93 = vector.shape_cast %92 : vector<16x512xf32> to vector<1x16x512xf32>
    %94 = vector.broadcast %93 : vector<1x16x512xf32> to vector<4x16x512xf32>
    %95 = arith.mulf %94, %89 : vector<4x16x512xf32>
    %96 = arith.subf %81, %95 : vector<4x16x512xf32>
    %c7 = arith.constant 7 : index
    %c0_32 = arith.constant 0 : index
    %c0_33 = arith.constant 0 : index
    %97 = vector.load %arg3[%c7, %c0_32, %c0_33] : memref<9x16x512xbf16, #tpu.memory_space<vmem>>, vector<1x16x512xbf16>
    %98 = vector.shape_cast %97 : vector<1x16x512xbf16> to vector<16x512xbf16>
    %99 = arith.extf %98 : vector<16x512xbf16> to vector<16x512xf32>
    %100 = vector.shape_cast %99 : vector<16x512xf32> to vector<1x16x512xf32>
    %101 = vector.broadcast %100 : vector<1x16x512xf32> to vector<4x16x512xf32>
    %102 = arith.mulf %101, %85 : vector<4x16x512xf32>
    %103 = arith.subf %96, %102 : vector<4x16x512xf32>
    %c511_i32_34 = arith.constant 511 : i32
    %104 = tpu.dynamic_rotate %85 by %c511_i32_34 dim 2 : vector<4x16x512xf32>, i32 -> vector<4x16x512xf32>
    %c15_i32_35 = arith.constant 15 : i32
    %105 = vector.broadcast %c15_i32_35 : i32 to vector<4x16x512xi32>
    %106 = arith.cmpi eq, %19, %105 : vector<4x16x512xi32>
    %107 = arith.select %106, %85, %104 : vector<4x16x512xi1>, vector<4x16x512xf32>
    %c8 = arith.constant 8 : index
    %c0_36 = arith.constant 0 : index
    %c0_37 = arith.constant 0 : index
    %108 = vector.load %arg3[%c8, %c0_36, %c0_37] : memref<9x16x512xbf16, #tpu.memory_space<vmem>>, vector<1x16x512xbf16>
    %109 = vector.shape_cast %108 : vector<1x16x512xbf16> to vector<16x512xbf16>
    %110 = arith.extf %109 : vector<16x512xbf16> to vector<16x512xf32>
    %111 = vector.shape_cast %110 : vector<16x512xf32> to vector<1x16x512xf32>
    %112 = vector.broadcast %111 : vector<1x16x512xf32> to vector<4x16x512xf32>
    %113 = arith.mulf %112, %107 : vector<4x16x512xf32>
    %114 = arith.subf %103, %113 : vector<4x16x512xf32>
    %115 = arith.truncf %114 : vector<4x16x512xf32> to vector<4x16x512xbf16>
    %c0_38 = arith.constant 0 : index
    %c0_39 = arith.constant 0 : index
    %c0_40 = arith.constant 0 : index
    %116 = vector.load %arg4[%c0_38, %c0_39, %c0_40] : memref<4x16x512xbf16, #tpu.memory_space<vmem>>, vector<4x16x512xbf16>
    tpu.vector_store %arg4[%c0_38, %c0_39, %c0_40], %115 {strides = array<i32>} : memref<4x16x512xbf16, #tpu.memory_space<vmem>>, vector<4x16x512xbf16>,
    return
  }
  func.func @transform_0(%arg0: i32, %arg1: i32) -> (i32, i32, i32) {
    %c0_i32 = arith.constant 0 : i32
    %c0_i32_0 = arith.constant 0 : i32
    return %arg1, %c0_i32, %arg0 : i32, i32, i32
  }
  func.func @transform_1(%arg0: i32, %arg1: i32) -> (i32, i32, i32) {
    %c0_i32 = arith.constant 0 : i32
    %c0_i32_0 = arith.constant 0 : i32
    %c0_i32_1 = arith.constant 0 : i32
    return %c0_i32, %c0_i32_0, %arg0 : i32, i32, i32
  }
  func.func @transform_2(%arg0: i32, %arg1: i32) -> (i32, i32, i32) {
    %c0_i32 = arith.constant 0 : i32
    %c0_i32_0 = arith.constant 0 : i32
    return %arg1, %c0_i32, %arg0 : i32, i32, i32
  }
}

</mosaic_0001>

<bundles_post_ra>
// kernel: tpu_custom_call.1
= control target key start
LH: loop header
LB: loop body
LE: loop exit
PB: predicated region body
PF: predicated region fallthrough
CT: control target
= control target key end

     0   :  { %7 = vsyncpa [#allocation3], 0  ;;  %s6539_s0 = inlined_call_operand.hbm [shape: bf16[4,16,512], index: 0, kind: input, shape index: {}]   ;;  %s6540_s1 = inlined_call_operand.hbm [shape: bf16[9,16,512], index: 1, kind: input, shape index: {}]   ;;  %s6541_s2 = inlined_call_operand.hbm [shape: bf16[4,16,512], index: 2, kind: output, shape index: {}]  }
   0x1   :  { %8 = vsyncpa [#allocation6], 0 }
   0x2   :  { %9 = vsyncpa [#allocation4], 0  ;;  %s14_s11 = sshll.u32 %s6539_s0, 4  ;;  %s2433_s12 = smov [#allocation2]   ;;  %s15_s11 = int_to_ptr.hbm [resolvable:$true] %s14_s11 }
   0x3   :  { %s16_s13 = sshll.u32 %s2433_s12, 4  ;;  %s27_s16 = sshll.u32 %s6540_s1, 4  ;;  %s17_s13 = int_to_ptr.vmem [resolvable:$true] %s16_s13  ;;  %s28_s16 = int_to_ptr.hbm [resolvable:$true] %s27_s16 }
   0x4   :  { %s2434_s17 = smov 256   ;;  %s2435_s18 = smov 16  }
   0x5   :  { %22 = dma.hbm_to_vmem [thread:$0]  %s15_s11, 2048, %s17_s13, [#allocation3], %s2434_s17, %s2434_s17, %s2435_s18  }
   0x6   :  { %s2436_s19 = smov [#allocation5]  }
   0x7   :  { %s29_s20 = sshll.u32 %s2436_s19, 4  ;;  %s30_s20 = int_to_ptr.vmem [resolvable:$true] %s29_s20 }
   0x8   :  { %35 = dma.hbm_to_vmem [thread:$0]  %s28_s16, 4608, %s30_s20, [#allocation6], %s2434_s17, %s2434_s17, %s2435_s18  }
   0x9   :  { %2427 = dma.done.wait [#allocation3], 2048  }
   0xa   :  { %2428 = vsyncadd [#allocation3], 4294965248 }
   0xb   :  { %2429 = dma.done.wait [#allocation6], 4608  }
   0xc   :  { %2430 = vsyncadd [#allocation6], 4294962688  ;;  %v6542_v0 = vlaneseq  ;;  %v52_v2 = vld [vmem:[#allocation2 + $0x40] sm:$0xff]  ;;  %v54_v3 = vld [vmem:[#allocation2 + $0x50] sm:$0xff]  ;;  %s2437_s0 = smov 1   ;;  %s2438_s1 = smov 127  }
   0xd   :  { %v2470_v4 = vunpack.c.l.bf16 %v52_v2  ;;  %v2472_v5 = vunpack.c.l.bf16 %v54_v3  ;;  %v44_v6 = vld [vmem:[#allocation2] sm:$0xff]  ;;  %v46_v7 = vld [vmem:[#allocation2 + $0x10] sm:$0xff]  ;;  %v2538_v38 = vunpack.c.h.bf16 %v52_v2  ;;  %v2553_v42 = vld [vmem:[#allocation2 + $0x8] sm:$0xff]  ;;  %v2557_v44 = vunpack.c.h.bf16 %v54_v3  ;;  %s2439_s21 = smov [#allocation7]   ;;  %s1854_s25 = sshll.u32 %s6541_s2, 4  ;;  %s1855_s25 = int_to_ptr.hbm [resolvable:$true] %s1854_s25 }
   0xe   :  { %v2468_v1 = vshrl.u32 %v6542_v0, 7  ;;  %v2478_v10 = vunpack.c.h.bf16 %v44_v6  ;;  %v2480_v11 = vunpack.c.h.bf16 %v46_v7  ;;  %v56_v14 = vld [vmem:[#allocation2 + $0x60] sm:$0xff]  ;;  %v58_v15 = vld [vmem:[#allocation2 + $0x70] sm:$0xff]  ;;  %v2499_v20 = vunpack.c.l.bf16 %v44_v6  ;;  %v2555_v43 = vld [vmem:[#allocation2 + $0x18] sm:$0xff]  ;;  %s1852_s22 = sshll.u32 %s2439_s21, 4  ;;  %s1853_s22 = int_to_ptr.vmem [resolvable:$true] %s1852_s22 }
   0xf   :  { %7008 = vst [vmem:[#allocation12_spill] sm:$0xff] %v2470_v4  ;;  %v156_v8 = vrot.slane %v2470_v4, 7  ;;  %v172_v9 = vrot.slane %v2472_v5, 7  ;;  %v2501_v21 = vunpack.c.l.bf16 %v46_v7  ;;  %v2509_v24 = vunpack.c.l.bf16 %v56_v14  ;;  %v48_v26 = vld [vmem:[#allocation2 + $0x20] sm:$0xff]  ;;  %v50_v27 = vld [vmem:[#allocation2 + $0x30] sm:$0xff] }
  0x10   :  { %7007 = vst [vmem:[#allocation11_spill] sm:$0xff] %v2468_v1  ;;  %vm180_vm0 = vcmp.lt.s32.totalorder %v2468_v1, 1  ;;  %vm213_vm1 = vcmp.eq.s32.totalorder %v2468_v1, 0  ;;  %v149_v17 = vrot.slane %v2478_v10, 7  ;;  %v165_v18 = vrot.slane %v2480_v11, 7 }
  0x11   :  { %7009 = vst [vmem:[#allocation13_spill] sm:$0xff] %v2472_v5  ;;  %v2484_v12 = vsel %vm180_vm0, %v156_v8, %v172_v9  ;;  %v205_v13 = vsel %vm180_vm0, %v172_v9, %v156_v8  ;;  %v2511_v25 = vunpack.c.l.bf16 %v58_v15  ;;  %v148_v29 = vrot.slane %v2499_v20, 7  ;;  %v53_v8 = vld [vmem:[#allocation2 + $0x48] sm:$0xff] }
  0x12   :  { %7010 = vst [vmem:[#allocation14_spill] sm:$0xff] %v2478_v10  ;;  %v2491_v16 = vsel %vm213_vm1, %v2470_v4, %v205_v13  ;;  %v2505_v22 = vsel %vm180_vm0, %v149_v17, %v165_v18  ;;  %v198_v23 = vsel %vm180_vm0, %v165_v18, %v149_v17  ;;  %v164_v30 = vrot.slane %v2501_v21, 7  ;;  %v55_v17 = vld [vmem:[#allocation2 + $0x58] sm:$0xff]  ;;  %v2631_v18 = vld [vmem:[#allocation2 + $0x68] sm:$0xff] }
  0x13   :  { %7011 = vst [vmem:[#allocation15_spill] sm:$0xff] %v2480_v11  ;;  %v2497_v19 = vpack.i.bf16 %v2484_v12, %v2491_v16  ;;  %v2518_v28 = vsel %vm213_vm1, %v2478_v10, %v198_v23  ;;  %v160_v32 = vrot.slane %v2509_v24, 7  ;;  %v176_v33 = vrot.slane %v2511_v25, 7  ;;  %v2633_v23 = vld [vmem:[#allocation2 + $0x78] sm:$0xff] }
  0x14   :  { %7012 = vst [vmem:[#allocation16_spill] sm:$0xff] %v2484_v12  ;;  %v2524_v31 = vpack.i.bf16 %v2505_v22, %v2518_v28  ;;  %v2530_v34 = vsel %vm180_vm0, %v148_v29, %v164_v30  ;;  %v197_v35 = vsel %vm180_vm0, %v164_v30, %v148_v29  ;;  %v2534_v36 = vunpack.c.h.bf16 %v48_v26 }
  0x15   :  { %7013 = vst [vmem:[#allocation17_spill] sm:$0xff] %v2491_v16  ;;  %1886 = vrot.lane.b32.xlu1 %v2497_v19, %s2437_s0  ;;  %v2536_v37 = vunpack.c.h.bf16 %v50_v27  ;;  %v2545_v39 = vsel %vm213_vm1, %v2499_v20, %v197_v35  ;;  %v2549_v40 = vsel %vm180_vm0, %v160_v32, %v176_v33  ;;  %v209_v41 = vsel %vm180_vm0, %v176_v33, %v160_v32  ;;  %v49_v32 = vld [vmem:[#allocation2 + $0x28] sm:$0xff] }
  0x16   :  { %7014 = vst [vmem:[#allocation18_spill] sm:$0xff] %v2499_v20  ;;  %1896 = vrot.lane.b32.xlu2 %v2524_v31, %s2437_s0  ;;  %v2561_v45 = vpack.i.bf16 %v2530_v34, %v2545_v39  ;;  %v2566_v46 = vsel %vm213_vm1, %v2509_v24, %v209_v41  ;;  %v153_v47 = vrot.slane %v2534_v36, 7  ;;  %v2574_v50 = vunpack.c.l.bf16 %v48_v26 }
  0x17   :  { %7015 = vst [vmem:[#allocation19_spill] sm:$0xff] %v2501_v21  ;;  %v2571_v48 = vpack.i.bf16 %v2549_v40, %v2566_v46  ;;  %v169_v49 = vrot.slane %v2536_v37, 7  ;;  %v2576_v51 = vunpack.c.l.bf16 %v50_v27  ;;  %v2580_v52 = vunpack.c.h.bf16 %v56_v14 }
  0x18   :  { %7016 = vst [vmem:[#allocation20_spill] sm:$0xff] %v2505_v22  ;;  %1876 = vrot.lane.b32.xlu0 %v2561_v45, %s2437_s0  ;;  %v2582_v53 = vunpack.c.h.bf16 %v58_v15  ;;  %v2585_v54 = vunpack.c.l.bf16 %v2553_v42  ;;  %v2588_v55 = vunpack.c.l.bf16 %v2555_v43  ;;  %v152_v58 = vrot.slane %v2574_v50, 7 }
  0x19   :  { %7017 = vst [vmem:[#allocation21_spill] sm:$0xff] %v2509_v24  ;;  %v2592_v56 = vsel %vm180_vm0, %v153_v47, %v169_v49  ;;  %v202_v57 = vsel %vm180_vm0, %v169_v49, %v153_v47  ;;  %v168_v59 = vrot.slane %v2576_v51, 7  ;;  %v161_v61 = vrot.slane %v2580_v52, 7 }
  0x1a   :  { %7018 = vst [vmem:[#allocation22_spill] sm:$0xff] %v2511_v25  ;;  %v2603_v60 = vsel %vm213_vm1, %v2534_v36, %v202_v57  ;;  %v177_v62 = vrot.slane %v2582_v53, 7  ;;  %v150_v63 = vrot.slane %v2585_v54, 7  ;;  %v166_v7 = vrot.slane %v2588_v55, 7 }
  0x1b   :  { %7019 = vst [vmem:[#allocation23_spill] sm:$0xff] %v2518_v28  ;;  %v2610_v2 = vpack.i.bf16 %v2592_v56, %v2603_v60  ;;  %v2614_v3 = vsel %vm180_vm0, %v152_v58, %v168_v59  ;;  %v201_v6 = vsel %vm180_vm0, %v168_v59, %v152_v58  ;;  %v157_v15 = vrot.slane %v2538_v38, 7 }
  0x1c   :  { %7020 = vst [vmem:[#allocation24_spill] sm:$0xff] %v2530_v34  ;;  %v2622_v9 = vsel %vm213_vm1, %v2574_v50, %v201_v6  ;;  %v2626_v13 = vsel %vm180_vm0, %v161_v61, %v177_v62  ;;  %v210_v14 = vsel %vm180_vm0, %v177_v62, %v161_v61  ;;  %v2648_v29 = vsel %vm180_vm0, %v150_v63, %v166_v7  ;;  %v51_v61 = vld [vmem:[#allocation2 + $0x38] sm:$0xff] }
  0x1d   :  { %7021 = vst [vmem:[#allocation25_spill] sm:$0xff] %v2534_v36  ;;  %1891 = vrot.lane.b32.xlu1 %v2571_v48, %s2437_s0  ;;  %v2639_v26 = vpack.i.bf16 %v2614_v3, %v2622_v9  ;;  %v2644_v27 = vsel %vm213_vm1, %v2580_v52, %v210_v14  ;;  %v199_v30 = vsel %vm180_vm0, %v166_v7, %v150_v63  ;;  %v173_v41 = vrot.slane %v2557_v44, 7 }
  0x1e   :  { %7022 = vst [vmem:[#allocation26_spill] sm:$0xff] %v2536_v37  ;;  %1901 = vrot.lane.b32.xlu2 %v2610_v2, %s2437_s0  ;;  %v2654_v33 = vpack.i.bf16 %v2626_v13, %v2644_v27  ;;  %v2659_v35 = vsel %vm213_vm1, %v2585_v54, %v199_v30  ;;  %v2662_v47 = vunpack.c.l.bf16 %v53_v8  ;;  %v2668_v57 = vunpack.c.l.bf16 %v55_v17 }
  0x1f   :  { %7023 = vst [vmem:[#allocation27_spill] sm:$0xff] %v2538_v38  ;;  %v2666_v49 = vpack.i.bf16 %v2648_v29, %v2659_v35  ;;  %v2671_v58 = vunpack.c.l.bf16 %v2631_v18  ;;  %v2674_v59 = vunpack.c.l.bf16 %v2633_v23  ;;  %v2680_v62 = vsel %vm180_vm0, %v157_v15, %v173_v41 }
  0x20   :  { %7024 = vst [vmem:[#allocation28_spill] sm:$0xff] %v2545_v39  ;;  %1881 = vrot.lane.b32.xlu0 %v2639_v26, %s2437_s0  ;;  %v206_v63 = vsel %vm180_vm0, %v173_v41, %v157_v15  ;;  %v158_v6 = vrot.slane %v2662_v47, 7  ;;  %v2685_v7 = vunpack.c.l.bf16 %v49_v32  ;;  %v174_v30 = vrot.slane %v2668_v57, 7 }
  0x21   :  { %7025 = vst [vmem:[#allocation29_spill] sm:$0xff] %v2549_v40  ;;  %v2690_v14 = vsel %vm213_vm1, %v2538_v38, %v206_v63  ;;  %v162_v0 = vrot.slane %v2671_v58, 7  ;;  %v178_v40 = vrot.slane %v2674_v59, 7  ;;  %v2700_v41 = vunpack.c.h.bf16 %v49_v32 }
  0x22   :  { %7026 = vst [vmem:[#allocation30_spill] sm:$0xff] %v2557_v44  ;;  %v154_v15 = vrot.slane %v2685_v7, 7  ;;  %v207_v63 = vsel %vm180_vm0, %v174_v30, %v158_v6  ;;  %v2739_v34 = vunpack.c.h.bf16 %v55_v17  ;;  %v7078_v1 = vmov 0 }
  0x23   :  { %7027 = vst [vmem:[#allocation31_spill] sm:$0xff] %v2566_v46  ;;  %v2697_v46 = vunpack.c.l.bf16 %v51_v61 }
  0x24   :  { %7028 = vst [vmem:[#allocation32_spill] sm:$0xff] %v2574_v50 }
  0x25   :  { %7029 = vst [vmem:[#allocation33_spill] sm:$0xff] %v2576_v51  ;;  %1911 = vrot.lane.b32.xlu1 %v2654_v33, %s2437_s0  ;;  %v170_v32 = vrot.slane %v2697_v46, 7 }
  0x26   :  { %7030 = vst [vmem:[#allocation34_spill] sm:$0xff] %v2580_v52  ;;  %1916 = vrot.lane.b32.xlu2 %v2666_v49, %s2437_s0 }
  0x27   :  { %7031 = vst [vmem:[#allocation35_spill] sm:$0xff] %v2582_v53  ;;  %v2756_v17 = vsel %vm180_vm0, %v154_v15, %v170_v32 }
  0x28   :  { %7032 = vst [vmem:[#allocation36_spill] sm:$0xff] %v2585_v54 }
  0x29   :  { %7033 = vst [vmem:[#allocation37_spill] sm:$0xff] %v2588_v55 }
  0x2a   :  { %7034 = vst [vmem:[#allocation38_spill] sm:$0xff] %v2592_v56  ;;  %v155_v56 = vrot.slane %v2700_v41, 7 }
  0x2b   :  { %7035 = vst [vmem:[#allocation39_spill] sm:$0xff] %v2603_v60  ;;  %v2718_v60 = vunpack.c.h.bf16 %v51_v61 }
  0x2c   :  { %7036 = vst [vmem:[#allocation40_spill] sm:$0xff] %v2614_v3  ;;  %v2704_v3 = vsel %vm180_vm0, %v158_v6, %v174_v30  ;;  %v2724_v6 = vsel %vm180_vm0, %v162_v0, %v178_v40 }
  0x2d   :  { %7037 = vst [vmem:[#allocation41_spill] sm:$0xff] %v2622_v9  ;;  %v211_v9 = vsel %vm180_vm0, %v178_v40, %v162_v0  ;;  %v2743_v40 = vunpack.c.h.bf16 %v2553_v42 }
  0x2e   :  { %7038 = vst [vmem:[#allocation42_spill] sm:$0xff] %v2626_v13  ;;  %v1905_v13 = vpack.i.bf16 %v2680_v62, %v2690_v14  ;;  %v2729_v30 = vsel %vm213_vm1, %v2671_v58, %v211_v9  ;;  %v2746_v9 = vunpack.c.h.bf16 %v2555_v43 }
  0x2f   :  { %7039 = vst [vmem:[#allocation43_spill] sm:$0xff] %v2644_v27  ;;  %v2715_v27 = vsel %vm213_vm1, %v2662_v47, %v207_v63  ;;  %v2732_v63 = vunpack.c.h.bf16 %v53_v8 }
  0x30   :  { %7040 = vst [vmem:[#allocation44_spill] sm:$0xff] %v2648_v29  ;;  %v1925_v61 = vpack.i.bf16 %v2704_v3, %v2715_v27  ;;  %1906 = vrot.lane.b32.xlu0 %v1905_v13, %s2437_s0 }
  0x31   :  { %7041 = vst [vmem:[#allocation45_spill] sm:$0xff] %v2659_v35  ;;  %v159_v0 = vrot.slane %v2732_v63, 7 }
  0x32   :  { %7042 = vst [vmem:[#allocation46_spill] sm:$0xff] %v2662_v47  ;;  %1926 = vrot.lane.b32.xlu1 %v1925_v61, %s2437_s0 }
  0x33   :  { %7043 = vst [vmem:[#allocation47_spill] sm:$0xff] %v2668_v57 }
  0x34   :  { %7044 = vst [vmem:[#allocation48_spill] sm:$0xff] %v2671_v58 }
  0x35   :  { %7045 = vst [vmem:[#allocation49_spill] sm:$0xff] %v2674_v59 }
  0x36   :  { %7046 = vst [vmem:[#allocation50_spill] sm:$0xff] %v2680_v62  ;;  %v203_v62 = vsel %vm180_vm0, %v170_v32, %v154_v15  ;;  %v167_v15 = vrot.slane %v2746_v9, 7 }
  0x37   :  { %7047 = vst [vmem:[#allocation51_spill] sm:$0xff] %v2685_v7  ;;  %v2761_v42 = vsel %vm213_vm1, %v2685_v7, %v203_v62 }
  0x38   :  { %7048 = vst [vmem:[#allocation52_spill] sm:$0xff] %v2690_v14  ;;  %v171_v14 = vrot.slane %v2718_v60, 7  ;;  %v1920_v62 = vpack.i.bf16 %v2756_v17, %v2761_v42 }
  0x39   :  { %7049 = vst [vmem:[#allocation53_spill] sm:$0xff] %v2697_v46 }
  0x3a   :  { %7050 = vst [vmem:[#allocation54_spill] sm:$0xff] %v2700_v41  ;;  %v204_v8 = vsel %vm180_vm0, %v171_v14, %v155_v56  ;;  %v2766_v43 = vsel %vm180_vm0, %v155_v56, %v171_v14  ;;  %1921 = vrot.lane.b32.xlu0 %v1920_v62, %s2437_s0 }
  0x3b   :  { %7051 = vst [vmem:[#allocation55_spill] sm:$0xff] %v2704_v3  ;;  %v175_v3 = vrot.slane %v2739_v34, 7 }
  0x3c   :  { %7052 = vst [vmem:[#allocation56_spill] sm:$0xff] %v2715_v27  ;;  %v1930_v27 = vpack.i.bf16 %v2724_v6, %v2729_v30 }
  0x3d   :  { %7053 = vst [vmem:[#allocation57_spill] sm:$0xff] %v2718_v60  ;;  %v2771_v60 = vsel %vm213_vm1, %v2700_v41, %v204_v8  ;;  %v208_v32 = vsel %vm180_vm0, %v175_v3, %v159_v0  ;;  %v2784_v14 = vsel %vm180_vm0, %v159_v0, %v175_v3  ;;  %v2794_v41 = vunpack.c.h.bf16 %v2631_v18 }
  0x3e   :  { %7054 = vst [vmem:[#allocation58_spill] sm:$0xff] %v2724_v6  ;;  %v151_v6 = vrot.slane %v2743_v40, 7  ;;  %1931 = vrot.lane.b32.xlu2 %v1930_v27, %s2437_s0  ;;  %v1940_v56 = vpack.i.bf16 %v2766_v43, %v2771_v60  ;;  %v2789_v8 = vsel %vm213_vm1, %v2732_v63, %v208_v32 }
  0x3f   :  { %7055 = vst [vmem:[#allocation59_spill] sm:$0xff] %v2729_v30  ;;  %v1945_v3 = vpack.i.bf16 %v2784_v14, %v2789_v8  ;;  %v163_v18 = vrot.slane %v2794_v41, 7 }
  0x40   :  { %7056 = vst [vmem:[#allocation60_spill] sm:$0xff] %v2732_v63  ;;  %v200_v30 = vsel %vm180_vm0, %v167_v15, %v151_v6  ;;  %v2804_v0 = vsel %vm180_vm0, %v151_v6, %v167_v15  ;;  %1941 = vrot.lane.b32.xlu1 %v1940_v56, %s2437_s0 }
  0x41   :  { %7057 = vst [vmem:[#allocation61_spill] sm:$0xff] %v2739_v34  ;;  %v2809_v32 = vsel %vm213_vm1, %v2743_v40, %v200_v30 }
  0x42   :  { %7058 = vst [vmem:[#allocation62_spill] sm:$0xff] %v2743_v40 }
  0x43   :  { %7059 = vst [vmem:[#allocation63_spill] sm:$0xff] %v2746_v9 }
  0x44   :  { %7060 = vst [vmem:[#allocation64_spill] sm:$0xff] %v2756_v17  ;;  %v1935_v17 = vpack.i.bf16 %v2804_v0, %v2809_v32 }
  0x45   :  { %7061 = vst [vmem:[#allocation65_spill] sm:$0xff] %v2761_v42  ;;  %v2797_v42 = vunpack.c.h.bf16 %v2633_v23 }
  0x46   :  { %7062 = vst [vmem:[#allocation66_spill] sm:$0xff] %v2784_v14  ;;  %1946 = vrot.lane.b32.xlu2 %v1945_v3, %s2437_s0  ;;  %1936 = vrot.lane.b32.xlu0 %v1935_v17, %s2437_s0 }
  0x47   :  { %7063 = vst [vmem:[#allocation67_spill] sm:$0xff] %v2789_v8  ;;  %v179_v23 = vrot.slane %v2797_v42, 7 }
  0x48   :  { %7064 = vst [vmem:[#allocation68_spill] sm:$0xff] %v2794_v41  ;;  %1956 = vrot.lane.b32.xlu1 %v2561_v45, %s2438_s1  ;;  %v2868_v45 = vpack.i.bf16 %v2511_v25, %v2509_v24 }
  0x49   :  { %7065 = vst [vmem:[#allocation69_spill] sm:$0xff] %v2797_v42  ;;  %v212_v6 = vsel %vm180_vm0, %v179_v23, %v163_v18  ;;  %v2822_v30 = vsel %vm180_vm0, %v163_v18, %v179_v23  ;;  %v2924_v18 = vpack.i.bf16 %v2582_v53, %v2580_v52  ;;  %v459_v23 = vld [vmem:[#allocation5 + $0x30] sm:$0xff]  ;;  %v7204_v52 = vmov 0 }
  0x4a   :  { %7066 = vst [vmem:[#allocation70_spill] sm:$0xff] %v2804_v0  ;;  %v2827_v15 = vsel %vm213_vm1, %v2794_v41, %v212_v6  ;;  %v2949_v24 = vunpack.c.l.bf16 %v459_v23  ;;  %v2951_v25 = vunpack.c.h.bf16 %v459_v23 }
  0x4b   :  { %7067 = vst [vmem:[#allocation71_spill] sm:$0xff] %v2809_v32  ;;  %v1950_v32 = vpack.i.bf16 %v2822_v30, %v2827_v15 }
  0x4c   :  { %7068 = vst [vmem:[#allocation72_spill] sm:$0xff] %v2822_v30 }
  0x4d   :  { %7069 = vst [vmem:[#allocation73_spill] sm:$0xff] %v2827_v15  ;;  %v2935_v15 = vpack.i.bf16 %v2674_v59, %v2671_v58 }
  0x4e   :  { %1961 = vrot.lane.b32.xlu2 %v2639_v26, %s2438_s1  ;;  %1951 = vrot.lane.b32.xlu0 %v1950_v32, %s2437_s0  ;;  %v2888_v26 = vpack.i.bf16 %v2557_v44, %v2538_v38  ;;  %7083 = vst [vmem:[#allocation83_spill] sm:$0xff] %v2949_v24 }
  0x4f   :  { %7076 = vst [vmem:[#allocation79_spill] sm:$0xff] %v2935_v15 }
  0x50   :  { %1971 = vrot.lane.b32.xlu1 %v2571_v48, %s2438_s1  ;;  %v2874_v48 = vpack.i.bf16 %v2576_v51, %v2574_v50  ;;  %7070 = vst [vmem:[#allocation74_spill] sm:$0xff] %v2888_v26  ;;  %v2961_v51 = vpack.i.bf16 %v2746_v9, %v2743_v40  ;;  %v380_v50 = vld [vmem:[#allocation5] sm:$0xff]  ;;  %v7090_v40 = vmov 0 }
  0x51   :  { %7084 = vst [vmem:[#allocation84_spill] sm:$0xff] %v2951_v25 }
  0x52   :  { %7086 = vst [vmem:[#allocation86_spill] sm:$0xff] %v2961_v51  ;;  %v7198_v53 = vld [vmem:[#allocation71_spill] sm:$0xff] }
  0x56   :  { %1976 = vrot.lane.b32.xlu2 %v2524_v31, %s2438_s1  ;;  %1966 = vrot.lane.b32.xlu0 %v2497_v19, %s2438_s1  ;;  %v2856_v19 = vpack.i.bf16 %v2501_v21, %v2499_v20  ;;  %v2863_v31 = vpack.i.bf16 %v2472_v5, %v2470_v4 }
  0x58   :  { %1986 = vrot.lane.b32.xlu1 %v1905_v13, %s2438_s1 }
  0x5e   :  { %1991 = vrot.lane.b32.xlu2 %v2654_v33, %s2438_s1  ;;  %1981 = vrot.lane.b32.xlu0 %v2610_v2, %s2438_s1  ;;  %v2880_v2 = vpack.i.bf16 %v2536_v37, %v2534_v36  ;;  %v7231_v37 = vld [vmem:[#allocation11_spill] sm:$0xff] }
  0x5f   :  { %vm1262_vm10 = vcmp.lt.s32.totalorder %v7231_v37, 7 }
  0x60   :  { %2001 = vrot.lane.b32.xlu1 %v1920_v62, %s2438_s1 }
  0x66   :  { %2006 = vrot.lane.b32.xlu2 %v1925_v61, %s2438_s1  ;;  %1996 = vrot.lane.b32.xlu0 %v2666_v49, %s2438_s1  ;;  %v2897_v49 = vpack.i.bf16 %v2480_v11, %v2478_v10  ;;  %v2903_v61 = vpack.i.bf16 %v2588_v55, %v2585_v54 }
  0x68   :  { %2016 = vrot.lane.b32.xlu1 %v1935_v17, %s2438_s1  ;;  %7072 = vst [vmem:[#allocation75_spill] sm:$0xff] %v2903_v61 }
  0x6e   :  { %2021 = vrot.lane.b32.xlu2 %v1940_v56, %s2438_s1  ;;  %2011 = vrot.lane.b32.xlu0 %v1930_v27, %s2438_s1  ;;  %v7071_v27 = vlaneseq  ;;  %v2914_v56 = vpack.i.bf16 %v2697_v46, %v2685_v7 }
  0x70   :  { %2031 = vrot.lane.b32.xlu1 %v1950_v32, %s2438_s1  ;;  %v2882_v13 = vpop.permute.xlu2 %1896  ;;  %v2893_v33 = vand.u32 127, %v7071_v27  ;;  %7074 = vst [vmem:[#allocation77_spill] sm:$0xff] %v2914_v56  ;;  %v457_v27 = vld [vmem:[#allocation5 + $0x20] sm:$0xff]  ;;  %v381_v32 = vld [vmem:[#allocation5 + $0x8] sm:$0xff] }
  0x71   :  { %v2945_v21 = vunpack.c.l.bf16 %v457_v27  ;;  %v7087_v7 = vunpack.i.l.bf16 %v2882_v13  ;;  %v2985_v9 = vunpack.c.l.bf16 %v381_v32 }
  0x72   :  { %v2906_v17 = vadd.s32 256, %v2893_v33  ;;  %v2929_v6 = vadd.s32 384, %v2893_v33  ;;  %vm311_vm2 = vcmp.lt.s32.totalorder %v2893_v33, 1  ;;  %vm597_vm7 = vcmp.lt.s32.totalorder %v2893_v33, 127 }
  0x73   :  { %7081 = vst [vmem:[#allocation81_spill] sm:$0xff] %v2945_v21 }
  0x74   :  { %7073 = vst [vmem:[#allocation76_spill] sm:$0xff] %v2906_v17  ;;  %v7077_v30 = vand.u32 15, %v2906_v17  ;;  %v2957_v17 = vunpack.c.h.bf16 %v457_v27  ;;  %v7088_v27 = vunpack.i.h.bf16 %v2882_v13 }
  0x76   :  { %2036 = vrot.lane.b32.xlu2 %v2856_v19, %s2437_s0  ;;  %2026 = vrot.lane.b32.xlu0 %v1945_v3, %s2438_s1  ;;  %v2919_v3 = vadd.s32 128, %v2893_v33  ;;  %vm2941_vm3 = vcmp.eq.s32.totalorder %v7077_v30, 0  ;;  %7085 = vst [vmem:[#allocation85_spill] sm:$0xff] %v2957_v17 }
  0x77   :  { %v7079_v1 = vsel %vm2941_vm3, 4294967295, %v7078_v1 }
  0x78   :  { %2046 = vrot.lane.b32.xlu1 %v2863_v31, %s2437_s0  ;;  %v2908_v62 = vpop.permute.xlu2 %1901  ;;  %7075 = vst [vmem:[#allocation78_spill] sm:$0xff] %v2919_v3  ;;  %v7089_v23 = vand.u32 15, %v2919_v3  ;;  %v2997_v3 = vmul.f32 %v2945_v21, %v2491_v16 }
  0x79   :  { %7080 = vst [vmem:[#allocation80_spill] sm:$0xff] %v7079_v1  ;;  %v7174_v1 = vmov 0 }
  0x7a   :  { %vm2981_vm4 = vcmp.eq.s32.totalorder %v7089_v23, 0  ;;  %7093 = vst [vmem:[#allocation88_spill] sm:$0xff] %v2997_v3  ;;  %v3001_v23 = vmul.f32 %v2949_v24, %v2484_v12  ;;  %v7099_v3 = vld [vmem:[#allocation24_spill] sm:$0xff] }
  0x7b   :  { %v7091_v40 = vsel %vm2981_vm4, 4294967295, %v7090_v40 }
  0x7c   :  { %7092 = vst [vmem:[#allocation87_spill] sm:$0xff] %v7091_v40  ;;  %v7169_v40 = vld [vmem:[#allocation64_spill] sm:$0xff] }
  0x7d   :  { %7094 = vst [vmem:[#allocation89_spill] sm:$0xff] %v3001_v23  ;;  %v3023_v23 = vmul.f32 %v2949_v24, %v7099_v3  ;;  %v3051_v3 = vunpack.c.l.bf16 %v380_v50 }
  0x7e   :  { %2051 = vrot.lane.b32.xlu2 %v2868_v45, %s2437_s0  ;;  %2041 = vrot.lane.b32.xlu0 %v2874_v48, %s2437_s0 }
  0x7f   :  { %7100 = vst [vmem:[#allocation94_spill] sm:$0xff] %v3023_v23 }
  0x80   :  { %2061 = vrot.lane.b32.xlu1 %v2880_v2, %s2437_s0  ;;  %v2947_v20 = vpop.permute.xlu2 %1916 }
  0x81   :  { %7082 = vst [vmem:[#allocation82_spill] sm:$0xff] %v2947_v20  ;;  %v6615_v0 = vunpack.i.h.bf16 %v2947_v20  ;;  %v6614_v30 = vunpack.i.l.bf16 %v2947_v20 }
  0x83   :  { %v320_v46 = vsel %vm311_vm2, %v7087_v7, %v6614_v30 }
  0x84   :  { %v350_v30 = vsel %vm2941_vm3, %v2659_v35, %v320_v46  ;;  %v3009_v46 = vpack.i.bf16 %v2668_v57, %v2662_v47 }
  0x85   :  { %v3044_v24 = vmul.f32 %v2985_v9, %v350_v30 }
  0x86   :  { %2066 = vrot.lane.b32.xlu2 %v2888_v26, %s2437_s0  ;;  %2056 = vrot.lane.b32.xlu0 %v2897_v49, %s2437_s0  ;;  %v321_v26 = vsel %vm311_vm2, %v7088_v27, %v6615_v0  ;;  %v382_v0 = vld [vmem:[#allocation5 + $0x10] sm:$0xff]  ;;  %7096 = vst [vmem:[#allocation91_spill] sm:$0xff] %v3009_v46 }
  0x87   :  { %v354_v27 = vsel %vm2941_vm3, %v2648_v29, %v321_v26  ;;  %v3011_v35 = vpop.permute.xlu1 %1886  ;;  %v3015_v26 = vmul.f32 %v2957_v17, %v2518_v28  ;;  %v3019_v29 = vmul.f32 %v2945_v21, %v2545_v39  ;;  %v3029_v20 = vunpack.c.h.bf16 %v382_v0  ;;  %v7103_v21 = vld [vmem:[#allocation54_spill] sm:$0xff]  ;;  %7105 = vst [vmem:[#allocation97_spill] sm:$0xff] %v3044_v24 }
  0x88   :  { %2076 = vrot.lane.b32.xlu1 %v2903_v61, %s2437_s0  ;;  %v3033_v61 = vpack.i.bf16 %v2797_v42, %v2794_v41  ;;  %v3053_v41 = vunpack.c.l.bf16 %v382_v0  ;;  %v7107_v42 = vand.u32 15, %v2893_v33 }
  0x89   :  { %7097 = vst [vmem:[#allocation92_spill] sm:$0xff] %v3015_v26  ;;  %v3037_v26 = vpack.i.bf16 %v2739_v34, %v2732_v63  ;;  %v7108_v34 = vmov 0  ;;  %v7210_v63 = vld [vmem:[#allocation19_spill] sm:$0xff] }
  0x8a   :  { %7098 = vst [vmem:[#allocation93_spill] sm:$0xff] %v3019_v29  ;;  %v7104_v29 = vld [vmem:[#allocation57_spill] sm:$0xff]  ;;  %vm3057_vm5 = vcmp.eq.s32.totalorder %v7107_v42, 0  ;;  %v3071_v42 = vunpack.c.h.bf16 %v381_v32  ;;  %v7111_v32 = vunpack.i.h.bf16 %v2882_v13 }
  0x8b   :  { %7101 = vst [vmem:[#allocation95_spill] sm:$0xff] %v3033_v61  ;;  %v3041_v39 = vpack.i.bf16 %v7104_v29, %v7103_v21  ;;  %v7109_v34 = vsel %vm3057_vm5, 4294967295, %v7108_v34  ;;  %v3067_v21 = vpop.permute.xlu0 %1876  ;;  %v7112_v29 = vunpack.i.l.bf16 %v2882_v13 }
  0x8c   :  { %7102 = vst [vmem:[#allocation96_spill] sm:$0xff] %v3037_v26  ;;  %v6643_v30 = vunpack.i.h.bf16 %v3067_v21  ;;  %v7193_v58 = vunpack.i.l.bf16 %v3067_v21  ;;  %v7194_v47 = vunpack.i.h.bf16 %v3067_v21 }
  0x8d   :  { %7110 = vst [vmem:[#allocation99_spill] sm:$0xff] %v7109_v34 }
  0x8e   :  { %2081 = vrot.lane.b32.xlu2 %v2914_v56, %s2437_s0  ;;  %2071 = vrot.lane.b32.xlu0 %v2924_v18, %s2437_s0  ;;  %v383_v56 = vld [vmem:[#allocation5 + $0x18] sm:$0xff] }
  0x8f   :  { %v2987_v7 = vunpack.c.l.bf16 %v383_v56  ;;  %v3073_v0 = vunpack.c.h.bf16 %v383_v56  ;;  %v3082_v57 = vpop.permute.xlu1 %1891  ;;  %v329_v56 = vsel %vm311_vm2, %v6643_v30, %v7111_v32  ;;  %v3111_v30 = vld [vmem:[#allocation5 + $0x38] sm:$0xff] }
  0x90   :  { %2091 = vrot.lane.b32.xlu1 %v2935_v15, %s2437_s0  ;;  %v3005_v15 = vmul.f32 %v2951_v25, %v2505_v22  ;;  %v353_v32 = vsel %vm2981_vm4, %v2505_v22, %v329_v56  ;;  %7116 = vst [vmem:[#allocation101_spill] sm:$0xff] %v3111_v30 }
  0x91   :  { %v3121_v24 = vmul.f32 %v3029_v20, %v353_v32 }
  0x92   :  { %7095 = vst [vmem:[#allocation90_spill] sm:$0xff] %v3005_v15  ;;  %v3027_v15 = vunpack.c.h.bf16 %v380_v50  ;;  %v3099_v50 = vld [vmem:[#allocation5 + $0x28] sm:$0xff] }
  0x93   :  { %7113 = vst [vmem:[#allocation100_spill] sm:$0xff] %v3099_v50 }
  0x94   :  { %7120 = vst [vmem:[#allocation103_spill] sm:$0xff] %v3121_v24  ;;  %v3157_v24 = vpop.permute.xlu0 %1881 }
  0x96   :  { %2096 = vrot.lane.b32.xlu2 %v2961_v51, %s2437_s0  ;;  %v3047_v51 = vmul.f32 %v2987_v7, %v354_v27  ;;  %2086 = vrot.lane.b32.xlu0 %v3009_v46, %s2437_s0  ;;  %v6644_v27 = vunpack.i.l.bf16 %v3067_v21 }
  0x97   :  { %v1912_v10 = vpop.permute.xlu1 %1911 }
  0x98   :  { %7106 = vst [vmem:[#allocation98_spill] sm:$0xff] %v3047_v51  ;;  %v3049_v23 = vpop.permute.xlu2 %1931  ;;  %2106 = vrot.lane.b32.xlu1 %v3037_v26, %s2437_s0  ;;  %v328_v46 = vsel %vm311_vm2, %v6644_v27, %v7112_v29  ;;  %v7114_v26 = vld [vmem:[#allocation52_spill] sm:$0xff]  ;;  %v3114_v29 = vunpack.c.h.bf16 %v3099_v50  ;;  %v7118_v27 = vld [vmem:[#allocation50_spill] sm:$0xff]  ;;  %v3143_v50 = vld [vmem:[#allocation5 + $0x50] sm:$0xff] }
  0x99   :  { %v3103_v51 = vmul.f32 %v2957_v17, %v7114_v26  ;;  %v349_v13 = vsel %vm2981_vm4, %v2518_v28, %v328_v46  ;;  %v3118_v55 = vmul.f32 %v2951_v25, %v7118_v27  ;;  %v3130_v46 = vunpack.c.h.bf16 %v3111_v30  ;;  %v3141_v17 = vld [vmem:[#allocation5 + $0x40] sm:$0xff]  ;;  %7124 = vst [vmem:[#allocation107_spill] sm:$0xff] %v3143_v50 }
  0x9a   :  { %7117 = vst [vmem:[#allocation102_spill] sm:$0xff] %v3114_v29  ;;  %v3124_v54 = vmul.f32 %v3027_v15, %v349_v13  ;;  %v7125_v30 = vunpack.i.h.bf16 %v3011_v35  ;;  %v3162_v56 = vunpack.c.l.bf16 %v3141_v17 }
  0x9b   :  { %7115 = vst [vmem:[#allocation52_spill] sm:$0xff] %v3103_v51  ;;  %v3183_v51 = vmul.f32 %v3114_v29, %v2771_v60  ;;  %v7136_v29 = vunpack.i.l.bf16 %v2908_v62 }
  0x9c   :  { %7119 = vst [vmem:[#allocation50_spill] sm:$0xff] %v3118_v55  ;;  %v7126_v55 = vunpack.i.l.bf16 %v3011_v35 }
  0x9d   :  { %7121 = vst [vmem:[#allocation104_spill] sm:$0xff] %v3124_v54  ;;  %v3165_v54 = vunpack.c.l.bf16 %v3143_v50  ;;  %v7142_v50 = vunpack.i.h.bf16 %v3049_v23 }
  0x9e   :  { %2111 = vrot.lane.b32.xlu2 %v3033_v61, %s2437_s0  ;;  %7122 = vst [vmem:[#allocation105_spill] sm:$0xff] %v3130_v46  ;;  %2101 = vrot.lane.b32.xlu0 %v3041_v39, %s2437_s0  ;;  %v7138_v61 = vld [vmem:[#allocation38_spill] sm:$0xff] }
  0x9f   :  { %7123 = vst [vmem:[#allocation106_spill] sm:$0xff] %v3141_v17 }
  0xa0   :  { %v3127_v22 = vpop.permute.xlu2 %1946  ;;  %2121 = vrot.lane.b32.xlu1 %v2874_v48, %s2438_s1 }
  0xa1   :  { %v6660_v25 = vunpack.i.h.bf16 %v3127_v22  ;;  %v6661_v32 = vunpack.i.l.bf16 %v3127_v22 }
  0xa2   :  { %v1907_v5 = vpop.permute.xlu0 %1906 }
  0xa3   :  { %v341_v28 = vsel %vm311_vm2, %v6660_v25, %v7125_v30  ;;  %v340_v13 = vsel %vm311_vm2, %v6661_v32, %v7126_v55  ;;  %v7131_v55 = vmov 0 }
  0xa4   :  { %v368_v30 = vsel %vm3057_vm5, %v2484_v12, %v341_v28  ;;  %v364_v25 = vsel %vm3057_vm5, %v2491_v16, %v340_v13  ;;  %v3187_v28 = vmul.f32 %v3130_v46, %v2766_v43  ;;  %v7130_v13 = vand.u32 15, %v2929_v6 }
  0xa5   :  { %v3176_v48 = vmul.f32 %v3053_v41, %v368_v30  ;;  %v3179_v11 = vmul.f32 %v3051_v3, %v364_v25  ;;  %v7134_v30 = vunpack.i.h.bf16 %v2908_v62  ;;  %v7135_v25 = vunpack.i.h.bf16 %v3157_v24 }
  0xa6   :  { %7129 = vst [vmem:[#allocation110_spill] sm:$0xff] %v3187_v28  ;;  %vm3191_vm6 = vcmp.eq.s32.totalorder %v7130_v13, 0  ;;  %v7137_v12 = vunpack.i.l.bf16 %v3157_v24  ;;  %2126 = vrot.lane.b32.xlu2 %v2863_v31, %s2438_s1  ;;  %v1914_v13 = vunpack.i.h.bf16 %v1912_v10  ;;  %v1913_v16 = vunpack.i.l.bf16 %v1912_v10  ;;  %2116 = vrot.lane.b32.xlu0 %v2856_v19, %s2438_s1 }
  0xa7   :  { %7127 = vst [vmem:[#allocation108_spill] sm:$0xff] %v3176_v48  ;;  %v7132_v55 = vsel %vm3191_vm6, 4294967295, %v7131_v55  ;;  %v331_v32 = vsel %vm311_vm2, %v7135_v25, %v7134_v30  ;;  %v7139_v25 = vld [vmem:[#allocation39_spill] sm:$0xff]  ;;  %v7141_v10 = vunpack.i.l.bf16 %v3049_v23 }
  0xa8   :  { %7128 = vst [vmem:[#allocation109_spill] sm:$0xff] %v3179_v11  ;;  %v330_v46 = vsel %vm311_vm2, %v7137_v12, %v7136_v29  ;;  %v361_v30 = vsel %vm2981_vm4, %v7138_v61, %v331_v32  ;;  %v327_v32 = vsel %vm311_vm2, %v1914_v13, %v7142_v50  ;;  %v3233_v17 = vpop.permute.xlu2 %1961  ;;  %v7145_v61 = vld [vmem:[#allocation59_spill] sm:$0xff]  ;;  %v7146_v50 = vld [vmem:[#allocation58_spill] sm:$0xff]  ;;  %2136 = vrot.lane.b32.xlu1 %v2897_v49, %s2438_s1  ;;  %v7153_v49 = vunpack.i.h.bf16 %v3011_v35 }
  0xa9   :  { %7133 = vst [vmem:[#allocation111_spill] sm:$0xff] %v7132_v55  ;;  %v357_v28 = vsel %vm2981_vm4, %v7139_v25, %v330_v46  ;;  %v3220_v12 = vmul.f32 %v3029_v20, %v361_v30  ;;  %v326_v29 = vsel %vm311_vm2, %v1913_v16, %v7141_v10  ;;  %v7143_v46 = vunpack.i.l.bf16 %v3082_v57  ;;  %v7148_v11 = vld [vmem:[#allocation42_spill] sm:$0xff] }
  0xaa   :  { %v3223_v31 = vmul.f32 %v3027_v15, %v357_v28  ;;  %v7144_v30 = vunpack.i.h.bf16 %v3082_v57  ;;  %v374_v25 = vsel %vm2941_vm3, %v7145_v61, %v326_v29  ;;  %v378_v48 = vsel %vm2941_vm3, %v7146_v50, %v327_v32 }
  0xab   :  { %7140 = vst [vmem:[#allocation112_spill] sm:$0xff] %v3220_v12  ;;  %v334_v28 = vsel %vm311_vm2, %v7143_v46, %v1913_v16  ;;  %v7147_v16 = vld [vmem:[#allocation43_spill] sm:$0xff]  ;;  %v3271_v19 = vmul.f32 %v2987_v7, %v378_v48  ;;  %v1909_v50 = vunpack.i.h.bf16 %v1907_v5  ;;  %v7246_v34 = vunpack.i.h.bf16 %v3233_v17 }
  0xac   :  { %v335_v10 = vsel %vm311_vm2, %v7144_v30, %v1914_v13  ;;  %v373_v46 = vsel %vm2981_vm4, %v7147_v16, %v334_v28  ;;  %v3265_v30 = vmul.f32 %v2985_v9, %v374_v25  ;;  %v7190_v16 = vld [vmem:[#allocation82_spill] sm:$0xff] }
  0xad   :  { %v377_v13 = vsel %vm2981_vm4, %v7148_v11, %v335_v10  ;;  %v3262_v29 = vmul.f32 %v3027_v15, %v373_v46  ;;  %7152 = vst [vmem:[#allocation116_spill] sm:$0xff] %v3271_v19  ;;  %v1908_v46 = vunpack.i.l.bf16 %v1907_v5  ;;  %v1927_v11 = vpop.permute.xlu1 %1926  ;;  %v333_v28 = vsel %vm311_vm2, %v7153_v49, %v1909_v50 }
  0xae   :  { %7150 = vst [vmem:[#allocation114_spill] sm:$0xff] %v3265_v30  ;;  %v3268_v32 = vmul.f32 %v3029_v20, %v377_v13  ;;  %v7154_v5 = vunpack.i.l.bf16 %v3011_v35  ;;  %2141 = vrot.lane.b32.xlu2 %v2880_v2, %s2438_s1  ;;  %v1929_v13 = vunpack.i.h.bf16 %v1927_v11  ;;  %v1928_v10 = vunpack.i.l.bf16 %v1927_v11  ;;  %2131 = vrot.lane.b32.xlu0 %v2868_v45, %s2438_s1  ;;  %v3355_v45 = vld [vmem:[#allocation5 + $0x48] sm:$0xff] }
  0xaf   :  { %7149 = vst [vmem:[#allocation113_spill] sm:$0xff] %v3262_v29  ;;  %v369_v61 = vsel %vm2981_vm4, %v7118_v27, %v333_v28  ;;  %v7156_v11 = vunpack.i.h.bf16 %v3127_v22  ;;  %v7192_v59 = vunpack.i.l.bf16 %v7190_v16 }
  0xb0   :  { %7151 = vst [vmem:[#allocation115_spill] sm:$0xff] %v3268_v32  ;;  %v332_v25 = vsel %vm311_vm2, %v7154_v5, %v1908_v46  ;;  %v3302_v49 = vmul.f32 %v3029_v20, %v369_v61  ;;  %v7155_v5 = vunpack.i.l.bf16 %v3127_v22  ;;  %v3315_v19 = vpop.permute.xlu2 %1976  ;;  %v324_v20 = vsel %vm311_vm2, %v1908_v46, %v1928_v10  ;;  %v7159_v46 = vld [vmem:[#allocation55_spill] sm:$0xff]  ;;  %2151 = vrot.lane.b32.xlu1 %v2924_v18, %s2438_s1  ;;  %v7188_v32 = vld [vmem:[#allocation57_spill] sm:$0xff] }
  0xb1   :  { %v365_v48 = vsel %vm2981_vm4, %v7114_v26, %v332_v25  ;;  %v317_v28 = vsel %vm311_vm2, %v1929_v13, %v7156_v11  ;;  %7157 = vst [vmem:[#allocation117_spill] sm:$0xff] %v3315_v19 }
  0xb2   :  { %v3305_v35 = vmul.f32 %v3027_v15, %v365_v48  ;;  %v316_v2 = vsel %vm311_vm2, %v1928_v10, %v7155_v5  ;;  %v325_v15 = vsel %vm311_vm2, %v1909_v50, %v1929_v13  ;;  %v371_v22 = vsel %vm3191_vm6, %v2784_v14, %v317_v28  ;;  %v7158_v48 = vld [vmem:[#allocation56_spill] sm:$0xff]  ;;  %v1922_v28 = vpop.permute.xlu0 %1921 }
  0xb3   :  { %v367_v61 = vsel %vm3191_vm6, %v2789_v8, %v316_v2  ;;  %v366_v10 = vsel %vm2941_vm3, %v7158_v48, %v324_v20  ;;  %v370_v50 = vsel %vm2941_vm3, %v7159_v46, %v325_v15  ;;  %v3349_v11 = vmul.f32 %v3073_v0, %v371_v22  ;;  %v7184_v8 = vld [vmem:[#allocation91_spill] sm:$0xff]  ;;  %v7186_v22 = vld [vmem:[#allocation54_spill] sm:$0xff] }
  0xb4   :  { %v3340_v13 = vmul.f32 %v2985_v9, %v366_v10  ;;  %v3343_v5 = vmul.f32 %v3071_v42, %v367_v61  ;;  %v3346_v2 = vmul.f32 %v2987_v7, %v370_v50  ;;  %v1924_v25 = vunpack.i.h.bf16 %v1922_v28 }
  0xb5   :  { %7163 = vst [vmem:[#allocation121_spill] sm:$0xff] %v3349_v11  ;;  %v1923_v10 = vunpack.i.l.bf16 %v1922_v28  ;;  %v1942_v46 = vpop.permute.xlu1 %1941  ;;  %v7166_v20 = vunpack.i.h.bf16 %v2908_v62  ;;  %v7167_v15 = vunpack.i.l.bf16 %v2908_v62 }
  0xb6   :  { %7160 = vst [vmem:[#allocation118_spill] sm:$0xff] %v3340_v13  ;;  %v7168_v13 = vld [vmem:[#allocation75_spill] sm:$0xff]  ;;  %v1944_v50 = vunpack.i.h.bf16 %v1942_v46 }
  0xb7   :  { %7161 = vst [vmem:[#allocation119_spill] sm:$0xff] %v3343_v5  ;;  %v323_v28 = vsel %vm311_vm2, %v7166_v20, %v1924_v25  ;;  %v322_v61 = vsel %vm311_vm2, %v7167_v15, %v1923_v10  ;;  %2156 = vrot.lane.b32.xlu2 %v7168_v13, %s2438_s1  ;;  %v1943_v5 = vunpack.i.l.bf16 %v1942_v46  ;;  %v3382_v20 = vunpack.c.h.bf16 %v3355_v45 }
  0xb8   :  { %7162 = vst [vmem:[#allocation120_spill] sm:$0xff] %v3346_v2  ;;  %v362_v18 = vsel %vm2941_vm3, %v7169_v40, %v323_v28  ;;  %v7170_v2 = vld [vmem:[#allocation65_spill] sm:$0xff]  ;;  %v315_v15 = vsel %vm311_vm2, %v1924_v25, %v1944_v50  ;;  %v3395_v28 = vpop.permute.xlu2 %1991  ;;  %2166 = vrot.lane.b32.xlu1 %v7184_v8, %s2438_s1  ;;  %v7191_v8 = vunpack.i.h.bf16 %v7190_v16 }
  0xb9   :  { %v358_v11 = vsel %vm2941_vm3, %v7170_v2, %v322_v61  ;;  %v3386_v62 = vmul.f32 %v2987_v7, %v362_v18  ;;  %v314_v46 = vsel %vm311_vm2, %v1923_v10, %v1943_v5  ;;  %v7173_v61 = vand.u32 15, %v2893_v33  ;;  %v7177_v7 = vld [vmem:[#allocation74_spill] sm:$0xff] }
  0xba   :  { %v3389_v13 = vmul.f32 %v2985_v9, %v358_v11  ;;  %2146 = vrot.lane.b32.xlu0 %v7177_v7, %s2438_s1  ;;  %v7178_v9 = vunpack.i.l.bf16 %v3157_v24  ;;  %v7179_v10 = vunpack.i.h.bf16 %v3157_v24  ;;  %v359_v18 = vsel %vm3191_vm6, %v2771_v60, %v314_v46  ;;  %v1937_v48 = vpop.permute.xlu0 %1936  ;;  %v7208_v7 = vld [vmem:[#allocation18_spill] sm:$0xff] }
  0xbb   :  { %7171 = vst [vmem:[#allocation75_spill] sm:$0xff] %v3386_v62  ;;  %vm3399_vm8 = vcmp.eq.s32.totalorder %v7173_v61, 15  ;;  %v363_v61 = vsel %vm3191_vm6, %v2766_v43, %v315_v15  ;;  %v1939_v30 = vunpack.i.h.bf16 %v1937_v48  ;;  %v7240_v55 = vunpack.i.h.bf16 %v3395_v28 }
  0xbc   :  { %7172 = vst [vmem:[#allocation64_spill] sm:$0xff] %v3389_v13  ;;  %v7175_v1 = vsel %vm3399_vm8, 4294967295, %v7174_v1  ;;  %v338_v11 = vsel %vm311_vm2, %v1943_v5, %v7178_v9  ;;  %v339_v25 = vsel %vm311_vm2, %v1944_v50, %v7179_v10  ;;  %v7182_v5 = vld [vmem:[#allocation41_spill] sm:$0xff]  ;;  %v7183_v9 = vld [vmem:[#allocation40_spill] sm:$0xff]  ;;  %v403_v10 = vmul.f32 %v3071_v42, %v359_v18 }
  0xbd   :  { %7176 = vst [vmem:[#allocation65_spill] sm:$0xff] %v7175_v1  ;;  %v356_v24 = vsel %vm3057_vm5, %v7182_v5, %v338_v11  ;;  %v360_v50 = vsel %vm3057_vm5, %v7183_v9, %v339_v25  ;;  %v407_v14 = vmul.f32 %v3073_v0, %v363_v61  ;;  %v1938_v25 = vunpack.i.l.bf16 %v1937_v48  ;;  %v3447_v29 = vpop.permute.xlu1 %1956 }
  0xbe   :  { %v3430_v46 = vmul.f32 %v3051_v3, %v356_v24  ;;  %v3434_v15 = vmul.f32 %v3053_v41, %v360_v50  ;;  %v7185_v24 = vld [vmem:[#allocation32_spill] sm:$0xff]  ;;  %v435_v18 = vsub.f32 %v7186_v22, %v403_v10  ;;  %v7187_v50 = vld [vmem:[#allocation33_spill] sm:$0xff]  ;;  %7189 = vst [vmem:[#allocation74_spill] sm:$0xff] %v3447_v29  ;;  %v313_v11 = vsel %vm311_vm2, %v7191_v8, %v1939_v30  ;;  %v7196_v22 = vld [vmem:[#allocation70_spill] sm:$0xff] }
  0xbf   :  { %v439_v61 = vsub.f32 %v7188_v32, %v407_v14  ;;  %v312_v48 = vsel %vm311_vm2, %v7192_v59, %v1938_v25  ;;  %v336_v10 = vsel %vm311_vm2, %v1938_v25, %v7193_v58  ;;  %v337_v14 = vsel %vm311_vm2, %v1939_v30, %v7194_v47  ;;  %v7195_v32 = vld [vmem:[#allocation79_spill] sm:$0xff]  ;;  %v7197_v8 = vld [vmem:[#allocation28_spill] sm:$0xff] }
  0xc0   :  { %2171 = vrot.lane.b32.xlu2 %v7195_v32, %s2438_s1  ;;  %v355_v16 = vsel %vm3191_vm6, %v7196_v22, %v313_v11  ;;  %v348_v59 = vsel %vm3057_vm5, %v7197_v8, %v336_v10  ;;  %v351_v58 = vsel %vm3191_vm6, %v7198_v53, %v312_v48  ;;  %v7199_v25 = vld [vmem:[#allocation24_spill] sm:$0xff]  ;;  %v3487_v22 = vpop.permute.xlu2 %2006  ;;  %v3489_v10 = vld [vmem:[#allocation5 + $0x58] sm:$0xff]  ;;  %v7202_v48 = vld [vmem:[#allocation77_spill] sm:$0xff]  ;;  %v7214_v12 = vunpack.i.l.bf16 %v3447_v29  ;;  %2181 = vrot.lane.b32.xlu1 %v3041_v39, %s2438_s1 }
  0xc1   :  { %v352_v21 = vsel %vm3057_vm5, %v7199_v25, %v337_v14  ;;  %v3480_v47 = vmul.f32 %v3073_v0, %v355_v16  ;;  %v392_v30 = vmul.f32 %v3051_v3, %v348_v59  ;;  %v3484_v32 = vmul.f32 %v3071_v42, %v351_v58 }
  0xc2   :  { %v396_v11 = vmul.f32 %v3053_v41, %v352_v21  ;;  %2161 = vrot.lane.b32.xlu0 %v7202_v48, %s2438_s1  ;;  %v7203_v58 = vand.u32 15, %v2929_v6  ;;  %v7211_v16 = vunpack.i.h.bf16 %v3315_v19  ;;  %v7212_v59 = vunpack.i.h.bf16 %v3447_v29  ;;  %v7218_v29 = vld [vmem:[#allocation94_spill] sm:$0xff] }
  0xc3   :  { %7200 = vst [vmem:[#allocation41_spill] sm:$0xff] %v3480_v47  ;;  %v424_v13 = vsub.f32 %v7208_v7, %v392_v30  ;;  %v1952_v30 = vpop.permute.xlu0 %1951  ;;  %v3527_v53 = vsub.f32 %v435_v18, %v3183_v51 }
  0xc4   :  { %7201 = vst [vmem:[#allocation40_spill] sm:$0xff] %v3484_v32  ;;  %vm3499_vm9 = vcmp.eq.s32.totalorder %v7203_v58, 15  ;;  %v428_v14 = vsub.f32 %v7210_v63, %v396_v11  ;;  %v615_v6 = vsel %vm597_vm7, %v7212_v59, %v7211_v16  ;;  %v7213_v58 = vunpack.i.l.bf16 %v3315_v19  ;;  %v7216_v59 = vld [vmem:[#allocation93_spill] sm:$0xff] }
  0xc5   :  { %v7205_v52 = vsel %vm3499_vm9, 4294967295, %v7204_v52  ;;  %v3524_v11 = vunpack.c.h.bf16 %v3489_v10  ;;  %7215 = vst [vmem:[#allocation82_spill] sm:$0xff] %v3527_v53  ;;  %v638_v16 = vsel %vm3399_vm8, %v7199_v25, %v615_v6  ;;  %v3533_v47 = vsub.f32 %v424_v13, %v7216_v59  ;;  %v3547_v32 = vpop.permute.xlu1 %1971  ;;  %v7222_v13 = vld [vmem:[#allocation96_spill] sm:$0xff]  ;;  %v7223_v25 = vld [vmem:[#allocation110_spill] sm:$0xff]  ;;  %v7226_v6 = vld [vmem:[#allocation81_spill] sm:$0xff] }
  0xc6   :  { %7206 = vst [vmem:[#allocation91_spill] sm:$0xff] %v7205_v52  ;;  %v614_v62 = vsel %vm597_vm7, %v7214_v12, %v7213_v58  ;;  %v3536_v21 = vsub.f32 %v428_v14, %v7218_v29  ;;  %v3542_v12 = vmul.f32 %v3165_v54, %v638_v16  ;;  %v1954_v18 = vunpack.i.h.bf16 %v1952_v30  ;;  %v7225_v14 = vld [vmem:[#allocation31_spill] sm:$0xff] }
  0xc7   :  { %7217 = vst [vmem:[#allocation79_spill] sm:$0xff] %v3533_v47  ;;  %v634_v39 = vsel %vm3399_vm8, %v7197_v8, %v614_v62  ;;  %v1953_v58 = vunpack.i.l.bf16 %v1952_v30  ;;  %v3552_v29 = vsub.f32 %v439_v61, %v7223_v25  ;;  %v493_v59 = vmul.f32 %v7226_v6, %v7225_v14  ;;  %v7227_v62 = vld [vmem:[#allocation29_spill] sm:$0xff]  ;;  %v7228_v8 = vld [vmem:[#allocation83_spill] sm:$0xff] }
  0xc8   :  { %7219 = vst [vmem:[#allocation28_spill] sm:$0xff] %v3536_v21  ;;  %v3545_v51 = vmul.f32 %v3162_v56, %v634_v39  ;;  %2186 = vrot.lane.b32.xlu2 %v7222_v13, %s2438_s1  ;;  %v497_v16 = vmul.f32 %v7228_v8, %v7227_v62  ;;  %v7229_v19 = vunpack.i.h.bf16 %v3049_v23  ;;  %v7230_v13 = vunpack.i.h.bf16 %v3082_v57  ;;  %v7232_v39 = vld [vmem:[#allocation72_spill] sm:$0xff]  ;;  %v7264_v53 = vld [vmem:[#allocation95_spill] sm:$0xff] }
  0xc9   :  { %7220 = vst [vmem:[#allocation24_spill] sm:$0xff] %v3542_v12  ;;  %v7233_v12 = vunpack.i.l.bf16 %v3049_v23  ;;  %v7234_v21 = vunpack.i.l.bf16 %v3082_v57  ;;  %v7236_v23 = vld [vmem:[#allocation73_spill] sm:$0xff]  ;;  %v7237_v57 = vld [vmem:[#allocation86_spill] sm:$0xff] }
  0xca   :  { %7221 = vst [vmem:[#allocation77_spill] sm:$0xff] %v3545_v51  ;;  %v319_v61 = vsel %vm311_vm2, %v7229_v19, %v1954_v18  ;;  %v343_v25 = vsel %vm311_vm2, %v1954_v18, %v7230_v13  ;;  %v3586_v13 = vpop.permute.xlu2 %2021  ;;  %2176 = vrot.lane.b32.xlu0 %v7237_v57, %s2438_s1 }
  0xcb   :  { %7224 = vst [vmem:[#allocation93_spill] sm:$0xff] %v3552_v29  ;;  %v376_v48 = vsel %vm3057_vm5, %v7227_v62, %v343_v25  ;;  %v379_v30 = vsel %vm3191_vm6, %v7232_v39, %v319_v61  ;;  %v318_v19 = vsel %vm311_vm2, %v7233_v12, %v1953_v58  ;;  %v342_v18 = vsel %vm311_vm2, %v1953_v58, %v7234_v21 }
  0xcc   :  { %v420_v51 = vmul.f32 %v3053_v41, %v376_v48  ;;  %v3590_v25 = vmul.f32 %v3073_v0, %v379_v30  ;;  %v372_v61 = vsel %vm3057_vm5, %v7225_v14, %v342_v18  ;;  %v375_v12 = vsel %vm3191_vm6, %v7236_v23, %v318_v19  ;;  %v7238_v48 = vld [vmem:[#allocation22_spill] sm:$0xff] }
  0xcd   :  { %v416_v21 = vmul.f32 %v3051_v3, %v372_v61  ;;  %v3602_v58 = vmul.f32 %v3071_v42, %v375_v12  ;;  %v7241_v19 = vunpack.i.h.bf16 %v3547_v32  ;;  %v7242_v42 = vld [vmem:[#allocation21_spill] sm:$0xff]  ;;  %v7243_v12 = vld [vmem:[#allocation68_spill] sm:$0xff]  ;;  %v7244_v0 = vunpack.i.l.bf16 %v3233_v17  ;;  %v7249_v3 = vld [vmem:[#allocation78_spill] sm:$0xff] }
  0xce   :  { %7235 = vst [vmem:[#allocation94_spill] sm:$0xff] %v3590_v25  ;;  %v452_v30 = vsub.f32 %v7238_v48, %v420_v51  ;;  %v7245_v51 = vunpack.i.l.bf16 %v3586_v13  ;;  %v7247_v25 = vunpack.i.h.bf16 %v3586_v13  ;;  %v7250_v18 = vand.u32 15, %v7249_v3 }
  0xcf   :  { %v621_v57 = vsel %vm597_vm7, %v7241_v19, %v7240_v55  ;;  %v448_v61 = vsub.f32 %v7242_v42, %v416_v21  ;;  %v3631_v19 = vpop.permute.xlu0 %1966  ;;  %v3670_v3 = vadd.s32 8, %v7231_v37 }
  0xd0   :  { %v624_v47 = vsel %vm597_vm7, %v7245_v51, %v7244_v0  ;;  %v625_v55 = vsel %vm597_vm7, %v7247_v25, %v7246_v34  ;;  %v662_v0 = vsel %vm3399_vm8, %v7227_v62, %v621_v57  ;;  %v3642_v51 = vsub.f32 %v452_v30, %v497_v16  ;;  %v1987_v57 = vpop.permute.xlu1 %1986 }
  0xd1   :  { %v645_v21 = vsel %vm3499_vm9, %v2771_v60, %v624_v47  ;;  %v649_v41 = vsel %vm3499_vm9, %v2766_v43, %v625_v55  ;;  %vm3646_vm11 = vcmp.eq.s32.totalorder %v7250_v18, 15  ;;  %v7251_v34 = vmov 0 }
  0xd2   :  { %7248 = vst [vmem:[#allocation96_spill] sm:$0xff] %v3642_v51  ;;  %v7252_v34 = vsel %vm3646_vm11, 4294967295, %v7251_v34  ;;  %v3651_v25 = vmul.f32 %v3382_v20, %v645_v21  ;;  %v3654_v60 = vmul.f32 %v3524_v11, %v649_v41  ;;  %v3657_v43 = vmul.f32 %v3165_v54, %v662_v0  ;;  %2191 = vrot.lane.b32.xlu0 %v7264_v53, %s2438_s1 }
  0xd3   :  { %7253 = vst [vmem:[#allocation110_spill] sm:$0xff] %v7252_v34  ;;  %v3659_v47 = vsub.f32 %v448_v61, %v493_v59  ;;  %v7258_v62 = vunpack.i.l.bf16 %v3395_v28  ;;  %v7259_v16 = vunpack.i.l.bf16 %v3547_v32  ;;  %v1234_v0 = vrot.slane %v7185_v24, 1 }
  0xd4   :  { %7254 = vst [vmem:[#allocation31_spill] sm:$0xff] %v3651_v25  ;;  %vm1296_vm12 = vcmp.eq.s32.totalorder %v3670_v3, 15  ;;  %v1230_v41 = vrot.slane %v7208_v7, 1  ;;  %v1246_v59 = vrot.slane %v7210_v63, 1 }
  0xd5   :  { %7255 = vst [vmem:[#allocation81_spill] sm:$0xff] %v3654_v60  ;;  %v620_v30 = vsel %vm597_vm7, %v7259_v16, %v7258_v62  ;;  %v1250_v62 = vrot.slane %v7187_v50, 1  ;;  %v3687_v16 = vpop.permute.xlu2 %2036  ;;  %v7265_v60 = vld [vmem:[#allocation88_spill] sm:$0xff] }
  0xd6   :  { %7256 = vst [vmem:[#allocation29_spill] sm:$0xff] %v3657_v43  ;;  %v658_v61 = vsel %vm3399_vm8, %v7225_v14, %v620_v30  ;;  %v3708_v14 = vsel %vm1262_vm10, %v1230_v41, %v1246_v59  ;;  %v1279_v30 = vsel %vm1262_vm10, %v1246_v59, %v1230_v41  ;;  %v7271_v43 = vld [vmem:[#allocation89_spill] sm:$0xff]  ;;  %v7273_v59 = vld [vmem:[#allocation108_spill] sm:$0xff] }
  0xd7   :  { %7257 = vst [vmem:[#allocation83_spill] sm:$0xff] %v3659_v47  ;;  %v3682_v21 = vmul.f32 %v3162_v56, %v658_v61  ;;  %v3696_v61 = vsel %vm1262_vm10, %v1234_v0, %v1250_v62  ;;  %v1283_v55 = vsel %vm1262_vm10, %v1250_v62, %v1234_v0  ;;  %v7266_v0 = vld [vmem:[#allocation109_spill] sm:$0xff]  ;;  %v3727_v29 = vsel %vm1296_vm12, %v7210_v63, %v1279_v30  ;;  %v7279_v30 = vld [vmem:[#allocation52_spill] sm:$0xff] }
  0xd8   :  { %7261 = vst [vmem:[#allocation72_spill] sm:$0xff] %v3696_v61  ;;  %v3704_v25 = vsel %vm1296_vm12, %v7187_v50, %v1283_v55  ;;  %v7267_v62 = vsub.f32 %v2470_v4, %v7266_v0  ;;  %v7272_v41 = vld [vmem:[#allocation13_spill] sm:$0xff]  ;;  %v7278_v0 = vld [vmem:[#allocation107_spill] sm:$0xff] }
  0xd9   :  { %7260 = vst [vmem:[#allocation11_spill] sm:$0xff] %v3682_v21  ;;  %v3722_v55 = vpack.i.bf16 %v3704_v25, %v3696_v61  ;;  %v7274_v51 = vsub.f32 %v7272_v41, %v7273_v59  ;;  %v7276_v21 = vld [vmem:[#allocation106_spill] sm:$0xff]  ;;  %v1989_v61 = vunpack.i.h.bf16 %v1987_v57  ;;  %v7283_v59 = vsub.f32 %v2557_v44, %v3302_v49 }
  0xda   :  { %7262 = vst [vmem:[#allocation73_spill] sm:$0xff] %v3704_v25  ;;  %v3718_v18 = vsub.f32 %v7267_v62, %v7265_v60  ;;  %v3736_v47 = vunpack.c.h.bf16 %v7276_v21  ;;  %v3740_v60 = vpack.i.bf16 %v3727_v29, %v3708_v14  ;;  %v3743_v62 = vunpack.c.h.bf16 %v7278_v0  ;;  %v7282_v21 = vld [vmem:[#allocation50_spill] sm:$0xff] }
  0xdb   :  { %7263 = vst [vmem:[#allocation86_spill] sm:$0xff] %v3708_v14  ;;  %v3733_v53 = vsub.f32 %v7274_v51, %v7271_v43  ;;  %v1988_v25 = vunpack.i.l.bf16 %v1987_v57  ;;  %2201 = vrot.lane.b32.xlu2 %v3722_v55, %s2437_s0  ;;  %v7280_v51 = vsub.f32 %v2538_v38, %v3305_v35  ;;  %v477_v0 = vmul.f32 %v7226_v6, %v7182_v5 }
  0xdc   :  { %7268 = vst [vmem:[#allocation78_spill] sm:$0xff] %v3718_v18  ;;  %v481_v57 = vmul.f32 %v7228_v8, %v7183_v9  ;;  %2196 = vrot.lane.b32.xlu1 %v3740_v60, %s2437_s0  ;;  %v7285_v14 = vunpack.i.h.bf16 %v3487_v22  ;;  %v7288_v8 = vunpack.i.h.bf16 %v3631_v19 }
  0xdd   :  { %7269 = vst [vmem:[#allocation95_spill] sm:$0xff] %v3722_v55  ;;  %v3751_v43 = vsub.f32 %v7280_v51, %v7279_v30  ;;  %v7286_v30 = vunpack.i.l.bf16 %v3487_v22  ;;  %v7287_v51 = vunpack.i.l.bf16 %v3631_v19  ;;  %v7289_v55 = vld [vmem:[#allocation17_spill] sm:$0xff] }
  0xde   :  { %7270 = vst [vmem:[#allocation88_spill] sm:$0xff] %v3727_v29  ;;  %v3757_v29 = vsub.f32 %v7283_v59, %v7282_v21  ;;  %v611_v35 = vsel %vm597_vm7, %v1989_v61, %v7285_v14  ;;  %v619_v21 = vsel %vm597_vm7, %v7288_v8, %v1989_v61  ;;  %v3781_v59 = vpop.permute.xlu0 %1981 }
  0xdf   :  { %7275 = vst [vmem:[#allocation109_spill] sm:$0xff] %v3733_v53  ;;  %v610_v49 = vsel %vm597_vm7, %v1988_v25, %v7286_v30  ;;  %v618_v6 = vsel %vm597_vm7, %v7287_v51, %v1988_v25  ;;  %v655_v14 = vsel %vm3646_vm11, %v7118_v27, %v611_v35  ;;  %v7290_v25 = vld [vmem:[#allocation16_spill] sm:$0xff] }
  0xe0   :  { %7277 = vst [vmem:[#allocation89_spill] sm:$0xff] %v3740_v60  ;;  %v650_v30 = vsel %vm3399_vm8, %v7289_v55, %v618_v6  ;;  %v651_v60 = vsel %vm3646_vm11, %v7114_v26, %v610_v49  ;;  %v654_v51 = vsel %vm3399_vm8, %v7290_v25, %v619_v21  ;;  %v3796_v61 = vmul.f32 %v3743_v62, %v655_v14 }
  0xe1   :  { %7281 = vst [vmem:[#allocation108_spill] sm:$0xff] %v3751_v43  ;;  %v3799_v8 = vmul.f32 %v3162_v56, %v650_v30  ;;  %v3802_v27 = vmul.f32 %v3736_v47, %v651_v60  ;;  %v3805_v35 = vmul.f32 %v3165_v54, %v654_v51  ;;  %v1984_v55 = vunpack.i.h.bf16 %v3781_v59  ;;  %v7306_v60 = vld [vmem:[#allocation14_spill] sm:$0xff]  ;;  %v7307_v30 = vld [vmem:[#allocation15_spill] sm:$0xff] }
  0xe2   :  { %7284 = vst [vmem:[#allocation106_spill] sm:$0xff] %v3757_v29  ;;  %v1983_v26 = vunpack.i.l.bf16 %v3781_v59  ;;  %v7295_v49 = vsub.f32 %v7185_v24, %v3430_v46  ;;  %v7297_v21 = vsub.f32 %v7187_v50, %v3434_v15  ;;  %v7299_v46 = vld [vmem:[#allocation76_spill] sm:$0xff]  ;;  %v7301_v51 = vmov 0 }
  0xe3   :  { %7291 = vst [vmem:[#allocation107_spill] sm:$0xff] %v3796_v61  ;;  %v7304_v15 = vunpack.i.h.bf16 %v3233_v17  ;;  %v1231_v25 = vrot.slane %v7306_v60, 1  ;;  %v1247_v59 = vrot.slane %v7307_v30, 1  ;;  %v1242_v50 = vrot.slane %v7242_v42, 1  ;;  %v7333_v42 = vld [vmem:[#allocation51_spill] sm:$0xff]  ;;  %v7385_v61 = vld [vmem:[#allocation37_spill] sm:$0xff] }
  0xe4   :  { %7292 = vst [vmem:[#allocation52_spill] sm:$0xff] %v3799_v8  ;;  %v3812_v6 = vsub.f32 %v7295_v49, %v477_v0  ;;  %v3817_v14 = vsub.f32 %v7297_v21, %v481_v57  ;;  %v7300_v0 = vand.u32 15, %v7299_v46  ;;  %v7305_v49 = vunpack.i.l.bf16 %v3233_v17 }
  0xe5   :  { %7293 = vst [vmem:[#allocation50_spill] sm:$0xff] %v3802_v27  ;;  %v617_v57 = vsel %vm597_vm7, %v7304_v15, %v1984_v55  ;;  %v1258_v15 = vrot.slane %v7238_v48, 1  ;;  %v3859_v24 = vsel %vm1262_vm10, %v1231_v25, %v1247_v59  ;;  %v7338_v27 = vld [vmem:[#allocation75_spill] sm:$0xff] }
  0xe6   :  { %7294 = vst [vmem:[#allocation17_spill] sm:$0xff] %v3805_v35  ;;  %vm3829_vm13 = vcmp.eq.s32.totalorder %v7300_v0, 15  ;;  %v616_v21 = vsel %vm597_vm7, %v7305_v49, %v1983_v26  ;;  %v646_v46 = vsel %vm3399_vm8, %v7183_v9, %v617_v57  ;;  %v1280_v9 = vsel %vm1262_vm10, %v1247_v59, %v1231_v25 }
  0xe7   :  { %7296 = vst [vmem:[#allocation16_spill] sm:$0xff] %v3812_v6  ;;  %v7302_v51 = vsel %vm3829_vm13, 4294967295, %v7301_v51  ;;  %v642_v0 = vsel %vm3399_vm8, %v7182_v5, %v616_v21  ;;  %v3852_v17 = vmul.f32 %v3165_v54, %v646_v46  ;;  %v3866_v5 = vsel %vm1296_vm12, %v7307_v30, %v1280_v9  ;;  %v2002_v21 = vpop.permute.xlu1 %2001 }
  0xe8   :  { %7298 = vst [vmem:[#allocation122_spill] sm:$0xff] %v3817_v14  ;;  %v3855_v49 = vmul.f32 %v3162_v56, %v642_v0  ;;  %v3870_v57 = vsel %vm1262_vm10, %v1242_v50, %v1258_v15  ;;  %v1291_v54 = vsel %vm1262_vm10, %v1258_v15, %v1242_v50  ;;  %v1238_v56 = vrot.slane %v2470_v4, 1  ;;  %v3888_v0 = vpop.permute.xlu2 %2051  ;;  %v7320_v14 = vld [vmem:[#allocation85_spill] sm:$0xff]  ;;  %v7328_v4 = vld [vmem:[#allocation26_spill] sm:$0xff] }
  0xe9   :  { %7303 = vst [vmem:[#allocation76_spill] sm:$0xff] %v7302_v51  ;;  %v3881_v59 = vpack.i.bf16 %v3866_v5, %v3859_v24  ;;  %v3886_v46 = vsel %vm1296_vm12, %v7238_v48, %v1291_v54  ;;  %v1254_v15 = vrot.slane %v7272_v41, 1  ;;  %v7318_v54 = vld [vmem:[#allocation101_spill] sm:$0xff]  ;;  %v3918_v25 = vunpack.c.l.bf16 %v3355_v45 }
  0xea   :  { %7308 = vst [vmem:[#allocation123_spill] sm:$0xff] %v3852_v17  ;;  %v3892_v50 = vpack.i.bf16 %v3886_v46, %v3870_v57  ;;  %v3903_v1 = vunpack.c.l.bf16 %v7318_v54  ;;  %v7319_v17 = vld [vmem:[#allocation39_spill] sm:$0xff]  ;;  %v3921_v54 = vunpack.c.l.bf16 %v3489_v10  ;;  %v2004_v53 = vunpack.i.h.bf16 %v2002_v21 }
  0xeb   :  { %7309 = vst [vmem:[#allocation124_spill] sm:$0xff] %v3855_v49  ;;  %2216 = vrot.lane.b32.xlu2 %v3881_v59, %s2437_s0  ;;  %v7322_v49 = vld [vmem:[#allocation84_spill] sm:$0xff]  ;;  %v3913_v9 = vsel %vm1262_vm10, %v1238_v56, %v1254_v15  ;;  %v2003_v45 = vunpack.i.l.bf16 %v2002_v21  ;;  %v7326_v10 = vsub.f32 %v2534_v36, %v3223_v31  ;;  %v7337_v21 = vld [vmem:[#allocation53_spill] sm:$0xff] }
  0xec   :  { %7310 = vst [vmem:[#allocation125_spill] sm:$0xff] %v3859_v24  ;;  %v7317_v24 = vld [vmem:[#allocation100_spill] sm:$0xff]  ;;  %2211 = vrot.lane.b32.xlu1 %v3892_v50, %s2437_s0  ;;  %v483_v35 = vmul.f32 %v3903_v1, %v7169_v40  ;;  %v7339_v31 = vsub.f32 %v7337_v21, %v7338_v27 }
  0xed   :  { %7311 = vst [vmem:[#allocation126_spill] sm:$0xff] %v3866_v5  ;;  %v3900_v5 = vunpack.c.l.bf16 %v7317_v24  ;;  %v1287_v24 = vsel %vm1262_vm10, %v1254_v15, %v1238_v56  ;;  %v608_v27 = vsel %vm597_vm7, %v1983_v26, %v2003_v45 }
  0xee   :  { %7312 = vst [vmem:[#allocation127_spill] sm:$0xff] %v3870_v57  ;;  %v7321_v57 = vld [vmem:[#allocation38_spill] sm:$0xff]  ;;  %v3926_v8 = vsel %vm1296_vm12, %v7272_v41, %v1287_v24  ;;  %v7329_v24 = vld [vmem:[#allocation112_spill] sm:$0xff] }
  0xef   :  { %7313 = vst [vmem:[#allocation128_spill] sm:$0xff] %v3881_v59  ;;  %v482_v6 = vmul.f32 %v7322_v49, %v7321_v57  ;;  %v479_v18 = vmul.f32 %v3900_v5, %v7170_v2  ;;  %v3934_v56 = vpack.i.bf16 %v3926_v8, %v3913_v9  ;;  %v7330_v41 = vsub.f32 %v7328_v4, %v7329_v24 }
  0xf0   :  { %7314 = vst [vmem:[#allocation129_spill] sm:$0xff] %v3886_v46  ;;  %v478_v46 = vmul.f32 %v7320_v14, %v7319_v17 }
  0xf1   :  { %7315 = vst [vmem:[#allocation130_spill] sm:$0xff] %v3888_v0  ;;  %v3944_v59 = vsub.f32 %v7330_v41, %v482_v6  ;;  %v7334_v0 = vld [vmem:[#allocation64_spill] sm:$0xff]  ;;  %v3962_v41 = vpop.permute.xlu0 %1996  ;;  %2206 = vrot.lane.b32.xlu0 %v3934_v56, %s2437_s0 }
  0xf2   :  { %7316 = vst [vmem:[#allocation131_spill] sm:$0xff] %v3892_v50  ;;  %v3939_v15 = vsub.f32 %v7326_v10, %v478_v46  ;;  %v7332_v50 = vunpack.i.h.bf16 %v3586_v13  ;;  %v3958_v46 = vsub.f32 %v7339_v31, %v483_v35  ;;  %v609_v10 = vsel %vm597_vm7, %v1984_v55, %v2004_v53 }
  0xf3   :  { %7323 = vst [vmem:[#allocation100_spill] sm:$0xff] %v3913_v9  ;;  %v643_v55 = vsel %vm3646_vm11, %v7319_v17, %v608_v27  ;;  %v7359_v17 = vld [vmem:[#allocation34_spill] sm:$0xff]  ;;  %v7360_v27 = vld [vmem:[#allocation35_spill] sm:$0xff] }
  0xf4   :  { %7324 = vst [vmem:[#allocation101_spill] sm:$0xff] %v3926_v8  ;;  %v601_v48 = vsel %vm597_vm7, %v2004_v53, %v7332_v50  ;;  %v7335_v8 = vsub.f32 %v7333_v42, %v7334_v0  ;;  %v647_v53 = vsel %vm3646_vm11, %v7321_v57, %v609_v10  ;;  %v1999_v57 = vunpack.i.h.bf16 %v3962_v41  ;;  %v7350_v10 = vld [vmem:[#allocation90_spill] sm:$0xff] }
  0xf5   :  { %7325 = vst [vmem:[#allocation39_spill] sm:$0xff] %v3934_v56  ;;  %v648_v6 = vsel %vm3829_vm13, %v7169_v40, %v601_v48  ;;  %v3991_v48 = vmul.f32 %v3736_v47, %v643_v55  ;;  %v1998_v0 = vunpack.i.l.bf16 %v3962_v41  ;;  %v1243_v50 = vrot.slane %v7359_v17, 1 }
  0xf6   :  { %7327 = vst [vmem:[#allocation85_spill] sm:$0xff] %v3939_v15  ;;  %v3953_v9 = vsub.f32 %v7335_v8, %v479_v18  ;;  %v7341_v18 = vunpack.i.l.bf16 %v3586_v13  ;;  %v3979_v35 = vmul.f32 %v3921_v54, %v648_v6  ;;  %v3988_v13 = vmul.f32 %v3743_v62, %v647_v53  ;;  %v7351_v6 = vld [vmem:[#allocation103_spill] sm:$0xff]  ;;  %v7354_v53 = vld [vmem:[#allocation117_spill] sm:$0xff] }
  0xf7   :  { %7331 = vst [vmem:[#allocation38_spill] sm:$0xff] %v3944_v59  ;;  %v7355_v55 = vunpack.i.h.bf16 %v7354_v53  ;;  %v1259_v41 = vrot.slane %v7360_v27, 1 }
  0xf8   :  { %7336 = vst [vmem:[#allocation84_spill] sm:$0xff] %v3953_v9  ;;  %v600_v8 = vsel %vm597_vm7, %v2003_v45, %v7341_v18  ;;  %v7347_v45 = vld [vmem:[#allocation104_spill] sm:$0xff]  ;;  %v7352_v18 = vsub.f32 %v7307_v30, %v7351_v6  ;;  %v7358_v6 = vld [vmem:[#allocation23_spill] sm:$0xff]  ;;  %v7376_v30 = vld [vmem:[#allocation70_spill] sm:$0xff] }
  0xf9   :  { %7340 = vst [vmem:[#allocation112_spill] sm:$0xff] %v3958_v46  ;;  %v644_v40 = vsel %vm3829_vm13, %v7170_v2, %v600_v8  ;;  %v7346_v2 = vld [vmem:[#allocation92_spill] sm:$0xff]  ;;  %v7348_v24 = vsub.f32 %v7306_v60, %v7347_v45  ;;  %v7381_v9 = vld [vmem:[#allocation62_spill] sm:$0xff] }
  0xfa   :  { %7342 = vst [vmem:[#allocation64_spill] sm:$0xff] %v3979_v35  ;;  %v3994_v26 = vmul.f32 %v3918_v25, %v644_v40  ;;  %v4012_v8 = vsub.f32 %v7352_v18, %v7350_v10  ;;  %v607_v40 = vsel %vm597_vm7, %v7355_v55, %v1999_v57  ;;  %v1239_v55 = vrot.slane %v2538_v38, 1  ;;  %v7377_v35 = vld [vmem:[#allocation105_spill] sm:$0xff] }
  0xfb   :  { %7343 = vst [vmem:[#allocation75_spill] sm:$0xff] %v3988_v13  ;;  %v4006_v31 = vsub.f32 %v7348_v24, %v7346_v2  ;;  %v7356_v2 = vunpack.i.l.bf16 %v7354_v53  ;;  %v7357_v24 = vld [vmem:[#allocation20_spill] sm:$0xff] }
  0xfc   :  { %7344 = vst [vmem:[#allocation132_spill] sm:$0xff] %v3991_v48  ;;  %v639_v10 = vsel %vm3646_vm11, %v7357_v24, %v607_v40  ;;  %v4044_v40 = vsel %vm1262_vm10, %v1243_v50, %v1259_v41  ;;  %v1235_v24 = vrot.slane %v2534_v36, 1  ;;  %v7382_v48 = vld [vmem:[#allocation40_spill] sm:$0xff]  ;;  %v7384_v36 = vld [vmem:[#allocation43_spill] sm:$0xff] }
  0xfd   :  { %7345 = vst [vmem:[#allocation133_spill] sm:$0xff] %v3994_v26  ;;  %v606_v45 = vsel %vm597_vm7, %v7356_v2, %v1998_v0  ;;  %v4035_v56 = vmul.f32 %v3743_v62, %v639_v10  ;;  %v1255_v2 = vrot.slane %v2557_v44, 1  ;;  %v7383_v15 = vsub.f32 %v7381_v9, %v7382_v48 }
  0xfe   :  { %7349 = vst [vmem:[#allocation92_spill] sm:$0xff] %v4006_v31  ;;  %v635_v18 = vsel %vm3646_vm11, %v7358_v6, %v606_v45  ;;  %v1292_v45 = vsel %vm1262_vm10, %v1259_v41, %v1243_v50  ;;  %v1251_v6 = vrot.slane %v7328_v4, 1  ;;  %v494_v43 = vmul.f32 %v7320_v14, %v7384_v36 }
  0xff   :  { %7353 = vst [vmem:[#allocation104_spill] sm:$0xff] %v4012_v8  ;;  %v4038_v53 = vmul.f32 %v3736_v47, %v635_v18  ;;  %v4057_v60 = vsel %vm1296_vm12, %v7360_v27, %v1292_v45  ;;  %v4061_v13 = vsel %vm1262_vm10, %v1239_v55, %v1255_v2  ;;  %v1288_v41 = vsel %vm1262_vm10, %v1255_v2, %v1239_v55  ;;  %v4075_v45 = vpop.permute.xlu2 %2066  ;;  %v7374_v55 = vld [vmem:[#allocation102_spill] sm:$0xff]  ;;  %v7375_v2 = vld [vmem:[#allocation44_spill] sm:$0xff] }
 0x100   :  { %7361 = vst [vmem:[#allocation90_spill] sm:$0xff] %v4035_v56  ;;  %v4065_v50 = vpack.i.bf16 %v4057_v60, %v4044_v40  ;;  %v4071_v10 = vsel %vm1262_vm10, %v1235_v24, %v1251_v6  ;;  %v1284_v18 = vsel %vm1262_vm10, %v1251_v6, %v1235_v24  ;;  %v4080_v31 = vsel %vm1296_vm12, %v2557_v44, %v1288_v41  ;;  %v7372_v41 = vld [vmem:[#allocation45_spill] sm:$0xff]  ;;  %v7373_v56 = vld [vmem:[#allocation71_spill] sm:$0xff] }
 0x101   :  { %7362 = vst [vmem:[#allocation103_spill] sm:$0xff] %v4038_v53  ;;  %v2017_v53 = vpop.permute.xlu1 %2016  ;;  %v4095_v24 = vpack.i.bf16 %v4080_v31, %v4061_v13  ;;  %v472_v8 = vmul.f32 %v7374_v55, %v7373_v56  ;;  %v475_v59 = vmul.f32 %v3903_v1, %v7375_v2  ;;  %v7389_v44 = vld [vmem:[#allocation41_spill] sm:$0xff] }
 0x102   :  { %7363 = vst [vmem:[#allocation117_spill] sm:$0xff] %v4044_v40  ;;  %v4085_v40 = vsel %vm1296_vm12, %v7328_v4, %v1284_v18  ;;  %2231 = vrot.lane.b32.xlu2 %v4065_v50, %s2437_s0  ;;  %v471_v18 = vmul.f32 %v3900_v5, %v7372_v41  ;;  %v2019_v46 = vunpack.i.h.bf16 %v2017_v53  ;;  %v2018_v26 = vunpack.i.l.bf16 %v2017_v53 }
 0x103   :  { %7364 = vst [vmem:[#allocation20_spill] sm:$0xff] %v4057_v60  ;;  %v4089_v60 = vpop.permute.xlu0 %2011  ;;  %v4099_v6 = vpack.i.bf16 %v4085_v40, %v4071_v10  ;;  %2226 = vrot.lane.b32.xlu1 %v4095_v24, %s2437_s0  ;;  %v4121_v4 = vsub.f32 %v7383_v15, %v472_v8  ;;  %v7392_v8 = vld [vmem:[#allocation74_spill] sm:$0xff] }
 0x104   :  { %7365 = vst [vmem:[#allocation23_spill] sm:$0xff] %v4061_v13  ;;  %v6819_v53 = vunpack.i.h.bf16 %v4089_v60  ;;  %v598_v48 = vsel %vm597_vm7, %v1998_v0, %v2018_v26  ;;  %v599_v15 = vsel %vm597_vm7, %v1999_v57, %v2019_v46  ;;  %v7393_v14 = vunpack.i.l.bf16 %v7392_v8 }
 0x105   :  { %7366 = vst [vmem:[#allocation134_spill] sm:$0xff] %v4065_v50  ;;  %v476_v50 = vmul.f32 %v7377_v35, %v7376_v30  ;;  %2221 = vrot.lane.b32.xlu0 %v4099_v6, %s2437_s0 }
 0x106   :  { %7367 = vst [vmem:[#allocation135_spill] sm:$0xff] %v4071_v10  ;;  %v7378_v10 = vld [vmem:[#allocation36_spill] sm:$0xff] }
 0x107   :  { %7368 = vst [vmem:[#allocation136_spill] sm:$0xff] %v4080_v31 }
 0x108   :  { %7369 = vst [vmem:[#allocation137_spill] sm:$0xff] %v4085_v40  ;;  %v7379_v40 = vld [vmem:[#allocation97_spill] sm:$0xff] }
 0x109   :  { %7370 = vst [vmem:[#allocation138_spill] sm:$0xff] %v4095_v24  ;;  %v7380_v13 = vsub.f32 %v7378_v10, %v7379_v40  ;;  %v7386_v24 = vld [vmem:[#allocation98_spill] sm:$0xff] }
 0x10a   :  { %7371 = vst [vmem:[#allocation139_spill] sm:$0xff] %v4099_v6  ;;  %v7387_v29 = vsub.f32 %v7385_v61, %v7386_v24  ;;  %v7388_v6 = vld [vmem:[#allocation63_spill] sm:$0xff]  ;;  %v7394_v24 = vunpack.i.h.bf16 %v7392_v8 }
 0x10b   :  { %v4116_v31 = vsub.f32 %v7380_v13, %v471_v18  ;;  %v7390_v40 = vsub.f32 %v7388_v6, %v7389_v44  ;;  %v622_v18 = vsel %vm597_vm7, %v2018_v26, %v7393_v14  ;;  %v636_v44 = vsel %vm3829_vm13, %v7372_v41, %v598_v48 }
 0x10c   :  { %v4129_v38 = vsub.f32 %v7387_v29, %v475_v59  ;;  %v623_v29 = vsel %vm597_vm7, %v2019_v46, %v7394_v24  ;;  %v640_v59 = vsel %vm3829_vm13, %v7375_v2, %v599_v15  ;;  %v637_v57 = vsel %vm3499_vm9, %v7373_v56, %v622_v18  ;;  %v7397_v2 = vld [vmem:[#allocation42_spill] sm:$0xff]  ;;  %v7398_v56 = vld [vmem:[#allocation113_spill] sm:$0xff] }
 0x10d   :  { %v4134_v13 = vsub.f32 %v7390_v40, %v476_v50  ;;  %v641_v26 = vsel %vm3499_vm9, %v7376_v30, %v623_v29  ;;  %v4161_v0 = vmul.f32 %v3918_v25, %v636_v44  ;;  %v4164_v46 = vmul.f32 %v3921_v54, %v640_v59  ;;  %v7402_v29 = vld [vmem:[#allocation115_spill] sm:$0xff] }
 0x10e   :  { %v4167_v50 = vmul.f32 %v3382_v20, %v637_v57  ;;  %v4170_v41 = vmul.f32 %v3524_v11, %v641_v26  ;;  %v498_v40 = vmul.f32 %v7322_v49, %v7397_v2  ;;  %v7399_v48 = vsub.f32 %v7359_v17, %v7398_v56  ;;  %v7427_v17 = vld [vmem:[#allocation116_spill] sm:$0xff] }
 0x10f   :  { %7391 = vst [vmem:[#allocation45_spill] sm:$0xff] %v4134_v13  ;;  %v7401_v14 = vunpack.i.h.bf16 %v3395_v28  ;;  %v2013_v49 = vunpack.i.l.bf16 %v4089_v60  ;;  %v7403_v44 = vsub.f32 %v7360_v27, %v7402_v29  ;;  %v7406_v56 = vunpack.i.l.bf16 %v3395_v28  ;;  %v2027_v28 = vpop.permute.xlu0 %2026 }
 0x110   :  { %7395 = vst [vmem:[#allocation71_spill] sm:$0xff] %v4164_v46  ;;  %v4177_v15 = vsub.f32 %v7399_v48, %v494_v43  ;;  %v7408_v43 = vld [vmem:[#allocation47_spill] sm:$0xff]  ;;  %v1236_v29 = vrot.slane %v7333_v42, 1  ;;  %v7450_v46 = vld [vmem:[#allocation121_spill] sm:$0xff] }
 0x111   :  { %7396 = vst [vmem:[#allocation102_spill] sm:$0xff] %v4170_v41  ;;  %v613_v18 = vsel %vm597_vm7, %v7401_v14, %v6819_v53  ;;  %v4197_v59 = vsub.f32 %v7403_v44, %v498_v40  ;;  %v612_v48 = vsel %vm597_vm7, %v7406_v56, %v2013_v49  ;;  %v7407_v14 = vld [vmem:[#allocation46_spill] sm:$0xff]  ;;  %v1256_v24 = vrot.slane %v7408_v43, 1  ;;  %v2032_v56 = vpop.permute.xlu1 %2031 }
 0x112   :  { %7400 = vst [vmem:[#allocation44_spill] sm:$0xff] %v4177_v15  ;;  %v663_v57 = vsel %vm3646_vm11, %v7397_v2, %v613_v18  ;;  %v1240_v8 = vrot.slane %v7407_v14, 1  ;;  %v659_v40 = vsel %vm3646_vm11, %v7384_v36, %v612_v48  ;;  %v1252_v2 = vrot.slane %v7337_v21, 1  ;;  %v4217_v18 = vpop.permute.xlu2 %2081  ;;  %v7426_v15 = vld [vmem:[#allocation49_spill] sm:$0xff] }
 0x113   :  { %7404 = vst [vmem:[#allocation70_spill] sm:$0xff] %v4197_v59  ;;  %v4203_v26 = vmul.f32 %v3743_v62, %v663_v57  ;;  %v1232_v62 = vrot.slane %v7378_v10, 1  ;;  %v4222_v44 = vmul.f32 %v3736_v47, %v659_v40  ;;  %v1248_v40 = vrot.slane %v7385_v61, 1 }
 0x114   :  { %7409 = vst [vmem:[#allocation97_spill] sm:$0xff] %v4217_v18  ;;  %v4226_v57 = vsel %vm1262_vm10, %v1240_v8, %v1256_v24  ;;  %v1289_v36 = vsel %vm1262_vm10, %v1256_v24, %v1240_v8  ;;  %v4237_v30 = vsel %vm1262_vm10, %v1236_v29, %v1252_v2  ;;  %v1285_v47 = vsel %vm1262_vm10, %v1252_v2, %v1236_v29 }
 0x115   :  { %7405 = vst [vmem:[#allocation105_spill] sm:$0xff] %v4203_v26  ;;  %v4233_v48 = vsel %vm1296_vm12, %v7408_v43, %v1289_v36  ;;  %v4251_v24 = vsel %vm1296_vm12, %v7337_v21, %v1285_v47  ;;  %v4260_v2 = vsel %vm1262_vm10, %v1232_v62, %v1248_v40  ;;  %v1281_v53 = vsel %vm1262_vm10, %v1248_v40, %v1232_v62  ;;  %v7419_v36 = vld [vmem:[#allocation59_spill] sm:$0xff]  ;;  %v7423_v26 = vld [vmem:[#allocation114_spill] sm:$0xff] }
 0x116   :  { %7410 = vst [vmem:[#allocation40_spill] sm:$0xff] %v4222_v44  ;;  %v4246_v8 = vpack.i.bf16 %v4233_v48, %v4226_v57  ;;  %v4256_v29 = vpack.i.bf16 %v4251_v24, %v4237_v30  ;;  %v4270_v47 = vsel %vm1296_vm12, %v7385_v61, %v1281_v53  ;;  %v500_v53 = vmul.f32 %v7377_v35, %v7232_v39 }
 0x117   :  { %7411 = vst [vmem:[#allocation43_spill] sm:$0xff] %v4226_v57  ;;  %v4282_v62 = vpack.i.bf16 %v4270_v47, %v4260_v2  ;;  %v2034_v40 = vunpack.i.h.bf16 %v2032_v56  ;;  %v2033_v57 = vunpack.i.l.bf16 %v2032_v56  ;;  %v7428_v27 = vsub.f32 %v7426_v15, %v7427_v17  ;;  %v7432_v56 = vld [vmem:[#allocation69_spill] sm:$0xff] }
 0x118   :  { %7412 = vst [vmem:[#allocation98_spill] sm:$0xff] %v4233_v48  ;;  %2246 = vrot.lane.b32.xlu2 %v4246_v8, %s2437_s0  ;;  %v7420_v48 = vld [vmem:[#allocation58_spill] sm:$0xff]  ;;  %2241 = vrot.lane.b32.xlu1 %v4256_v29, %s2437_s0  ;;  %v7435_v17 = vunpack.i.h.bf16 %v4089_v60 }
 0x119   :  { %7413 = vst [vmem:[#allocation41_spill] sm:$0xff] %v4237_v30  ;;  %v496_v30 = vmul.f32 %v7374_v55, %v7236_v23  ;;  %v499_v34 = vmul.f32 %v3903_v1, %v7420_v48  ;;  %2236 = vrot.lane.b32.xlu0 %v4282_v62, %s2437_s0 }
 0x11a   :  { %7414 = vst [vmem:[#allocation74_spill] sm:$0xff] %v4246_v8  ;;  %v7422_v8 = vld [vmem:[#allocation48_spill] sm:$0xff] }
 0x11b   :  { %7415 = vst [vmem:[#allocation42_spill] sm:$0xff] %v4251_v24  ;;  %v495_v24 = vmul.f32 %v3900_v5, %v7419_v36  ;;  %v7424_v59 = vsub.f32 %v7422_v8, %v7423_v26  ;;  %v4294_v41 = vsub.f32 %v7428_v27, %v499_v34  ;;  %v7433_v26 = vld [vmem:[#allocation94_spill] sm:$0xff]  ;;  %v604_v34 = vsel %vm597_vm7, %v2013_v49, %v2033_v57 }
 0x11c   :  { %7416 = vst [vmem:[#allocation113_spill] sm:$0xff] %v4256_v29  ;;  %v7430_v29 = vsub.f32 %v7243_v12, %v3602_v58  ;;  %v605_v58 = vsel %vm597_vm7, %v7435_v17, %v2034_v40  ;;  %v7436_v27 = vunpack.i.l.bf16 %v3547_v32  ;;  %v7442_v17 = vld [vmem:[#allocation66_spill] sm:$0xff] }
 0x11d   :  { %7417 = vst [vmem:[#allocation115_spill] sm:$0xff] %v4260_v2  ;;  %v4289_v44 = vsub.f32 %v7424_v59, %v495_v24  ;;  %v7434_v59 = vsub.f32 %v7432_v56, %v7433_v26  ;;  %v664_v49 = vsel %vm3829_vm13, %v7420_v48, %v605_v58  ;;  %v4345_v26 = vpop.permute.xlu2 %2096  ;;  %v492_v58 = vmul.f32 %v7377_v35, %v7442_v17 }
 0x11e   :  { %7418 = vst [vmem:[#allocation46_spill] sm:$0xff] %v4270_v47  ;;  %v4299_v2 = vsub.f32 %v7430_v29, %v496_v30  ;;  %v7431_v47 = vld [vmem:[#allocation56_spill] sm:$0xff]  ;;  %v7437_v30 = vunpack.i.h.bf16 %v3547_v32 }
 0x11f   :  { %7421 = vst [vmem:[#allocation47_spill] sm:$0xff] %v4282_v62  ;;  %v487_v13 = vmul.f32 %v3900_v5, %v7431_v47  ;;  %v4308_v24 = vsub.f32 %v7434_v59, %v500_v53  ;;  %v628_v5 = vsel %vm597_vm7, %v2033_v57, %v7436_v27  ;;  %v660_v53 = vsel %vm3829_vm13, %v7419_v36, %v604_v34  ;;  %v7440_v59 = vld [vmem:[#allocation67_spill] sm:$0xff]  ;;  %v4356_v27 = vpop.permute.xlu1 %2046  ;;  %v7449_v62 = vld [vmem:[#allocation61_spill] sm:$0xff] }
 0x120   :  { %7425 = vst [vmem:[#allocation59_spill] sm:$0xff] %v4289_v44  ;;  %v629_v29 = vsel %vm597_vm7, %v2034_v40, %v7437_v30  ;;  %v661_v60 = vsel %vm3499_vm9, %v7236_v23, %v628_v5  ;;  %v4337_v32 = vmul.f32 %v3918_v25, %v660_v53  ;;  %v4343_v36 = vmul.f32 %v3921_v54, %v664_v49  ;;  %v7441_v34 = vld [vmem:[#allocation55_spill] sm:$0xff] }
 0x121   :  { %7429 = vst [vmem:[#allocation58_spill] sm:$0xff] %v4294_v41  ;;  %v665_v57 = vsel %vm3499_vm9, %v7232_v39, %v629_v29  ;;  %v4340_v40 = vmul.f32 %v3382_v20, %v661_v60  ;;  %v488_v48 = vmul.f32 %v7374_v55, %v7440_v59  ;;  %v491_v39 = vmul.f32 %v3903_v1, %v7441_v34  ;;  %v4364_v60 = vpop.permute.xlu0 %2041  ;;  %v7445_v55 = vld [vmem:[#allocation60_spill] sm:$0xff]  ;;  %v7446_v49 = vld [vmem:[#allocation119_spill] sm:$0xff] }
 0x122   :  { %7438 = vst [vmem:[#allocation114_spill] sm:$0xff] %v4337_v32  ;;  %v4348_v23 = vmul.f32 %v3524_v11, %v665_v57  ;;  %v2029_v53 = vunpack.i.h.bf16 %v2027_v28  ;;  %v7447_v35 = vsub.f32 %v7445_v55, %v7446_v49  ;;  %v7451_v5 = vsub.f32 %v7449_v62, %v7450_v46  ;;  %v7456_v49 = vld [vmem:[#allocation120_spill] sm:$0xff] }
 0x123   :  { %7439 = vst [vmem:[#allocation116_spill] sm:$0xff] %v4343_v36  ;;  %v2028_v30 = vunpack.i.l.bf16 %v2027_v28  ;;  %v7453_v44 = vunpack.i.h.bf16 %v3487_v22  ;;  %v7454_v36 = vld [vmem:[#allocation118_spill] sm:$0xff]  ;;  %v7458_v46 = vunpack.i.h.bf16 %v3631_v19 }
 0x124   :  { %7443 = vst [vmem:[#allocation56_spill] sm:$0xff] %v4356_v27  ;;  %v4371_v57 = vsub.f32 %v7447_v35, %v488_v48  ;;  %v4376_v32 = vsub.f32 %v7451_v5, %v492_v58  ;;  %v7455_v41 = vsub.f32 %v7407_v14, %v7454_v36  ;;  %v7457_v48 = vsub.f32 %v7408_v43, %v7456_v49 }
 0x125   :  { %7444 = vst [vmem:[#allocation94_spill] sm:$0xff] %v4364_v60  ;;  %v603_v29 = vsel %vm597_vm7, %v7453_v44, %v2029_v53  ;;  %v627_v28 = vsel %vm597_vm7, %v2029_v53, %v7458_v46  ;;  %v7459_v44 = vunpack.i.l.bf16 %v3487_v22  ;;  %v7465_v53 = vld [vmem:[#allocation57_spill] sm:$0xff]  ;;  %v872_v46 = vld [vmem:[#allocation5 + $0x60] sm:$0xff] }
 0x126   :  { %7448 = vst [vmem:[#allocation67_spill] sm:$0xff] %v4371_v57  ;;  %v4385_v1 = vsub.f32 %v7455_v41, %v487_v13  ;;  %v4390_v35 = vsub.f32 %v7457_v48, %v491_v39  ;;  %v656_v58 = vsel %vm3829_vm13, %v7441_v34, %v603_v29  ;;  %v7460_v41 = vunpack.i.l.bf16 %v3631_v19  ;;  %v7491_v57 = vld [vmem:[#allocation28_spill] sm:$0xff] }
 0x127   :  { %7452 = vst [vmem:[#allocation55_spill] sm:$0xff] %v4376_v32  ;;  %v602_v13 = vsel %vm597_vm7, %v7459_v44, %v2028_v30  ;;  %v657_v39 = vsel %vm3499_vm9, %v7442_v17, %v627_v28  ;;  %v4411_v5 = vmul.f32 %v3921_v54, %v656_v58  ;;  %v7464_v17 = vld [vmem:[#allocation54_spill] sm:$0xff]  ;;  %v1253_v49 = vrot.slane %v7465_v53, 1  ;;  %v874_v44 = vld [vmem:[#allocation5 + $0x70] sm:$0xff] }
 0x128   :  { %v626_v36 = vsel %vm597_vm7, %v2028_v30, %v7460_v41  ;;  %v652_v34 = vsel %vm3829_vm13, %v7431_v47, %v602_v13  ;;  %v4420_v19 = vmul.f32 %v3524_v11, %v657_v39  ;;  %v1237_v54 = vrot.slane %v7464_v17, 1 }
 0x129   :  { %v653_v22 = vsel %vm3499_vm9, %v7440_v59, %v626_v36  ;;  %v4423_v30 = vmul.f32 %v3918_v25, %v652_v34  ;;  %v1233_v59 = vrot.slane %v7381_v9, 1  ;;  %v1249_v11 = vrot.slane %v7388_v6, 1  ;;  %v4458_v34 = vpop.permute.xlu2 %2111  ;;  %v4482_v47 = vpop.permute.xlu0 %2056 }
 0x12a   :  { %7461 = vst [vmem:[#allocation66_spill] sm:$0xff] %v4420_v19  ;;  %v4426_v29 = vmul.f32 %v3382_v20, %v653_v22  ;;  %v4442_v28 = vsel %vm1262_vm10, %v1237_v54, %v1253_v49  ;;  %v1286_v58 = vsel %vm1262_vm10, %v1253_v49, %v1237_v54  ;;  %v1244_v39 = vrot.slane %v7422_v8, 1  ;;  %v4472_v20 = vpop.permute.xlu1 %2061 }
 0x12b   :  { %7462 = vst [vmem:[#allocation119_spill] sm:$0xff] %v4423_v30  ;;  %v4449_v13 = vsel %vm1296_vm12, %v7465_v53, %v1286_v58  ;;  %v4453_v41 = vsel %vm1262_vm10, %v1233_v59, %v1249_v11  ;;  %v1282_v36 = vsel %vm1262_vm10, %v1249_v11, %v1233_v59  ;;  %v1260_v49 = vrot.slane %v7426_v15, 1  ;;  %v7548_v30 = vld [vmem:[#allocation75_spill] sm:$0xff] }
 0x12c   :  { %7463 = vst [vmem:[#allocation121_spill] sm:$0xff] %v4426_v29  ;;  %v4462_v22 = vpack.i.bf16 %v4449_v13, %v4442_v28  ;;  %v4467_v54 = vsel %vm1296_vm12, %v7388_v6, %v1282_v36  ;;  %v4470_v58 = vunpack.c.l.bf16 %v872_v46  ;;  %v4478_v11 = vunpack.c.l.bf16 %v874_v44  ;;  %v7487_v29 = vld [vmem:[#allocation79_spill] sm:$0xff] }
 0x12d   :  { %7466 = vst [vmem:[#allocation118_spill] sm:$0xff] %v4442_v28  ;;  %v4476_v59 = vpack.i.bf16 %v4467_v54, %v4453_v41  ;;  %v4488_v36 = vsel %vm1262_vm10, %v1244_v39, %v1260_v49  ;;  %v1293_v28 = vsel %vm1262_vm10, %v1260_v49, %v1244_v39  ;;  %v7476_v25 = vunpack.i.l.bf16 %v3687_v16 }
 0x12e   :  { %7467 = vst [vmem:[#allocation120_spill] sm:$0xff] %v4449_v13  ;;  %2261 = vrot.lane.b32.xlu2 %v4462_v22, %s2437_s0  ;;  %v4501_v48 = vsel %vm1296_vm12, %v7426_v15, %v1293_v28  ;;  %v7477_v13 = vunpack.i.l.bf16 %v4345_v26  ;;  %v6870_v49 = vunpack.i.h.bf16 %v4356_v27 }
 0x12f   :  { %7468 = vst [vmem:[#allocation140_spill] sm:$0xff] %v4453_v41  ;;  %v4494_v41 = vunpack.c.h.bf16 %v874_v44  ;;  %2256 = vrot.lane.b32.xlu1 %v4476_v59, %s2437_s0  ;;  %v7479_v44 = vunpack.i.h.bf16 %v4345_v26  ;;  %v4518_v28 = vpack.i.bf16 %v4501_v48, %v4488_v36 }
 0x130   :  { %7469 = vst [vmem:[#allocation141_spill] sm:$0xff] %v4462_v22  ;;  %v831_v51 = vsel %vm311_vm2, %v7477_v13, %v7476_v25 }
 0x131   :  { %7470 = vst [vmem:[#allocation142_spill] sm:$0xff] %v4467_v54  ;;  %v4492_v54 = vunpack.c.h.bf16 %v872_v46  ;;  %v7478_v46 = vunpack.i.h.bf16 %v3687_v16  ;;  %v839_v22 = vsel %vm3057_vm5, %v7208_v7, %v831_v51  ;;  %2251 = vrot.lane.b32.xlu0 %v4518_v28, %s2437_s0  ;;  %v7483_v51 = vld [vmem:[#allocation30_spill] sm:$0xff] }
 0x132   :  { %7471 = vst [vmem:[#allocation143_spill] sm:$0xff] %v4470_v58  ;;  %v884_v17 = vmul.f32 %v4470_v58, %v839_v22  ;;  %v7485_v22 = vunpack.i.l.bf16 %v4075_v45  ;;  %v7501_v7 = vld [vmem:[#allocation50_spill] sm:$0xff] }
 0x133   :  { %7472 = vst [vmem:[#allocation144_spill] sm:$0xff] %v4476_v59  ;;  %v832_v39 = vsel %vm311_vm2, %v7479_v44, %v7478_v46  ;;  %v7482_v44 = vunpack.i.h.bf16 %v4075_v45  ;;  %v4562_v59 = vld [vmem:[#allocation5 + $0x68] sm:$0xff] }
 0x134   :  { %7473 = vst [vmem:[#allocation145_spill] sm:$0xff] %v4478_v11  ;;  %v843_v25 = vsel %vm3057_vm5, %v7210_v63, %v832_v39 }
 0x135   :  { %7474 = vst [vmem:[#allocation146_spill] sm:$0xff] %v4488_v36  ;;  %v888_v46 = vmul.f32 %v4478_v11, %v843_v25  ;;  %v828_v36 = vsel %vm311_vm2, %v6870_v49, %v7482_v44  ;;  %v7486_v25 = vunpack.i.l.bf16 %v4356_v27  ;;  %v7488_v44 = vld [vmem:[#allocation77_spill] sm:$0xff]  ;;  %v7547_v27 = vld [vmem:[#allocation38_spill] sm:$0xff] }
 0x136   :  { %7475 = vst [vmem:[#allocation147_spill] sm:$0xff] %v4501_v48  ;;  %v860_v13 = vsel %vm2981_vm4, %v7483_v51, %v828_v36  ;;  %v7489_v49 = vsub.f32 %v7487_v29, %v7488_v44  ;;  %v7495_v51 = vld [vmem:[#allocation27_spill] sm:$0xff]  ;;  %v1261_v29 = vrot.slane %v7432_v56, 1  ;;  %v4576_v44 = vpop.permute.xlu2 %2126 }
 0x137   :  { %7480 = vst [vmem:[#allocation148_spill] sm:$0xff] %v4518_v28  ;;  %v827_v63 = vsel %vm311_vm2, %v7486_v25, %v7485_v22  ;;  %v7492_v28 = vld [vmem:[#allocation24_spill] sm:$0xff]  ;;  %v905_v36 = vmul.f32 %v4494_v41, %v860_v13  ;;  %v1245_v25 = vrot.slane %v7243_v12, 1  ;;  %v1257_v13 = vrot.slane %v7449_v62, 1 }
 0x138   :  { %v4551_v48 = vsub.f32 %v7489_v49, %v884_v17  ;;  %v7493_v53 = vsub.f32 %v7491_v57, %v7492_v28  ;;  %v856_v32 = vsel %vm2981_vm4, %v7495_v51, %v827_v63  ;;  %v1241_v17 = vrot.slane %v7445_v55, 1  ;;  %v7496_v49 = vld [vmem:[#allocation106_spill] sm:$0xff]  ;;  %v7497_v57 = vld [vmem:[#allocation107_spill] sm:$0xff] }
 0x139   :  { %v901_v22 = vmul.f32 %v4492_v54, %v856_v32  ;;  %v6877_v63 = vunpack.i.l.bf16 %v4458_v34  ;;  %v7500_v32 = vld [vmem:[#allocation108_spill] sm:$0xff] }
 0x13a   :  { %7490 = vst [vmem:[#allocation79_spill] sm:$0xff] %v4551_v48  ;;  %v4556_v19 = vsub.f32 %v7493_v53, %v888_v46  ;;  %v7498_v53 = vsub.f32 %v7496_v49, %v7497_v57  ;;  %v7502_v51 = vsub.f32 %v7500_v32, %v7501_v7  ;;  %v7504_v48 = vld [vmem:[#allocation89_spill] sm:$0xff]  ;;  %v1294_v49 = vsel %vm1262_vm10, %v1261_v29, %v1245_v25  ;;  %v875_v57 = vld [vmem:[#allocation5 + $0x78] sm:$0xff]  ;;  %v4594_v46 = vpop.permute.xlu1 %2076  ;;  %v4613_v32 = vpop.permute.xlu0 %2071 }
 0x13b   :  { %2276 = vrot.lane.b32.xlu2 %v7504_v48, %s2438_s1  ;;  %v4599_v7 = vsel %vm1296_vm12, %v7432_v56, %v1294_v49  ;;  %v4603_v48 = vsel %vm1262_vm10, %v1241_v17, %v1257_v13 }
 0x13c   :  { %7494 = vst [vmem:[#allocation77_spill] sm:$0xff] %v4556_v19  ;;  %v4571_v28 = vsub.f32 %v7498_v53, %v905_v36  ;;  %v4581_v19 = vsub.f32 %v7502_v51, %v901_v22  ;;  %v4587_v36 = vsel %vm1262_vm10, %v1245_v25, %v1261_v29  ;;  %v4592_v53 = vunpack.c.l.bf16 %v4562_v59  ;;  %v7508_v22 = vld [vmem:[#allocation130_spill] sm:$0xff] }
 0x13d   :  { %7505 = vst [vmem:[#allocation106_spill] sm:$0xff] %v4587_v36  ;;  %v1290_v51 = vsel %vm1262_vm10, %v1257_v13, %v1241_v17  ;;  %v7509_v25 = vunpack.i.l.bf16 %v7508_v22  ;;  %v4617_v49 = vpack.i.bf16 %v4599_v7, %v4587_v36  ;;  %v7512_v37 = vunpack.i.h.bf16 %v7508_v22 }
 0x13e   :  { %7499 = vst [vmem:[#allocation28_spill] sm:$0xff] %v4571_v28  ;;  %v4622_v28 = vsel %vm1296_vm12, %v7449_v62, %v1290_v51  ;;  %v7513_v17 = vunpack.i.h.bf16 %v4458_v34  ;;  %v4641_v36 = vunpack.c.l.bf16 %v875_v57  ;;  %v7526_v62 = vunpack.i.l.bf16 %v4217_v18 }
 0x13f   :  { %7503 = vst [vmem:[#allocation24_spill] sm:$0xff] %v4581_v19  ;;  %v837_v29 = vsel %vm311_vm2, %v6877_v63, %v7509_v25  ;;  %v7514_v19 = vld [vmem:[#allocation21_spill] sm:$0xff]  ;;  %v4635_v63 = vpack.i.bf16 %v4622_v28, %v4603_v48  ;;  %2271 = vrot.lane.b32.xlu1 %v4617_v49, %s2437_s0 }
 0x140   :  { %7506 = vst [vmem:[#allocation107_spill] sm:$0xff] %v4599_v7  ;;  %v838_v13 = vsel %vm311_vm2, %v7513_v17, %v7512_v37  ;;  %v863_v25 = vsel %vm3057_vm5, %v7514_v19, %v837_v29  ;;  %v7516_v7 = vld [vmem:[#allocation22_spill] sm:$0xff]  ;;  %v2064_v17 = vunpack.i.h.bf16 %v4472_v20  ;;  %v2063_v29 = vunpack.i.l.bf16 %v4472_v20 }
 0x141   :  { %7507 = vst [vmem:[#allocation108_spill] sm:$0xff] %v4603_v48  ;;  %v867_v3 = vsel %vm3057_vm5, %v7516_v7, %v838_v13  ;;  %v908_v51 = vmul.f32 %v4470_v58, %v863_v25  ;;  %v2059_v48 = vunpack.i.h.bf16 %v4482_v47  ;;  %2266 = vrot.lane.b32.xlu0 %v4635_v63, %s2437_s0  ;;  %v7518_v13 = vld [vmem:[#allocation11_spill] sm:$0xff]  ;;  %v2058_v19 = vunpack.i.l.bf16 %v4482_v47  ;;  %v7521_v58 = vld [vmem:[#allocation96_spill] sm:$0xff] }
 0x142   :  { %7510 = vst [vmem:[#allocation50_spill] sm:$0xff] %v4617_v49  ;;  %v912_v37 = vmul.f32 %v4478_v11, %v867_v3  ;;  %v7522_v49 = vld [vmem:[#allocation29_spill] sm:$0xff]  ;;  %v7525_v11 = vunpack.i.h.bf16 %v4217_v18  ;;  %v2092_v52 = vpop.permute.xlu1 %2091 }
 0x143   :  { %7511 = vst [vmem:[#allocation89_spill] sm:$0xff] %v4622_v28  ;;  %v7517_v28 = vld [vmem:[#allocation83_spill] sm:$0xff]  ;;  %v7523_v55 = vsub.f32 %v7521_v58, %v7522_v49  ;;  %v7529_v58 = vunpack.i.h.bf16 %v4364_v60 }
 0x144   :  { %7515 = vst [vmem:[#allocation130_spill] sm:$0xff] %v4635_v63  ;;  %v7519_v7 = vsub.f32 %v7517_v28, %v7518_v13  ;;  %v818_v20 = vsel %vm311_vm2, %v2064_v17, %v7525_v11  ;;  %v817_v63 = vsel %vm311_vm2, %v2063_v29, %v7526_v62  ;;  %v7527_v28 = vunpack.i.l.bf16 %v4364_v60  ;;  %v7530_v11 = vld [vmem:[#allocation25_spill] sm:$0xff]  ;;  %v7543_v60 = vld [vmem:[#allocation64_spill] sm:$0xff] }
 0x145   :  { %v4660_v3 = vsub.f32 %v7523_v55, %v912_v37  ;;  %v853_v55 = vsel %vm2941_vm3, %v7337_v21, %v818_v20  ;;  %v826_v49 = vsel %vm311_vm2, %v7529_v58, %v2064_v17  ;;  %v849_v62 = vsel %vm2941_vm3, %v7333_v42, %v817_v63  ;;  %v7532_v17 = vld [vmem:[#allocation131_spill] sm:$0xff]  ;;  %v7536_v42 = vld [vmem:[#allocation132_spill] sm:$0xff] }
 0x146   :  { %v4654_v25 = vsub.f32 %v7519_v7, %v908_v51  ;;  %v825_v47 = vsel %vm311_vm2, %v7527_v28, %v2063_v29  ;;  %v898_v37 = vmul.f32 %v4641_v36, %v853_v55  ;;  %v7531_v29 = vld [vmem:[#allocation26_spill] sm:$0xff]  ;;  %v894_v28 = vmul.f32 %v4592_v53, %v849_v62  ;;  %2291 = vrot.lane.b32.xlu2 %v7532_v17, %s2438_s1  ;;  %v7538_v17 = vld [vmem:[#allocation84_spill] sm:$0xff]  ;;  %v7624_v7 = vld [vmem:[#allocation17_spill] sm:$0xff] }
 0x147   :  { %7524 = vst [vmem:[#allocation11_spill] sm:$0xff] %v4660_v3  ;;  %v848_v51 = vsel %vm2981_vm4, %v7530_v11, %v825_v47  ;;  %v852_v13 = vsel %vm2981_vm4, %v7531_v29, %v826_v49  ;;  %v7533_v47 = vunpack.i.h.bf16 %v3687_v16  ;;  %v7534_v55 = vunpack.i.l.bf16 %v3687_v16  ;;  %v4704_v49 = vpop.permute.xlu2 %2141  ;;  %v7539_v11 = vld [vmem:[#allocation133_spill] sm:$0xff]  ;;  %v7546_v16 = vld [vmem:[#allocation15_spill] sm:$0xff] }
 0x148   :  { %7520 = vst [vmem:[#allocation83_spill] sm:$0xff] %v4654_v25  ;;  %v893_v20 = vmul.f32 %v4492_v54, %v848_v51  ;;  %v897_v58 = vmul.f32 %v4494_v41, %v852_v13  ;;  %v7535_v51 = vld [vmem:[#allocation85_spill] sm:$0xff]  ;;  %v7540_v13 = vsub.f32 %v7538_v17, %v7539_v11  ;;  %v7542_v25 = vld [vmem:[#allocation112_spill] sm:$0xff]  ;;  %v7550_v11 = vld [vmem:[#allocation14_spill] sm:$0xff] }
 0x149   :  { %v824_v63 = vsel %vm311_vm2, %v7533_v47, %v2059_v48  ;;  %v823_v21 = vsel %vm311_vm2, %v7534_v55, %v2058_v19  ;;  %v7537_v62 = vsub.f32 %v7535_v51, %v7536_v42  ;;  %v7544_v47 = vsub.f32 %v7542_v25, %v7543_v60  ;;  %v4734_v25 = vpop.permute.xlu0 %2086  ;;  %v7553_v17 = vld [vmem:[#allocation90_spill] sm:$0xff] }
 0x14a   :  { %v4714_v3 = vsub.f32 %v7540_v13, %v894_v28  ;;  %v844_v55 = vsel %vm2981_vm4, %v7546_v16, %v824_v63  ;;  %v7549_v42 = vsub.f32 %v7547_v27, %v7548_v30  ;;  %v840_v28 = vsel %vm2981_vm4, %v7550_v11, %v823_v21  ;;  %v7551_v63 = vld [vmem:[#allocation39_spill] sm:$0xff] }
 0x14b   :  { %v4709_v29 = vsub.f32 %v7537_v62, %v893_v20  ;;  %v4719_v18 = vsub.f32 %v7544_v47, %v898_v37  ;;  %v889_v51 = vmul.f32 %v4494_v41, %v844_v55  ;;  %v885_v37 = vmul.f32 %v4492_v54, %v840_v28  ;;  %2286 = vrot.lane.b32.xlu1 %v7551_v63, %s2438_s1  ;;  %v7555_v47 = vld [vmem:[#allocation95_spill] sm:$0xff]  ;;  %v7556_v63 = vld [vmem:[#allocation92_spill] sm:$0xff] }
 0x14c   :  { %7541 = vst [vmem:[#allocation96_spill] sm:$0xff] %v4714_v3  ;;  %v4727_v20 = vsub.f32 %v7549_v42, %v897_v58  ;;  %v4741_v27 = vunpack.c.h.bf16 %v4562_v59  ;;  %v4743_v30 = vunpack.c.h.bf16 %v875_v57  ;;  %v7552_v58 = vld [vmem:[#allocation104_spill] sm:$0xff]  ;;  %2281 = vrot.lane.b32.xlu0 %v7555_v47, %s2438_s1  ;;  %v2079_v55 = vunpack.i.h.bf16 %v4594_v46  ;;  %v7557_v62 = vld [vmem:[#allocation103_spill] sm:$0xff] }
 0x14d   :  { %7545 = vst [vmem:[#allocation29_spill] sm:$0xff] %v4719_v18  ;;  %v7554_v13 = vsub.f32 %v7552_v58, %v7553_v17  ;;  %v2078_v42 = vunpack.i.l.bf16 %v4594_v46  ;;  %v2074_v28 = vunpack.i.h.bf16 %v4613_v32  ;;  %v7558_v59 = vsub.f32 %v7556_v63, %v7557_v62  ;;  %v7662_v18 = vld [vmem:[#allocation50_spill] sm:$0xff] }
 0x14e   :  { %v2073_v57 = vunpack.i.l.bf16 %v4613_v32  ;;  %v7559_v58 = vunpack.i.h.bf16 %v4345_v26  ;;  %v7560_v17 = vunpack.i.l.bf16 %v4345_v26  ;;  %v816_v62 = vsel %vm311_vm2, %v2059_v48, %v2079_v55 }
 0x14f   :  { %v4748_v21 = vsub.f32 %v7554_v13, %v889_v51  ;;  %v4758_v60 = vsub.f32 %v7558_v59, %v885_v37  ;;  %v815_v46 = vsel %vm311_vm2, %v2058_v19, %v2078_v42  ;;  %v845_v63 = vsel %vm2941_vm3, %v7385_v61, %v816_v62  ;;  %v7562_v19 = vld [vmem:[#allocation138_spill] sm:$0xff] }
 0x150   :  { %v808_v51 = vsel %vm311_vm2, %v2079_v55, %v7559_v58  ;;  %v807_v13 = vsel %vm311_vm2, %v2078_v42, %v7560_v17  ;;  %v841_v47 = vsel %vm2941_vm3, %v7378_v10, %v815_v46  ;;  %2306 = vrot.lane.b32.xlu2 %v7562_v19, %s2438_s1  ;;  %v890_v59 = vmul.f32 %v4641_v36, %v845_v63  ;;  %v7569_v63 = vld [vmem:[#allocation71_spill] sm:$0xff]  ;;  %v4820_v46 = vpop.permute.xlu2 %2156 }
 0x151   :  { %v846_v32 = vsel %vm3191_vm6, %v7388_v6, %v808_v51  ;;  %v842_v26 = vsel %vm3191_vm6, %v7381_v9, %v807_v13  ;;  %v886_v55 = vmul.f32 %v4592_v53, %v841_v47  ;;  %v7563_v58 = vunpack.i.h.bf16 %v7508_v22  ;;  %v7573_v6 = vld [vmem:[#allocation102_spill] sm:$0xff] }
 0x152   :  { %v891_v48 = vmul.f32 %v4743_v30, %v846_v32  ;;  %v887_v42 = vmul.f32 %v4741_v27, %v842_v26  ;;  %v7564_v17 = vunpack.i.l.bf16 %v7508_v22  ;;  %v7565_v62 = vsub.f32 %v4116_v31, %v4161_v0  ;;  %v7572_v22 = vld [vmem:[#allocation45_spill] sm:$0xff]  ;;  %v7576_v31 = vld [vmem:[#allocation35_spill] sm:$0xff]  ;;  %v5078_v9 = vld [vmem:[#allocation5 + $0xb8] sm:$0xff] }
 0x153   :  { %v830_v51 = vsel %vm311_vm2, %v7563_v58, %v2074_v28  ;;  %v7567_v47 = vsub.f32 %v4121_v4, %v4167_v50  ;;  %v7570_v19 = vsub.f32 %v4129_v38, %v7569_v63  ;;  %v7578_v50 = vld [vmem:[#allocation139_spill] sm:$0xff]  ;;  %v4836_v63 = vpop.permute.xlu0 %2101  ;;  %v7671_v3 = vunpack.i.h.bf16 %v4576_v44 }
 0x154   :  { %v829_v13 = vsel %vm311_vm2, %v7564_v17, %v2073_v57  ;;  %v4803_v32 = vsub.f32 %v7565_v62, %v886_v55  ;;  %v7574_v17 = vsub.f32 %v7572_v22, %v7573_v6  ;;  %v868_v0 = vsel %vm2981_vm4, %v7576_v31, %v830_v51  ;;  %v7577_v55 = vld [vmem:[#allocation34_spill] sm:$0xff]  ;;  %2301 = vrot.lane.b32.xlu1 %v7578_v50, %s2438_s1  ;;  %v7579_v62 = vld [vmem:[#allocation128_spill] sm:$0xff]  ;;  %v7585_v50 = vld [vmem:[#allocation105_spill] sm:$0xff] }
 0x155   :  { %v4808_v26 = vsub.f32 %v7567_v47, %v887_v42  ;;  %v4813_v58 = vsub.f32 %v7570_v19, %v890_v59  ;;  %v864_v4 = vsel %vm2981_vm4, %v7577_v55, %v829_v13  ;;  %v2094_v42 = vunpack.i.h.bf16 %v2092_v52  ;;  %v2107_v59 = vpop.permute.xlu1 %2106  ;;  %2296 = vrot.lane.b32.xlu0 %v7579_v62, %s2438_s1 }
 0x156   :  { %7566 = vst [vmem:[#allocation131_spill] sm:$0xff] %v4803_v32  ;;  %v4818_v61 = vsub.f32 %v7574_v17, %v891_v48  ;;  %v913_v6 = vmul.f32 %v4494_v41, %v868_v0  ;;  %v909_v48 = vmul.f32 %v4492_v54, %v864_v4  ;;  %v2093_v47 = vunpack.i.l.bf16 %v2092_v52  ;;  %v7581_v17 = vld [vmem:[#allocation44_spill] sm:$0xff]  ;;  %v7584_v52 = vld [vmem:[#allocation70_spill] sm:$0xff] }
 0x157   :  { %7568 = vst [vmem:[#allocation85_spill] sm:$0xff] %v4808_v26  ;;  %v2089_v51 = vunpack.i.h.bf16 %v4734_v25  ;;  %v7580_v13 = vunpack.i.h.bf16 %v4458_v34  ;;  %v822_v22 = vsel %vm311_vm2, %v2074_v28, %v2094_v42  ;;  %v2088_v41 = vunpack.i.l.bf16 %v4734_v25  ;;  %v7582_v54 = vld [vmem:[#allocation40_spill] sm:$0xff] }
 0x158   :  { %7571 = vst [vmem:[#allocation132_spill] sm:$0xff] %v4813_v58  ;;  %v7583_v0 = vsub.f32 %v7581_v17, %v7582_v54  ;;  %v7586_v62 = vsub.f32 %v7584_v52, %v7585_v50  ;;  %v7592_v50 = vunpack.i.l.bf16 %v4075_v45  ;;  %v5076_v32 = vld [vmem:[#allocation5 + $0x88] sm:$0xff] }
 0x159   :  { %7575 = vst [vmem:[#allocation84_spill] sm:$0xff] %v4818_v61  ;;  %v814_v19 = vsel %vm311_vm2, %v2094_v42, %v7580_v13  ;;  %v7587_v13 = vunpack.i.l.bf16 %v4458_v34  ;;  %v821_v42 = vsel %vm311_vm2, %v2073_v57, %v2093_v47  ;;  %v7589_v57 = vunpack.i.h.bf16 %v4075_v45  ;;  %v7599_v45 = vld [vmem:[#allocation59_spill] sm:$0xff] }
 0x15a   :  { %v4848_v4 = vsub.f32 %v7583_v0, %v909_v48  ;;  %v4853_v38 = vsub.f32 %v7586_v62, %v913_v6  ;;  %v870_v39 = vsel %vm3191_vm6, %v7432_v56, %v814_v19  ;;  %v869_v6 = vsel %vm2941_vm3, %v7426_v15, %v822_v22  ;;  %v7588_v19 = vld [vmem:[#allocation113_spill] sm:$0xff]  ;;  %v7633_v15 = vld [vmem:[#allocation52_spill] sm:$0xff] }
 0x15b   :  { %v813_v28 = vsel %vm311_vm2, %v2093_v47, %v7587_v13  ;;  %v915_v25 = vmul.f32 %v4743_v30, %v870_v39  ;;  %2321 = vrot.lane.b32.xlu2 %v7588_v19, %s2438_s1  ;;  %v865_v34 = vsel %vm2941_vm3, %v7422_v8, %v821_v42  ;;  %v914_v17 = vmul.f32 %v4641_v36, %v869_v6  ;;  %v7595_v42 = vld [vmem:[#allocation58_spill] sm:$0xff]  ;;  %v951_v8 = vld [vmem:[#allocation5 + $0x90] sm:$0xff] }
 0x15c   :  { %v866_v48 = vsel %vm3191_vm6, %v7243_v12, %v813_v28  ;;  %v820_v47 = vsel %vm311_vm2, %v7589_v57, %v2089_v51  ;;  %v910_v54 = vmul.f32 %v4592_v53, %v865_v34  ;;  %v7590_v22 = vsub.f32 %v4308_v24, %v4348_v23  ;;  %v7600_v19 = vld [vmem:[#allocation114_spill] sm:$0xff] }
 0x15d   :  { %v911_v39 = vmul.f32 %v4741_v27, %v866_v48  ;;  %v861_v52 = vsel %vm2941_vm3, %v7408_v43, %v820_v47  ;;  %v819_v62 = vsel %vm311_vm2, %v7592_v50, %v2088_v41  ;;  %v7593_v13 = vsub.f32 %v4299_v2, %v4340_v40  ;;  %v7596_v48 = vld [vmem:[#allocation116_spill] sm:$0xff] }
 0x15e   :  { %v4886_v0 = vsub.f32 %v7590_v22, %v915_v25  ;;  %v7597_v6 = vsub.f32 %v7595_v42, %v7596_v48  ;;  %v906_v23 = vmul.f32 %v4641_v36, %v861_v52  ;;  %v857_v25 = vsel %vm2941_vm3, %v7407_v14, %v819_v62  ;;  %v4922_v22 = vpop.permute.xlu2 %2171  ;;  %v7604_v52 = vld [vmem:[#allocation119_spill] sm:$0xff]  ;;  %v4935_v42 = vpop.permute.xlu1 %2121 }
 0x15f   :  { %v4898_v28 = vsub.f32 %v7593_v13, %v911_v39  ;;  %v7601_v34 = vsub.f32 %v7599_v45, %v7600_v19  ;;  %v902_v2 = vmul.f32 %v4592_v53, %v857_v25  ;;  %v7603_v40 = vsub.f32 %v4390_v35, %v4411_v5  ;;  %v7607_v53 = vld [vmem:[#allocation134_spill] sm:$0xff]  ;;  %7608 = vst [vmem:[#allocation38_spill] sm:$0xff] %v4935_v42  ;;  %v4943_v25 = vpop.permute.xlu0 %2116  ;;  %v7612_v19 = vld [vmem:[#allocation13_spill] sm:$0xff] }
 0x160   :  { %7591 = vst [vmem:[#allocation133_spill] sm:$0xff] %v4886_v0  ;;  %v4903_v24 = vsub.f32 %v7597_v6, %v914_v17  ;;  %v2109_v47 = vunpack.i.h.bf16 %v2107_v59  ;;  %v7605_v50 = vsub.f32 %v4385_v1, %v7604_v52  ;;  %2311 = vrot.lane.b32.xlu0 %v7607_v53, %s2438_s1  ;;  %v2108_v35 = vunpack.i.l.bf16 %v2107_v59  ;;  %v7609_v6 = vld [vmem:[#allocation56_spill] sm:$0xff] }
 0x161   :  { %7594 = vst [vmem:[#allocation112_spill] sm:$0xff] %v4898_v28  ;;  %v4912_v57 = vsub.f32 %v7601_v34, %v910_v54  ;;  %v4918_v39 = vsub.f32 %v7603_v40, %v906_v23  ;;  %v7606_v54 = vld [vmem:[#allocation47_spill] sm:$0xff]  ;;  %v2104_v5 = vunpack.i.h.bf16 %v4836_v63  ;;  %v2103_v13 = vunpack.i.l.bf16 %v4836_v63  ;;  %v7615_v52 = vld [vmem:[#allocation12_spill] sm:$0xff] }
 0x162   :  { %7598 = vst [vmem:[#allocation64_spill] sm:$0xff] %v4903_v24  ;;  %v4927_v62 = vsub.f32 %v7605_v50, %v902_v2  ;;  %2316 = vrot.lane.b32.xlu1 %v7606_v54, %s2438_s1  ;;  %v812_v48 = vsel %vm311_vm2, %v2089_v51, %v2109_v47  ;;  %v7610_v1 = vunpack.i.h.bf16 %v7609_v6  ;;  %v811_v45 = vsel %vm311_vm2, %v2088_v41, %v2108_v35  ;;  %v7614_v51 = vld [vmem:[#allocation61_spill] sm:$0xff]  ;;  %v7616_v50 = vld [vmem:[#allocation60_spill] sm:$0xff]  ;;  %v7627_v24 = vld [vmem:[#allocation66_spill] sm:$0xff] }
 0x163   :  { %7602 = vst [vmem:[#allocation15_spill] sm:$0xff] %v4912_v57  ;;  %v7611_v59 = vunpack.i.l.bf16 %v7609_v6  ;;  %v862_v40 = vsel %vm3191_vm6, %v7614_v51, %v812_v48  ;;  %v858_v41 = vsel %vm3191_vm6, %v7616_v50, %v811_v45  ;;  %v7617_v54 = vld [vmem:[#allocation145_spill] sm:$0xff]  ;;  %v7618_v6 = vld [vmem:[#allocation144_spill] sm:$0xff]  ;;  %v7656_v34 = vld [vmem:[#allocation123_spill] sm:$0xff]  ;;  %v7661_v10 = vunpack.i.l.bf16 %v4935_v42 }
 0x164   :  { %v836_v23 = vsel %vm311_vm2, %v2109_v47, %v7610_v1  ;;  %2336 = vrot.lane.b32.xlu2 %v7618_v6, %s2438_s1  ;;  %v7619_v1 = vld [vmem:[#allocation143_spill] sm:$0xff]  ;;  %v7620_v48 = vld [vmem:[#allocation97_spill] sm:$0xff] }
 0x165   :  { %v835_v63 = vsel %vm311_vm2, %v2108_v35, %v7611_v59  ;;  %v859_v2 = vsel %vm3057_vm5, %v7612_v19, %v836_v23  ;;  %v907_v35 = vmul.f32 %v4743_v30, %v862_v40  ;;  %v903_v59 = vmul.f32 %v4741_v27, %v858_v41  ;;  %v7626_v6 = vld [vmem:[#allocation55_spill] sm:$0xff]  ;;  %v7629_v41 = vld [vmem:[#allocation57_spill] sm:$0xff] }
 0x166   :  { %v855_v47 = vsel %vm3057_vm5, %v7615_v52, %v835_v63  ;;  %v904_v53 = vmul.f32 %v7617_v54, %v859_v2  ;;  %v7621_v36 = vunpack.i.h.bf16 %v7620_v48  ;;  %v7622_v17 = vunpack.i.l.bf16 %v7620_v48  ;;  %v7623_v2 = vld [vmem:[#allocation109_spill] sm:$0xff]  ;;  %v5054_v58 = vpop.permute.xlu1 %2136 }
 0x167   :  { %v900_v23 = vmul.f32 %v7619_v1, %v855_v47  ;;  %v7625_v40 = vsub.f32 %v7623_v2, %v7624_v7  ;;  %v7628_v47 = vsub.f32 %v7626_v6, %v7627_v24  ;;  %v7636_v2 = vld [vmem:[#allocation121_spill] sm:$0xff] }
 0x168   :  { %v810_v63 = vsel %vm311_vm2, %v7621_v36, %v2104_v5  ;;  %v809_v45 = vsel %vm311_vm2, %v7622_v17, %v2103_v13  ;;  %v7630_v36 = vld [vmem:[#allocation94_spill] sm:$0xff] }
 0x169   :  { %v4980_v0 = vsub.f32 %v7625_v40, %v904_v53  ;;  %v4985_v28 = vsub.f32 %v7628_v47, %v907_v35  ;;  %v854_v57 = vsel %vm3191_vm6, %v7629_v41, %v810_v63  ;;  %v7631_v56 = vunpack.i.l.bf16 %v7630_v36  ;;  %v7632_v17 = vld [vmem:[#allocation78_spill] sm:$0xff]  ;;  %v7635_v53 = vld [vmem:[#allocation67_spill] sm:$0xff] }
 0x16a   :  { %v7634_v12 = vsub.f32 %v7632_v17, %v7633_v15  ;;  %v7637_v40 = vsub.f32 %v7635_v53, %v7636_v2  ;;  %v899_v35 = vmul.f32 %v4743_v30, %v854_v57  ;;  %v7638_v6 = vunpack.i.h.bf16 %v7630_v36  ;;  %v949_v47 = vld [vmem:[#allocation5 + $0x80] sm:$0xff]  ;;  %v7642_v17 = vld [vmem:[#allocation93_spill] sm:$0xff] }
 0x16b   :  { %v833_v48 = vsel %vm311_vm2, %v2103_v13, %v7631_v56  ;;  %v7639_v56 = vld [vmem:[#allocation32_spill] sm:$0xff]  ;;  %v5018_v30 = vld [vmem:[#allocation5 + $0xa0] sm:$0xff]  ;;  %v7643_v53 = vld [vmem:[#allocation81_spill] sm:$0xff] }
 0x16c   :  { %v4997_v7 = vsub.f32 %v7634_v12, %v900_v23  ;;  %v5002_v24 = vsub.f32 %v7637_v40, %v903_v59  ;;  %v834_v63 = vsel %vm311_vm2, %v2104_v5, %v7638_v6  ;;  %v847_v15 = vsel %vm3057_vm5, %v7639_v56, %v833_v48  ;;  %v7640_v12 = vld [vmem:[#allocation54_spill] sm:$0xff]  ;;  %v7641_v23 = vld [vmem:[#allocation33_spill] sm:$0xff]  ;;  %v7646_v40 = vld [vmem:[#allocation148_spill] sm:$0xff]  ;;  %2351 = vrot.lane.b32.xlu2 %v7662_v18, %s2438_s1 }
 0x16d   :  { %v850_v13 = vsel %vm3191_vm6, %v7640_v12, %v809_v45  ;;  %v851_v59 = vsel %vm3057_vm5, %v7641_v23, %v834_v63  ;;  %v892_v57 = vmul.f32 %v7619_v1, %v847_v15  ;;  %v7644_v2 = vsub.f32 %v7642_v17, %v7643_v53  ;;  %2331 = vrot.lane.b32.xlu1 %v7646_v40, %s2438_s1  ;;  %v1156_v45 = vld [vmem:[#allocation5 + $0xb0] sm:$0xff]  ;;  %v7647_v6 = vld [vmem:[#allocation74_spill] sm:$0xff] }
 0x16e   :  { %v895_v5 = vmul.f32 %v4741_v27, %v850_v13  ;;  %v896_v36 = vmul.f32 %v7617_v54, %v851_v59  ;;  %2326 = vrot.lane.b32.xlu0 %v7647_v6, %s2438_s1  ;;  %v5034_v15 = vunpack.c.l.bf16 %v949_v47  ;;  %v5036_v27 = vunpack.c.l.bf16 %v951_v8  ;;  %v5038_v54 = vpop.permute.xlu2 %2186  ;;  %v7648_v13 = vld [vmem:[#allocation16_spill] sm:$0xff]  ;;  %v7651_v53 = vld [vmem:[#allocation82_spill] sm:$0xff] }
 0x16f   :  { %v5026_v48 = vsub.f32 %v7644_v2, %v899_v35  ;;  %v7649_v35 = vld [vmem:[#allocation124_spill] sm:$0xff]  ;;  %v7652_v2 = vld [vmem:[#allocation31_spill] sm:$0xff]  ;;  %v7655_v6 = vld [vmem:[#allocation122_spill] sm:$0xff]  ;;  %v5052_v1 = vunpack.c.l.bf16 %v5018_v30 }
 0x170   :  { %v7650_v59 = vsub.f32 %v7648_v13, %v7649_v35  ;;  %v7653_v40 = vsub.f32 %v7651_v53, %v7652_v2  ;;  %v7657_v63 = vsub.f32 %v7655_v6, %v7656_v34  ;;  %v969_v26 = vmul.f32 %v5034_v15, %v7639_v56  ;;  %v5063_v35 = vpop.permute.xlu0 %2131  ;;  %v7666_v18 = vld [vmem:[#allocation130_spill] sm:$0xff] }
 0x171   :  { %7645 = vst [vmem:[#allocation75_spill] sm:$0xff] %v5026_v48  ;;  %v5060_v13 = vunpack.c.l.bf16 %v1156_v45  ;;  %v7658_v53 = vunpack.i.h.bf16 %v4704_v49 }
 0x172   :  { %v924_v17 = vsub.f32 %v7650_v59, %v892_v57  ;;  %v5046_v37 = vsub.f32 %v7653_v40, %v895_v5  ;;  %v928_v61 = vsub.f32 %v7657_v63, %v896_v36  ;;  %v973_v57 = vmul.f32 %v5036_v27, %v7641_v23  ;;  %v5068_v59 = vld [vmem:[#allocation5 + $0xa8] sm:$0xff] }
 0x173   :  { %v6916_v5 = vunpack.i.h.bf16 %v4935_v42  ;;  %v7660_v63 = vunpack.i.l.bf16 %v4704_v49  ;;  %v5122_v42 = vunpack.c.h.bf16 %v949_v47 }
 0x174   :  { %7654 = vst [vmem:[#allocation14_spill] sm:$0xff] %v5046_v37  ;;  %v1001_v40 = vsub.f32 %v924_v17, %v969_v26  ;;  %v1005_v6 = vsub.f32 %v928_v61, %v973_v57  ;;  %v5091_v26 = vld [vmem:[#allocation5 + $0x98] sm:$0xff]  ;;  %v5094_v61 = vunpack.c.h.bf16 %v5076_v32 }
 0x175   :  { %v1108_v2 = vsel %vm597_vm7, %v6916_v5, %v7658_v53  ;;  %v1107_v48 = vsel %vm597_vm7, %v7661_v10, %v7660_v63  ;;  %v5101_v57 = vunpack.c.h.bf16 %v5091_v26  ;;  %v5104_v53 = vunpack.c.h.bf16 %v5068_v59  ;;  %2346 = vrot.lane.b32.xlu1 %v7666_v18, %s2438_s1 }
 0x176   :  { %v1133_v36 = vsel %vm3399_vm8, %v7641_v23, %v1108_v2  ;;  %7663 = vst [vmem:[#allocation39_spill] sm:$0xff] %v5094_v61  ;;  %v1129_v23 = vsel %vm3399_vm8, %v7639_v56, %v1107_v48  ;;  %v980_v63 = vmul.f32 %v5094_v61, %v7616_v50  ;;  %v6922_v2 = vunpack.i.h.bf16 %v5038_v54  ;;  %v7669_v48 = vld [vmem:[#allocation141_spill] sm:$0xff] }
 0x177   :  { %v1178_v17 = vmul.f32 %v5060_v13, %v1133_v36  ;;  %7664 = vst [vmem:[#allocation104_spill] sm:$0xff] %v5101_v57  ;;  %v1174_v10 = vmul.f32 %v5052_v1, %v1129_v23  ;;  %v5112_v36 = vunpack.c.h.bf16 %v5078_v9  ;;  %2341 = vrot.lane.b32.xlu0 %v7669_v48, %s2438_s1  ;;  %v984_v5 = vmul.f32 %v5101_v57, %v7614_v51 }
 0x178   :  { %7665 = vst [vmem:[#allocation90_spill] sm:$0xff] %v5104_v53  ;;  %v6921_v23 = vunpack.i.l.bf16 %v5038_v54  ;;  %v1012_v37 = vsub.f32 %v5002_v24, %v980_v63  ;;  %v5163_v57 = vunpack.c.h.bf16 %v1156_v45  ;;  %v7677_v24 = vld [vmem:[#allocation79_spill] sm:$0xff]  ;;  %v7680_v45 = vunpack.i.h.bf16 %v4820_v46 }
 0x179   :  { %7667 = vst [vmem:[#allocation95_spill] sm:$0xff] %v5112_v36  ;;  %v5115_v56 = vsub.f32 %v1005_v6, %v1178_v17  ;;  %v5124_v18 = vsub.f32 %v1001_v40, %v1174_v10  ;;  %v1118_v6 = vsel %vm597_vm7, %v6922_v2, %v7671_v3  ;;  %v5133_v17 = vunpack.c.h.bf16 %v951_v8  ;;  %v7674_v10 = vld [vmem:[#allocation18_spill] sm:$0xff] }
 0x17a   :  { %v1016_v48 = vsub.f32 %v4985_v28, %v984_v5  ;;  %v1144_v40 = vsel %vm3499_vm9, %v7614_v51, %v1118_v6  ;;  %v961_v63 = vmul.f32 %v5034_v15, %v7674_v10  ;;  %v962_v28 = vmul.f32 %v5122_v42, %v7550_v11  ;;  %v7675_v5 = vld [vmem:[#allocation19_spill] sm:$0xff] }
 0x17b   :  { %7668 = vst [vmem:[#allocation92_spill] sm:$0xff] %v5115_v56  ;;  %v7672_v56 = vunpack.i.l.bf16 %v4576_v44  ;;  %v1189_v3 = vmul.f32 %v5112_v36, %v1144_v40  ;;  %v966_v6 = vmul.f32 %v5133_v17, %v7546_v16  ;;  %v5161_v2 = vunpack.c.h.bf16 %v5018_v30 }
 0x17c   :  { %7670 = vst [vmem:[#allocation103_spill] sm:$0xff] %v5124_v18  ;;  %v5147_v18 = vpop.permute.xlu2 %2201  ;;  %v2139_v40 = vunpack.i.h.bf16 %v5054_v58  ;;  %v2138_v36 = vunpack.i.l.bf16 %v5054_v58  ;;  %v993_v41 = vsub.f32 %v7677_v24, %v961_v63  ;;  %v7682_v24 = vunpack.i.l.bf16 %v4943_v25 }
 0x17d   :  { %v1117_v47 = vsel %vm597_vm7, %v6921_v23, %v7672_v56  ;;  %v965_v56 = vmul.f32 %v5036_v27, %v7675_v5  ;;  %v2152_v23 = vpop.permute.xlu1 %2151  ;;  %v998_v30 = vsub.f32 %v4748_v21, %v966_v6 }
 0x17e   :  { %v1140_v8 = vsel %vm3499_vm9, %v7616_v50, %v1117_v47  ;;  %v5165_v50 = vpop.permute.xlu0 %2146  ;;  %v5167_v47 = vsub.f32 %v1016_v48, %v1189_v3  ;;  %v1098_v48 = vsel %vm597_vm7, %v2139_v40, %v7680_v45  ;;  %v7681_v3 = vunpack.i.l.bf16 %v4820_v46 }
 0x17f   :  { %v1185_v51 = vmul.f32 %v5104_v53, %v1140_v8  ;;  %v994_v8 = vsub.f32 %v4758_v60, %v962_v28  ;;  %v7679_v53 = vld [vmem:[#allocation77_spill] sm:$0xff]  ;;  %v7683_v60 = vunpack.i.h.bf16 %v4943_v25  ;;  %v1126_v63 = vsel %vm3646_vm11, %v7546_v16, %v1098_v48 }
 0x180   :  { %7676 = vst [vmem:[#allocation138_spill] sm:$0xff] %v5167_v47  ;;  %v997_v12 = vsub.f32 %v7679_v53, %v965_v56  ;;  %v1097_v58 = vsel %vm597_vm7, %v2138_v36, %v7681_v3  ;;  %v7693_v47 = vunpack.i.h.bf16 %v4922_v22  ;;  %v7730_v53 = vld [vmem:[#allocation38_spill] sm:$0xff] }
 0x181   :  { %v5172_v61 = vsub.f32 %v1012_v37, %v1185_v51  ;;  %v1105_v37 = vsel %vm597_vm7, %v7682_v24, %v2138_v36  ;;  %v1106_v21 = vsel %vm597_vm7, %v7683_v60, %v2139_v40  ;;  %v1122_v56 = vsel %vm3646_vm11, %v7550_v11, %v1097_v58  ;;  %v7692_v11 = vld [vmem:[#allocation11_spill] sm:$0xff] }
 0x182   :  { %v1121_v28 = vsel %vm3399_vm8, %v7674_v10, %v1105_v37  ;;  %v1125_v36 = vsel %vm3399_vm8, %v7675_v5, %v1106_v21  ;;  %v1171_v51 = vmul.f32 %v5163_v57, %v1126_v63  ;;  %v1167_v40 = vmul.f32 %v5161_v2, %v1122_v56  ;;  %v7689_v37 = vld [vmem:[#allocation21_spill] sm:$0xff]  ;;  %v7690_v63 = vld [vmem:[#allocation22_spill] sm:$0xff] }
 0x183   :  { %7678 = vst [vmem:[#allocation71_spill] sm:$0xff] %v5172_v61  ;;  %v1166_v6 = vmul.f32 %v5052_v1, %v1121_v28  ;;  %v1170_v16 = vmul.f32 %v5060_v13, %v1125_v36  ;;  %v985_v60 = vmul.f32 %v5034_v15, %v7689_v37  ;;  %v986_v21 = vmul.f32 %v5122_v42, %v7577_v55 }
 0x184   :  { %v5215_v58 = vsub.f32 %v994_v8, %v1167_v40  ;;  %v5219_v24 = vsub.f32 %v998_v30, %v1171_v51  ;;  %v989_v28 = vmul.f32 %v5036_v27, %v7690_v63  ;;  %v990_v56 = vmul.f32 %v5133_v17, %v7576_v31 }
 0x185   :  { %v5213_v3 = vsub.f32 %v993_v41, %v1166_v6  ;;  %v5217_v5 = vsub.f32 %v997_v12, %v1170_v16  ;;  %v5229_v41 = vpop.permute.xlu2 %2216  ;;  %v2154_v8 = vunpack.i.h.bf16 %v2152_v23  ;;  %v2153_v36 = vunpack.i.l.bf16 %v2152_v23  ;;  %v2167_v51 = vpop.permute.xlu1 %2166  ;;  %v7691_v6 = vld [vmem:[#allocation83_spill] sm:$0xff] }
 0x186   :  { %7686 = vst [vmem:[#allocation102_spill] sm:$0xff] %v5215_v58  ;;  %v977_v12 = vmul.f32 %v5034_v15, %v7615_v52  ;;  %v981_v30 = vmul.f32 %v5036_v27, %v7612_v19  ;;  %v1017_v40 = vsub.f32 %v7691_v6, %v985_v60  ;;  %v1018_v16 = vsub.f32 %v4848_v4, %v986_v21  ;;  %v5239_v10 = vpop.permute.xlu0 %2161 }
 0x187   :  { %7685 = vst [vmem:[#allocation45_spill] sm:$0xff] %v5213_v3  ;;  %v1021_v48 = vsub.f32 %v7692_v11, %v989_v28  ;;  %v1022_v45 = vsub.f32 %v4853_v38, %v990_v56  ;;  %v1104_v23 = vsel %vm597_vm7, %v2154_v8, %v7693_v47  ;;  %v7694_v15 = vunpack.i.l.bf16 %v4922_v22 }
 0x188   :  { %7687 = vst [vmem:[#allocation35_spill] sm:$0xff] %v5217_v5  ;;  %v7695_v60 = vunpack.i.l.bf16 %v5063_v35  ;;  %v7696_v11 = vunpack.i.h.bf16 %v5063_v35  ;;  %v1150_v21 = vsel %vm3646_vm11, %v7576_v31, %v1104_v23  ;;  %v2149_v23 = vunpack.i.h.bf16 %v5165_v50 }
 0x189   :  { %7688 = vst [vmem:[#allocation34_spill] sm:$0xff] %v5219_v24  ;;  %v1103_v27 = vsel %vm597_vm7, %v2153_v36, %v7694_v15  ;;  %v1009_v15 = vsub.f32 %v4997_v7, %v977_v12  ;;  %v5302_v12 = vunpack.c.l.bf16 %v5076_v32  ;;  %v7731_v34 = vunpack.i.l.bf16 %v7730_v53 }
 0x18a   :  { %v1111_v4 = vsel %vm597_vm7, %v7695_v60, %v2153_v36  ;;  %v1112_v38 = vsel %vm597_vm7, %v7696_v11, %v2154_v8  ;;  %v1146_v28 = vsel %vm3646_vm11, %v7577_v55, %v1103_v27  ;;  %v1195_v36 = vmul.f32 %v5163_v57, %v1150_v21 }
 0x18b   :  { %v1145_v47 = vsel %vm3399_vm8, %v7689_v37, %v1111_v4  ;;  %v1149_v56 = vsel %vm3399_vm8, %v7690_v63, %v1112_v38  ;;  %v1191_v6 = vmul.f32 %v5161_v2, %v1146_v28  ;;  %v2148_v37 = vunpack.i.l.bf16 %v5165_v50  ;;  %v7704_v28 = vld [vmem:[#allocation30_spill] sm:$0xff] }
 0x18c   :  { %v1190_v8 = vmul.f32 %v5052_v1, %v1145_v47  ;;  %v1194_v31 = vmul.f32 %v5060_v13, %v1149_v56  ;;  %v1013_v55 = vsub.f32 %v4980_v0, %v981_v30  ;;  %v5283_v4 = vsub.f32 %v1022_v45, %v1195_v36 }
 0x18d   :  { %v5279_v60 = vsub.f32 %v1018_v16, %v1191_v6  ;;  %v7701_v11 = vunpack.i.h.bf16 %v4576_v44  ;;  %v7702_v21 = vunpack.i.l.bf16 %v4576_v44  ;;  %v5305_v44 = vunpack.c.l.bf16 %v5091_v26  ;;  %v7703_v16 = vld [vmem:[#allocation27_spill] sm:$0xff]  ;;  %v5313_v56 = vpop.permute.xlu2 %2231 }
 0x18e   :  { %v5277_v27 = vsub.f32 %v1017_v40, %v1190_v8  ;;  %v5281_v63 = vsub.f32 %v1021_v48, %v1194_v31  ;;  %7700 = vst [vmem:[#allocation40_spill] sm:$0xff] %v5283_v4  ;;  %v978_v47 = vmul.f32 %v5122_v42, %v7703_v16  ;;  %v5320_v26 = vunpack.c.l.bf16 %v5068_v59  ;;  %v7798_v4 = vld [vmem:[#allocation23_spill] sm:$0xff] }
 0x18f   :  { %7698 = vst [vmem:[#allocation128_spill] sm:$0xff] %v5279_v60  ;;  %v1110_v38 = vsel %vm597_vm7, %v7701_v11, %v2149_v23  ;;  %v1109_v7 = vsel %vm597_vm7, %v7702_v21, %v2148_v37  ;;  %v983_v32 = vmul.f32 %v5305_v44, %v7408_v43  ;;  %v2169_v6 = vunpack.i.h.bf16 %v2167_v51  ;;  %v5329_v11 = vpop.permute.xlu0 %2176 }
 0x190   :  { %7697 = vst [vmem:[#allocation139_spill] sm:$0xff] %v5277_v27  ;;  %v1141_v48 = vsel %vm3399_vm8, %v7612_v19, %v1110_v38  ;;  %v1137_v45 = vsel %vm3399_vm8, %v7615_v52, %v1109_v7  ;;  %v982_v19 = vmul.f32 %v5133_v17, %v7704_v28  ;;  %v979_v52 = vmul.f32 %v5302_v12, %v7407_v14  ;;  %v7707_v38 = vld [vmem:[#allocation24_spill] sm:$0xff] }
 0x191   :  { %7699 = vst [vmem:[#allocation44_spill] sm:$0xff] %v5281_v63  ;;  %v1186_v30 = vmul.f32 %v5060_v13, %v1141_v48  ;;  %v1182_v40 = vmul.f32 %v5052_v1, %v1137_v45  ;;  %v5323_v13 = vunpack.c.l.bf16 %v5078_v9  ;;  %v2182_v1 = vpop.permute.xlu1 %2181  ;;  %v2168_v31 = vunpack.i.l.bf16 %v2167_v51  ;;  %v7708_v48 = vld [vmem:[#allocation28_spill] sm:$0xff]  ;;  %v7764_v63 = vld [vmem:[#allocation126_spill] sm:$0xff] }
 0x192   :  { %v1010_v21 = vsub.f32 %v7707_v38, %v978_v47  ;;  %v1011_v7 = vsub.f32 %v4927_v62, %v979_v52  ;;  %v1014_v45 = vsub.f32 %v7708_v48, %v982_v19  ;;  %v1015_v59 = vsub.f32 %v4918_v39, %v983_v32  ;;  %v7712_v32 = vld [vmem:[#allocation25_spill] sm:$0xff] }
 0x193   :  { %v5325_v36 = vsub.f32 %v1009_v15, %v1182_v40  ;;  %v5327_v8 = vsub.f32 %v1013_v55, %v1186_v30  ;;  %v7709_v9 = vunpack.i.h.bf16 %v5038_v54  ;;  %v7710_v55 = vunpack.i.l.bf16 %v5038_v54 }
 0x194   :  { %v1101_v30 = vsel %vm597_vm7, %v2148_v37, %v2168_v31  ;;  %v1102_v62 = vsel %vm597_vm7, %v2149_v23, %v2169_v6  ;;  %v2163_v38 = vunpack.i.l.bf16 %v5239_v10 }
 0x195   :  { %7705 = vst [vmem:[#allocation70_spill] sm:$0xff] %v5325_v36  ;;  %v1094_v15 = vsel %vm597_vm7, %v2169_v6, %v7709_v9  ;;  %v1093_v51 = vsel %vm597_vm7, %v2168_v31, %v7710_v55  ;;  %v1138_v47 = vsel %vm3646_vm11, %v7703_v16, %v1101_v30  ;;  %v1142_v19 = vsel %vm3646_vm11, %v7704_v28, %v1102_v62  ;;  %v7713_v16 = vld [vmem:[#allocation26_spill] sm:$0xff]  ;;  %v7720_v62 = vld [vmem:[#allocation51_spill] sm:$0xff] }
 0x196   :  { %7706 = vst [vmem:[#allocation105_spill] sm:$0xff] %v5327_v8  ;;  %v1143_v39 = vsel %vm3829_vm13, %v7408_v43, %v1094_v15  ;;  %v1139_v54 = vsel %vm3829_vm13, %v7407_v14, %v1093_v51  ;;  %v1183_v23 = vmul.f32 %v5161_v2, %v1138_v47  ;;  %v1187_v43 = vmul.f32 %v5163_v57, %v1142_v19  ;;  %v7721_v47 = vld [vmem:[#allocation54_spill] sm:$0xff] }
 0x197   :  { %v1188_v37 = vmul.f32 %v5323_v13, %v1143_v39  ;;  %v1184_v52 = vmul.f32 %v5320_v26, %v1139_v54  ;;  %v970_v6 = vmul.f32 %v5122_v42, %v7712_v32  ;;  %v974_v31 = vmul.f32 %v5133_v17, %v7713_v16  ;;  %v7722_v54 = vld [vmem:[#allocation39_spill] sm:$0xff] }
 0x198   :  { %v2164_v14 = vunpack.i.h.bf16 %v5239_v10  ;;  %v5369_v48 = vsub.f32 %v1010_v21, %v1183_v23  ;;  %v5373_v9 = vsub.f32 %v1014_v45, %v1187_v43  ;;  %v7718_v55 = vunpack.i.h.bf16 %v4704_v49  ;;  %v7723_v23 = vld [vmem:[#allocation53_spill] sm:$0xff]  ;;  %v7729_v45 = vld [vmem:[#allocation75_spill] sm:$0xff] }
 0x199   :  { %v5371_v28 = vsub.f32 %v1011_v7, %v1184_v52  ;;  %v5375_v15 = vsub.f32 %v1015_v59, %v1188_v37  ;;  %v1002_v51 = vsub.f32 %v4709_v29, %v970_v6  ;;  %v1006_v17 = vsub.f32 %v4727_v20, %v974_v31  ;;  %v5395_v29 = vpop.permute.xlu2 %2246  ;;  %v5403_v37 = vpop.permute.xlu1 %2196  ;;  %v7724_v43 = vld [vmem:[#allocation57_spill] sm:$0xff] }
 0x19a   :  { %7714 = vst [vmem:[#allocation113_spill] sm:$0xff] %v5369_v48  ;;  %v1100_v42 = vsel %vm597_vm7, %v7718_v55, %v2164_v14  ;;  %v7719_v30 = vunpack.i.l.bf16 %v4704_v49  ;;  %v971_v39 = vmul.f32 %v5302_v12, %v7720_v62  ;;  %v972_v19 = vmul.f32 %v7722_v54, %v7721_v47  ;;  %v5409_v55 = vpop.permute.xlu0 %2191  ;;  %v7837_v48 = vld [vmem:[#allocation146_spill] sm:$0xff] }
 0x19b   :  { %7715 = vst [vmem:[#allocation58_spill] sm:$0xff] %v5371_v28  ;;  %v1134_v21 = vsel %vm3646_vm11, %v7713_v16, %v1100_v42  ;;  %v975_v52 = vmul.f32 %v5305_v44, %v7723_v23  ;;  %v2184_v16 = vunpack.i.h.bf16 %v2182_v1  ;;  %v2183_v31 = vunpack.i.l.bf16 %v2182_v1  ;;  %v7726_v42 = vld [vmem:[#allocation96_spill] sm:$0xff]  ;;  %v7811_v28 = vld [vmem:[#allocation41_spill] sm:$0xff] }
 0x19c   :  { %7716 = vst [vmem:[#allocation116_spill] sm:$0xff] %v5373_v9  ;;  %v1099_v10 = vsel %vm597_vm7, %v7719_v30, %v2163_v38  ;;  %v1179_v20 = vmul.f32 %v5163_v57, %v1134_v21  ;;  %v1003_v30 = vsub.f32 %v7726_v42, %v971_v39  ;;  %v7748_v36 = vunpack.i.h.bf16 %v4820_v46 }
 0x19d   :  { %7717 = vst [vmem:[#allocation59_spill] sm:$0xff] %v5375_v15  ;;  %v1130_v7 = vsel %vm3646_vm11, %v7712_v32, %v1099_v10  ;;  %v7725_v32 = vld [vmem:[#allocation104_spill] sm:$0xff]  ;;  %v7727_v10 = vld [vmem:[#allocation14_spill] sm:$0xff]  ;;  %v1091_v0 = vsel %vm597_vm7, %v2163_v38, %v2183_v31  ;;  %v1092_v1 = vsel %vm597_vm7, %v2164_v14, %v2184_v16  ;;  %v7790_v24 = vunpack.i.h.bf16 %v5395_v29 }
 0x19e   :  { %v1175_v49 = vmul.f32 %v5161_v2, %v1130_v7  ;;  %v976_v6 = vmul.f32 %v7725_v32, %v7724_v43  ;;  %v5413_v2 = vsub.f32 %v1006_v17, %v1179_v20  ;;  %v1004_v21 = vsub.f32 %v7727_v10, %v972_v19  ;;  %v7728_v7 = vld [vmem:[#allocation29_spill] sm:$0xff]  ;;  %v7734_v19 = vld [vmem:[#allocation90_spill] sm:$0xff] }
 0x19f   :  { %v1007_v59 = vsub.f32 %v7728_v7, %v975_v52  ;;  %v7732_v17 = vunpack.i.h.bf16 %v7730_v53  ;;  %v1135_v38 = vsel %vm3829_vm13, %v7723_v23, %v1092_v1  ;;  %v7737_v23 = vld [vmem:[#allocation62_spill] sm:$0xff]  ;;  %v7740_v10 = vld [vmem:[#allocation37_spill] sm:$0xff]  ;;  %v7741_v7 = vld [vmem:[#allocation63_spill] sm:$0xff]  ;;  %v7794_v60 = vunpack.i.l.bf16 %v5395_v29 }
 0x1a0   :  { %v5411_v57 = vsub.f32 %v1002_v51, %v1175_v49  ;;  %v1008_v50 = vsub.f32 %v7729_v45, %v976_v6  ;;  %v1115_v51 = vsel %vm597_vm7, %v2183_v31, %v7731_v34  ;;  %v1131_v45 = vsel %vm3829_vm13, %v7720_v62, %v1091_v0  ;;  %v7735_v6 = vld [vmem:[#allocation95_spill] sm:$0xff]  ;;  %v7736_v62 = vld [vmem:[#allocation36_spill] sm:$0xff] }
 0x1a1   :  { %v1116_v20 = vsel %vm597_vm7, %v2184_v16, %v7732_v17  ;;  %v1132_v49 = vsel %vm3499_vm9, %v7721_v47, %v1115_v51  ;;  %v1176_v53 = vmul.f32 %v5320_v26, %v1131_v45  ;;  %v1180_v39 = vmul.f32 %v5323_v13, %v1135_v38  ;;  %v7744_v38 = vld [vmem:[#allocation131_spill] sm:$0xff]  ;;  %v5469_v61 = vpop.permute.xlu2 %2261 }
 0x1a2   :  { %v1136_v34 = vsel %vm3499_vm9, %v7724_v43, %v1116_v20  ;;  %v1177_v52 = vmul.f32 %v7734_v19, %v1132_v49  ;;  %v963_v16 = vmul.f32 %v5302_v12, %v7736_v62  ;;  %v964_v31 = vmul.f32 %v7722_v54, %v7737_v23 }
 0x1a3   :  { %v1181_v0 = vmul.f32 %v7735_v6, %v1136_v34  ;;  %v5451_v42 = vsub.f32 %v1003_v30, %v1176_v53  ;;  %v5453_v47 = vsub.f32 %v1007_v59, %v1180_v39  ;;  %v967_v43 = vmul.f32 %v5305_v44, %v7740_v10  ;;  %v7745_v30 = vld [vmem:[#allocation85_spill] sm:$0xff]  ;;  %v7746_v59 = vld [vmem:[#allocation132_spill] sm:$0xff] }
 0x1a4   :  { %v968_v1 = vmul.f32 %v7725_v32, %v7741_v7  ;;  %v5459_v51 = vsub.f32 %v1004_v21, %v1177_v52  ;;  %v2179_v20 = vunpack.i.h.bf16 %v5329_v11  ;;  %v2178_v45 = vunpack.i.l.bf16 %v5329_v11  ;;  %v7747_v39 = vld [vmem:[#allocation84_spill] sm:$0xff] }
 0x1a5   :  { %7738 = vst [vmem:[#allocation114_spill] sm:$0xff] %v5451_v42  ;;  %v5461_v17 = vsub.f32 %v1008_v50, %v1181_v0  ;;  %v995_v49 = vsub.f32 %v7744_v38, %v963_v16  ;;  %v996_v34 = vsub.f32 %v7745_v30, %v964_v31  ;;  %v999_v53 = vsub.f32 %v7746_v59, %v967_v43  ;;  %v1458_v43 = vld [vmem:[#allocation5 + $0xc0] sm:$0xff]  ;;  %v5487_v38 = vpop.permute.xlu1 %2211 }
 0x1a6   :  { %7739 = vst [vmem:[#allocation119_spill] sm:$0xff] %v5453_v47  ;;  %v1000_v8 = vsub.f32 %v7747_v39, %v968_v1  ;;  %v1090_v50 = vsel %vm597_vm7, %v7748_v36, %v2179_v20  ;;  %v7749_v21 = vunpack.i.l.bf16 %v4820_v46  ;;  %v7750_v52 = vunpack.i.l.bf16 %v4943_v25  ;;  %v1460_v1 = vld [vmem:[#allocation5 + $0xd0] sm:$0xff] }
 0x1a7   :  { %7742 = vst [vmem:[#allocation47_spill] sm:$0xff] %v5459_v51  ;;  %v7751_v16 = vunpack.i.h.bf16 %v4943_v25  ;;  %v1127_v46 = vsel %vm3829_vm13, %v7740_v10, %v1090_v50  ;;  %v7758_v50 = vld [vmem:[#allocation49_spill] sm:$0xff] }
 0x1a8   :  { %7743 = vst [vmem:[#allocation134_spill] sm:$0xff] %v5461_v17  ;;  %v1089_v11 = vsel %vm597_vm7, %v7749_v21, %v2178_v45  ;;  %v1113_v0 = vsel %vm597_vm7, %v2178_v45, %v7750_v52  ;;  %v1172_v30 = vmul.f32 %v5323_v13, %v1127_v46  ;;  %v5509_v21 = vunpack.c.h.bf16 %v1458_v43  ;;  %v7756_v46 = vld [vmem:[#allocation48_spill] sm:$0xff]  ;;  %v7834_v47 = vld [vmem:[#allocation45_spill] sm:$0xff] }
 0x1a9   :  { %v1114_v31 = vsel %vm597_vm7, %v2179_v20, %v7751_v16  ;;  %v1123_v36 = vsel %vm3829_vm13, %v7736_v62, %v1089_v11  ;;  %v1124_v45 = vsel %vm3499_vm9, %v7737_v23, %v1113_v0  ;;  %v5501_v20 = vpop.permute.xlu0 %2206  ;;  %v5511_v23 = vunpack.c.h.bf16 %v1460_v1  ;;  %v7827_v17 = vld [vmem:[#allocation140_spill] sm:$0xff] }
 0x1aa   :  { %v1128_v25 = vsel %vm3499_vm9, %v7741_v7, %v1114_v31  ;;  %v1168_v59 = vmul.f32 %v5320_v26, %v1123_v36  ;;  %v1169_v10 = vmul.f32 %v7734_v19, %v1124_v45  ;;  %v5517_v52 = vsub.f32 %v999_v53, %v1172_v30  ;;  %v7757_v45 = vld [vmem:[#allocation68_spill] sm:$0xff] }
 0x1ab   :  { %v1173_v39 = vmul.f32 %v7735_v6, %v1128_v25  ;;  %v6940_v16 = vunpack.i.h.bf16 %v5403_v37  ;;  %v6944_v31 = vunpack.i.l.bf16 %v5403_v37  ;;  %v987_v36 = vmul.f32 %v5302_v12, %v7756_v46 }
 0x1ac   :  { %v5513_v11 = vsub.f32 %v995_v49, %v1168_v59  ;;  %v5515_v7 = vsub.f32 %v996_v34, %v1169_v10  ;;  %7754 = vst [vmem:[#allocation61_spill] sm:$0xff] %v5517_v52  ;;  %v988_v25 = vmul.f32 %v7722_v54, %v7757_v45  ;;  %v991_v49 = vmul.f32 %v5305_v44, %v7758_v50  ;;  %v7759_v59 = vld [vmem:[#allocation69_spill] sm:$0xff]  ;;  %v7762_v54 = vld [vmem:[#allocation15_spill] sm:$0xff]  ;;  %v7845_v52 = vld [vmem:[#allocation106_spill] sm:$0xff] }
 0x1ad   :  { %v5519_v0 = vsub.f32 %v1000_v8, %v1173_v39  ;;  %v992_v34 = vmul.f32 %v7725_v32, %v7759_v59  ;;  %v2194_v53 = vunpack.i.h.bf16 %v5409_v55  ;;  %v2193_v8 = vunpack.i.l.bf16 %v5409_v55  ;;  %v7763_v39 = vld [vmem:[#allocation112_spill] sm:$0xff] }
 0x1ae   :  { %7752 = vst [vmem:[#allocation56_spill] sm:$0xff] %v5513_v11  ;;  %v7760_v30 = vunpack.i.h.bf16 %v5229_v41  ;;  %v7761_v10 = vunpack.i.l.bf16 %v5229_v41  ;;  %v1019_v32 = vsub.f32 %v7762_v54, %v987_v36  ;;  %v1020_v62 = vsub.f32 %v7763_v39, %v988_v25  ;;  %v7846_v11 = vld [vmem:[#allocation129_spill] sm:$0xff] }
 0x1af   :  { %7753 = vst [vmem:[#allocation13_spill] sm:$0xff] %v5515_v7  ;;  %v7768_v7 = vld [vmem:[#allocation64_spill] sm:$0xff] }
 0x1b0   :  { %7755 = vst [vmem:[#allocation12_spill] sm:$0xff] %v5519_v0  ;;  %v1410_v12 = vsel %vm311_vm2, %v6940_v16, %v7760_v30  ;;  %v1409_v44 = vsel %vm311_vm2, %v6944_v31, %v7761_v10  ;;  %v7766_v0 = vld [vmem:[#allocation125_spill] sm:$0xff]  ;;  %v7767_v30 = vunpack.i.h.bf16 %v4922_v22  ;;  %v1023_v3 = vsub.f32 %v7768_v7, %v991_v49 }
 0x1b1   :  { %v1430_v27 = vsel %vm2981_vm4, %v7764_v63, %v1410_v12  ;;  %v1426_v5 = vsel %vm2981_vm4, %v7766_v0, %v1409_v44  ;;  %v7771_v12 = vld [vmem:[#allocation133_spill] sm:$0xff]  ;;  %v5568_v44 = vpop.permute.xlu2 %2276  ;;  %v7774_v49 = vunpack.i.h.bf16 %v5063_v35  ;;  %v7796_v63 = vld [vmem:[#allocation136_spill] sm:$0xff]  ;;  %v1535_v0 = vld [vmem:[#allocation5 + $0xe0] sm:$0xff] }
 0x1b2   :  { %v1096_v16 = vsel %vm597_vm7, %v7767_v30, %v2194_v53  ;;  %v5559_v10 = vmul.f32 %v5511_v23, %v1430_v27  ;;  %v5562_v36 = vmul.f32 %v5509_v21, %v1426_v5  ;;  %v1024_v54 = vsub.f32 %v7771_v12, %v992_v34  ;;  %v1461_v34 = vld [vmem:[#allocation5 + $0xd8] sm:$0xff] }
 0x1b3   :  { %v1151_v25 = vsel %vm3829_vm13, %v7758_v50, %v1096_v16  ;;  %v7772_v30 = vunpack.i.l.bf16 %v4922_v22  ;;  %v7773_v27 = vunpack.i.l.bf16 %v5063_v35  ;;  %v1120_v50 = vsel %vm597_vm7, %v2194_v53, %v7774_v49  ;;  %v2227_v16 = vpop.permute.xlu1 %2226 }
 0x1b4   :  { %7769 = vst [vmem:[#allocation60_spill] sm:$0xff] %v5559_v10  ;;  %v1196_v39 = vmul.f32 %v5323_v13, %v1151_v25  ;;  %v5593_v25 = vpop.permute.xlu0 %2221  ;;  %v1152_v35 = vsel %vm3499_vm9, %v7759_v59, %v1120_v50  ;;  %v5603_v49 = vunpack.c.l.bf16 %v1458_v43  ;;  %v6945_v59 = vunpack.i.l.bf16 %v5469_v61 }
 0x1b5   :  { %7770 = vst [vmem:[#allocation145_spill] sm:$0xff] %v5562_v36  ;;  %v1095_v7 = vsel %vm597_vm7, %v7772_v30, %v2193_v8  ;;  %v1119_v5 = vsel %vm597_vm7, %v2193_v8, %v7773_v27  ;;  %v1197_v27 = vmul.f32 %v7735_v6, %v1152_v35  ;;  %v6947_v6 = vunpack.i.l.bf16 %v5487_v38 }
 0x1b6   :  { %v1147_v13 = vsel %vm3829_vm13, %v7756_v46, %v1095_v7  ;;  %v1148_v8 = vsel %vm3499_vm9, %v7757_v45, %v1119_v5  ;;  %v5600_v30 = vsub.f32 %v1023_v3, %v1196_v39  ;;  %v5605_v46 = vunpack.c.l.bf16 %v1460_v1 }
 0x1b7   :  { %v1192_v53 = vmul.f32 %v5320_v26, %v1147_v13  ;;  %v1193_v12 = vmul.f32 %v7734_v19, %v1148_v8  ;;  %v6946_v45 = vunpack.i.h.bf16 %v5469_v61  ;;  %v6943_v26 = vunpack.i.h.bf16 %v5487_v38 }
 0x1b8   :  { %7775 = vst [vmem:[#allocation144_spill] sm:$0xff] %v5600_v30  ;;  %v5614_v50 = vsub.f32 %v1024_v54, %v1197_v27  ;;  %v7777_v3 = vunpack.i.h.bf16 %v5147_v18  ;;  %v7778_v1 = vunpack.i.l.bf16 %v5147_v18  ;;  %v7781_v13 = vunpack.i.h.bf16 %v5313_v56 }
 0x1b9   :  { %v5608_v7 = vsub.f32 %v1019_v32, %v1192_v53  ;;  %v5610_v5 = vsub.f32 %v1020_v62, %v1193_v12  ;;  %v7779_v32 = vld [vmem:[#allocation73_spill] sm:$0xff]  ;;  %v1459_v53 = vld [vmem:[#allocation5 + $0xc8] sm:$0xff]  ;;  %v7784_v22 = vunpack.i.l.bf16 %v5313_v56  ;;  %v2223_v40 = vunpack.i.l.bf16 %v5593_v25 }
 0x1ba   :  { %v1420_v19 = vsel %vm311_vm2, %v6946_v45, %v7777_v3  ;;  %v1419_v62 = vsel %vm311_vm2, %v6945_v59, %v7778_v1  ;;  %v1416_v8 = vsel %vm311_vm2, %v6943_v26, %v7781_v13  ;;  %v7782_v12 = vld [vmem:[#allocation72_spill] sm:$0xff]  ;;  %v2228_v45 = vunpack.i.l.bf16 %v2227_v16 }
 0x1bb   :  { %7776 = vst [vmem:[#allocation143_spill] sm:$0xff] %v5608_v7  ;;  %v1437_v39 = vsel %vm3057_vm5, %v7779_v32, %v1420_v19  ;;  %v1433_v27 = vsel %vm3057_vm5, %v7782_v12, %v1419_v62  ;;  %v7783_v1 = vld [vmem:[#allocation20_spill] sm:$0xff]  ;;  %v1415_v13 = vsel %vm311_vm2, %v6947_v6, %v7784_v22  ;;  %v5671_v6 = vunpack.c.l.bf16 %v1459_v53 }
 0x1bc   :  { %v5644_v3 = vmul.f32 %v5605_v46, %v1437_v39  ;;  %v1454_v19 = vsel %vm2981_vm4, %v7783_v1, %v1416_v8  ;;  %v5656_v26 = vmul.f32 %v5603_v49, %v1433_v27  ;;  %v7786_v39 = vld [vmem:[#allocation117_spill] sm:$0xff]  ;;  %v7787_v59 = vld [vmem:[#allocation92_spill] sm:$0xff]  ;;  %v5673_v27 = vpop.permute.xlu2 %2291  ;;  %v5679_v1 = vunpack.c.l.bf16 %v1461_v34  ;;  %v5685_v10 = vpop.permute.xlu0 %2236 }
 0x1bd   :  { %v5659_v62 = vmul.f32 %v5511_v23, %v1454_v19  ;;  %v1450_v31 = vsel %vm2981_vm4, %v7786_v39, %v1415_v13  ;;  %v7789_v19 = vld [vmem:[#allocation103_spill] sm:$0xff]  ;;  %v2229_v8 = vunpack.i.h.bf16 %v2227_v16  ;;  %v2242_v39 = vpop.permute.xlu1 %2241  ;;  %v2224_v22 = vunpack.i.h.bf16 %v5593_v25 }
 0x1be   :  { %v5668_v35 = vmul.f32 %v5509_v21, %v1450_v31  ;;  %v7791_v13 = vunpack.i.h.bf16 %v5501_v20  ;;  %v7792_v31 = vld [vmem:[#allocation98_spill] sm:$0xff]  ;;  %v1405_v36 = vsel %vm311_vm2, %v2228_v45, %v7794_v60  ;;  %v7799_v16 = vld [vmem:[#allocation43_spill] sm:$0xff]  ;;  %v2243_v15 = vunpack.i.l.bf16 %v2242_v39 }
 0x1bf   :  { %7785 = vst [vmem:[#allocation97_spill] sm:$0xff] %v5659_v62  ;;  %v1406_v43 = vsel %vm311_vm2, %v2229_v8, %v7790_v24  ;;  %v7795_v24 = vunpack.i.l.bf16 %v5501_v20  ;;  %v1443_v60 = vsel %vm2941_vm3, %v7799_v16, %v1405_v36  ;;  %v7806_v16 = vld [vmem:[#allocation135_spill] sm:$0xff] }
 0x1c0   :  { %7788 = vst [vmem:[#allocation109_spill] sm:$0xff] %v5668_v35  ;;  %v1414_v62 = vsel %vm311_vm2, %v7791_v13, %v2229_v8  ;;  %v1447_v25 = vsel %vm2941_vm3, %v7792_v31, %v1406_v43 }
 0x1c1   :  { %v1413_v58 = vsel %vm311_vm2, %v7795_v24, %v2228_v45  ;;  %v1446_v8 = vsel %vm2981_vm4, %v7796_v63, %v1414_v62  ;;  %v5712_v13 = vmul.f32 %v5679_v1, %v1447_v25  ;;  %v5727_v24 = vmul.f32 %v5671_v6, %v1443_v60 }
 0x1c2   :  { %v1442_v43 = vsel %vm2981_vm4, %v7798_v4, %v1413_v58  ;;  %v5721_v31 = vmul.f32 %v5511_v23, %v1446_v8  ;;  %v7803_v62 = vunpack.i.h.bf16 %v5147_v18  ;;  %v7804_v58 = vunpack.i.l.bf16 %v5147_v18 }
 0x1c3   :  { %7797 = vst [vmem:[#allocation17_spill] sm:$0xff] %v5712_v13  ;;  %v5724_v45 = vmul.f32 %v5509_v21, %v1442_v43  ;;  %v7805_v43 = vld [vmem:[#allocation137_spill] sm:$0xff]  ;;  %v5757_v8 = vunpack.c.h.bf16 %v1459_v53  ;;  %v5759_v13 = vunpack.c.h.bf16 %v1461_v34  ;;  %v7808_v34 = vunpack.i.l.bf16 %v5469_v61 }
 0x1c4   :  { %7800 = vst [vmem:[#allocation55_spill] sm:$0xff] %v5721_v31  ;;  %v1412_v25 = vsel %vm311_vm2, %v7803_v62, %v2224_v22  ;;  %v1411_v63 = vsel %vm311_vm2, %v7804_v58, %v2223_v40  ;;  %v2239_v62 = vunpack.i.h.bf16 %v5685_v10  ;;  %v7812_v31 = vld [vmem:[#allocation118_spill] sm:$0xff] }
 0x1c5   :  { %7801 = vst [vmem:[#allocation66_spill] sm:$0xff] %v5724_v45  ;;  %v1438_v60 = vsel %vm2981_vm4, %v7805_v43, %v1412_v25  ;;  %v1434_v4 = vsel %vm2981_vm4, %v7806_v16, %v1411_v63  ;;  %v2244_v25 = vunpack.i.h.bf16 %v2242_v39  ;;  %v1395_v53 = vsel %vm311_vm2, %v2243_v15, %v7808_v34  ;;  %v2257_v55 = vpop.permute.xlu1 %2256  ;;  %v7813_v34 = vld [vmem:[#allocation42_spill] sm:$0xff]  ;;  %v7836_v45 = vld [vmem:[#allocation147_spill] sm:$0xff] }
 0x1c6   :  { %7802 = vst [vmem:[#allocation94_spill] sm:$0xff] %v5727_v24  ;;  %v5752_v58 = vmul.f32 %v5511_v23, %v1438_v60  ;;  %v5755_v36 = vmul.f32 %v5509_v21, %v1434_v4  ;;  %v2238_v23 = vunpack.i.l.bf16 %v5685_v10  ;;  %v5767_v60 = vpop.permute.xlu2 %2306  ;;  %v7807_v4 = vunpack.i.h.bf16 %v5469_v61  ;;  %v7809_v10 = vld [vmem:[#allocation120_spill] sm:$0xff] }
 0x1c7   :  { %v1403_v39 = vsel %vm311_vm2, %v2223_v40, %v2243_v15  ;;  %v1404_v18 = vsel %vm311_vm2, %v2224_v22, %v2244_v25  ;;  %v1436_v61 = vsel %vm3191_vm6, %v7812_v31, %v1395_v53  ;;  %v2252_v15 = vpop.permute.xlu0 %2251  ;;  %v2259_v31 = vunpack.i.h.bf16 %v2257_v55 }
 0x1c8   :  { %v1396_v21 = vsel %vm311_vm2, %v2244_v25, %v7807_v4  ;;  %v1435_v4 = vsel %vm2941_vm3, %v7811_v28, %v1403_v39  ;;  %v1439_v40 = vsel %vm2941_vm3, %v7813_v34, %v1404_v18  ;;  %v7819_v18 = vunpack.i.l.bf16 %v5229_v41  ;;  %v7821_v28 = vld [vmem:[#allocation115_spill] sm:$0xff] }
 0x1c9   :  { %v1440_v24 = vsel %vm3191_vm6, %v7809_v10, %v1396_v21  ;;  %v5797_v25 = vmul.f32 %v5671_v6, %v1435_v4  ;;  %v5800_v21 = vmul.f32 %v5757_v8, %v1436_v61  ;;  %v5803_v39 = vmul.f32 %v5679_v1, %v1439_v40 }
 0x1ca   :  { %v5794_v22 = vmul.f32 %v5759_v13, %v1440_v24  ;;  %v7818_v10 = vunpack.i.h.bf16 %v5229_v41  ;;  %v1401_v24 = vsel %vm311_vm2, %v7819_v18, %v2238_v23  ;;  %v7820_v41 = vld [vmem:[#allocation46_spill] sm:$0xff]  ;;  %v2258_v9 = vunpack.i.l.bf16 %v2257_v55 }
 0x1cb   :  { %7815 = vst [vmem:[#allocation52_spill] sm:$0xff] %v5797_v25  ;;  %v1427_v4 = vsel %vm2941_vm3, %v7821_v28, %v1401_v24  ;;  %v2254_v34 = vunpack.i.h.bf16 %v2252_v15  ;;  %v7825_v55 = vunpack.i.h.bf16 %v5403_v37 }
 0x1cc   :  { %7814 = vst [vmem:[#allocation78_spill] sm:$0xff] %v5794_v22  ;;  %v1402_v53 = vsel %vm311_vm2, %v7818_v10, %v2239_v62  ;;  %v5833_v40 = vmul.f32 %v5671_v6, %v1427_v4  ;;  %v1393_v10 = vsel %vm311_vm2, %v2238_v23, %v2258_v9  ;;  %v7824_v22 = vunpack.i.l.bf16 %v5403_v37  ;;  %v7826_v23 = vld [vmem:[#allocation86_spill] sm:$0xff] }
 0x1cd   :  { %7816 = vst [vmem:[#allocation67_spill] sm:$0xff] %v5800_v21  ;;  %v1431_v18 = vsel %vm2941_vm3, %v7820_v41, %v1402_v53  ;;  %v2253_v21 = vunpack.i.l.bf16 %v2252_v15  ;;  %v1394_v53 = vsel %vm311_vm2, %v2239_v62, %v2259_v31  ;;  %v1428_v51 = vsel %vm3191_vm6, %v7827_v17, %v1393_v10 }
 0x1ce   :  { %7817 = vst [vmem:[#allocation121_spill] sm:$0xff] %v5803_v39  ;;  %v5830_v61 = vmul.f32 %v5679_v1, %v1431_v18  ;;  %v1417_v24 = vsel %vm311_vm2, %v2258_v9, %v7824_v22  ;;  %v1418_v18 = vsel %vm311_vm2, %v2259_v31, %v7825_v55  ;;  %v7828_v9 = vld [vmem:[#allocation88_spill] sm:$0xff]  ;;  %v7829_v22 = vld [vmem:[#allocation142_spill] sm:$0xff]  ;;  %v5867_v15 = vmul.f32 %v5757_v8, %v1428_v51  ;;  %v5869_v4 = vpop.permute.xlu2 %2321  ;;  %v2272_v51 = vpop.permute.xlu1 %2271 }
 0x1cf   :  { %7823 = vst [vmem:[#allocation33_spill] sm:$0xff] %v5833_v40  ;;  %v1425_v62 = vsel %vm3057_vm5, %v7826_v23, %v1417_v24  ;;  %v1429_v37 = vsel %vm3057_vm5, %v7828_v9, %v1418_v18  ;;  %v1432_v31 = vsel %vm3191_vm6, %v7829_v22, %v1394_v53  ;;  %v7832_v18 = vunpack.i.h.bf16 %v5313_v56 }
 0x1d0   :  { %7822 = vst [vmem:[#allocation32_spill] sm:$0xff] %v5830_v61  ;;  %v5864_v55 = vmul.f32 %v5603_v49, %v1425_v62  ;;  %v5872_v24 = vmul.f32 %v5605_v46, %v1429_v37  ;;  %v5875_v10 = vmul.f32 %v5759_v13, %v1432_v31  ;;  %v7833_v53 = vunpack.i.l.bf16 %v5313_v56  ;;  %v7835_v37 = vld [vmem:[#allocation13_spill] sm:$0xff]  ;;  %v2267_v61 = vpop.permute.xlu0 %2266  ;;  %v7838_v56 = vld [vmem:[#allocation35_spill] sm:$0xff] }
 0x1d1   :  { %7830 = vst [vmem:[#allocation93_spill] sm:$0xff] %v5869_v4  ;;  %v1408_v39 = vsel %vm311_vm2, %v7832_v18, %v2254_v34  ;;  %v2273_v35 = vunpack.i.l.bf16 %v2272_v51  ;;  %v2268_v40 = vunpack.i.l.bf16 %v2267_v61 }
 0x1d2   :  { %7831 = vst [vmem:[#allocation81_spill] sm:$0xff] %v5872_v24  ;;  %v1407_v62 = vsel %vm311_vm2, %v7833_v53, %v2253_v21  ;;  %v1455_v31 = vsel %vm2941_vm3, %v7836_v45, %v1408_v39  ;;  %v7839_v53 = vld [vmem:[#allocation12_spill] sm:$0xff]  ;;  %v2274_v45 = vunpack.i.h.bf16 %v2272_v51  ;;  %v7843_v51 = vunpack.i.h.bf16 %v5487_v38  ;;  %v7844_v39 = vld [vmem:[#allocation127_spill] sm:$0xff] }
 0x1d3   :  { %v1451_v18 = vsel %vm2941_vm3, %v7837_v48, %v1407_v62  ;;  %v5900_v25 = vmul.f32 %v5679_v1, %v1455_v31  ;;  %v2269_v48 = vunpack.i.h.bf16 %v2267_v61  ;;  %v1399_v1 = vsel %vm311_vm2, %v2253_v21, %v2273_v35 }
 0x1d4   :  { %v5903_v42 = vmul.f32 %v5671_v6, %v1451_v18  ;;  %v1400_v6 = vsel %vm311_vm2, %v2254_v34, %v2274_v45  ;;  %v7842_v31 = vunpack.i.l.bf16 %v5487_v38  ;;  %v1424_v62 = vsel %vm311_vm2, %v2274_v45, %v7843_v51  ;;  %v8017_v33 = vld [vmem:[#allocation67_spill] sm:$0xff] }
 0x1d5   :  { %7840 = vst [vmem:[#allocation148_spill] sm:$0xff] %v5900_v25  ;;  %v1452_v21 = vsel %vm3191_vm6, %v7845_v52, %v1399_v1  ;;  %v1453_v34 = vsel %vm3057_vm5, %v7846_v11, %v1424_v62  ;;  %v7847_v25 = vld [vmem:[#allocation107_spill] sm:$0xff]  ;;  %v7850_v1 = vunpack.i.h.bf16 %v5395_v29  ;;  %v7851_v51 = vunpack.i.l.bf16 %v5395_v29  ;;  %v5971_v11 = vld [vmem:[#allocation5 + $0x108] sm:$0xff] }
 0x1d6   :  { %7841 = vst [vmem:[#allocation74_spill] sm:$0xff] %v5903_v42  ;;  %v1423_v18 = vsel %vm311_vm2, %v2273_v35, %v7842_v31  ;;  %v1456_v35 = vsel %vm3191_vm6, %v7847_v25, %v1400_v6  ;;  %v5939_v45 = vmul.f32 %v5757_v8, %v1452_v21  ;;  %v5942_v31 = vmul.f32 %v5605_v46, %v1453_v34 }
 0x1d7   :  { %v1449_v61 = vsel %vm3057_vm5, %v7844_v39, %v1423_v18  ;;  %v5945_v18 = vmul.f32 %v5759_v13, %v1456_v35  ;;  %v1398_v62 = vsel %vm311_vm2, %v7850_v1, %v2269_v48  ;;  %v1397_v6 = vsel %vm311_vm2, %v7851_v51, %v2268_v40  ;;  %7856 = vst [vmem:[#allocation82_spill] sm:$0xff] %v5971_v11  ;;  %v7860_v1 = vld [vmem:[#allocation108_spill] sm:$0xff] }
 0x1d8   :  { %v5936_v38 = vmul.f32 %v5603_v49, %v1449_v61  ;;  %7849 = vst [vmem:[#allocation124_spill] sm:$0xff] %v5942_v31  ;;  %v7852_v61 = vunpack.i.l.bf16 %v5501_v20  ;;  %v7853_v34 = vunpack.i.h.bf16 %v5501_v20  ;;  %v5975_v20 = vpop.permute.xlu2 %2336  ;;  %v1444_v7 = vsel %vm3191_vm6, %v7860_v1, %v1397_v6  ;;  %v7861_v31 = vld [vmem:[#allocation101_spill] sm:$0xff] }
 0x1d9   :  { %v5994_v30 = vmul.f32 %v5757_v8, %v1444_v7  ;;  %v6015_v7 = vld [vmem:[#allocation5 + $0x110] sm:$0xff]  ;;  %v7874_v28 = vsub.f32 %v7839_v53, %v5875_v10  ;;  %v7876_v6 = vunpack.i.l.bf16 %v5975_v20  ;;  %v7878_v24 = vunpack.i.h.bf16 %v5975_v20 }
 0x1da   :  { %7848 = vst [vmem:[#allocation16_spill] sm:$0xff] %v5936_v38  ;;  %v1421_v21 = vsel %vm311_vm2, %v2268_v40, %v7852_v61  ;;  %v1422_v35 = vsel %vm311_vm2, %v2269_v48, %v7853_v34  ;;  %v5973_v40 = vld [vmem:[#allocation5 + $0x118] sm:$0xff]  ;;  %v7858_v61 = vld [vmem:[#allocation89_spill] sm:$0xff]  ;;  %v7859_v34 = vld [vmem:[#allocation100_spill] sm:$0xff]  ;;  %v6039_v39 = vunpack.c.l.bf16 %v6015_v7 }
 0x1db   :  { %7857 = vst [vmem:[#allocation31_spill] sm:$0xff] %v5973_v40  ;;  %v1448_v48 = vsel %vm3191_vm6, %v7858_v61, %v1398_v62  ;;  %v1441_v42 = vsel %vm3057_vm5, %v7859_v34, %v1421_v21  ;;  %v1445_v51 = vsel %vm3057_vm5, %v7861_v31, %v1422_v35  ;;  %v5997_v61 = vld [vmem:[#allocation5 + $0xe8] sm:$0xff]  ;;  %v5999_v21 = vld [vmem:[#allocation5 + $0xf8] sm:$0xff]  ;;  %v6031_v35 = vunpack.c.l.bf16 %v1535_v0 }
 0x1dc   :  { %v5990_v29 = vmul.f32 %v5759_v13, %v1448_v48  ;;  %v1486_v38 = vmul.f32 %v5603_v49, %v1441_v42  ;;  %7863 = vst [vmem:[#allocation123_spill] sm:$0xff] %v5994_v30  ;;  %v1490_v62 = vmul.f32 %v5605_v46, %v1445_v51  ;;  %v6002_v63 = vunpack.c.h.bf16 %v5997_v61  ;;  %v6013_v49 = vld [vmem:[#allocation5 + $0x100] sm:$0xff]  ;;  %v7868_v46 = vld [vmem:[#allocation70_spill] sm:$0xff]  ;;  %v7870_v51 = vld [vmem:[#allocation105_spill] sm:$0xff] }
 0x1dd   :  { %7864 = vst [vmem:[#allocation50_spill] sm:$0xff] %v5997_v61  ;;  %v6005_v54 = vunpack.c.h.bf16 %v5999_v21  ;;  %v6008_v13 = vunpack.c.h.bf16 %v5971_v11  ;;  %v6011_v42 = vunpack.c.h.bf16 %v5973_v40  ;;  %v7875_v30 = vunpack.i.l.bf16 %v5568_v44 }
 0x1de   :  { %7862 = vst [vmem:[#allocation122_spill] sm:$0xff] %v5990_v29  ;;  %v1518_v8 = vsub.f32 %v7868_v46, %v1486_v38  ;;  %v1522_v48 = vsub.f32 %v7870_v51, %v1490_v62  ;;  %v1550_v11 = vmul.f32 %v6002_v63, %v7827_v17  ;;  %v1537_v38 = vld [vmem:[#allocation5 + $0xf0] sm:$0xff]  ;;  %v6029_v46 = vpop.permute.xlu1 %2286  ;;  %v6036_v51 = vunpack.c.l.bf16 %v6013_v49 }
 0x1df   :  { %7865 = vst [vmem:[#allocation130_spill] sm:$0xff] %v5999_v21  ;;  %v1554_v40 = vmul.f32 %v6005_v54, %v7829_v22  ;;  %v6033_v62 = vunpack.c.l.bf16 %v1537_v38  ;;  %v7873_v29 = vsub.f32 %v7835_v37, %v5867_v15  ;;  %v1699_v21 = vsel %vm597_vm7, %v7876_v6, %v7875_v30  ;;  %v6063_v15 = vpop.permute.xlu0 %2281 }
 0x1e0   :  { %7866 = vst [vmem:[#allocation141_spill] sm:$0xff] %v6008_v13  ;;  %v7877_v61 = vunpack.i.h.bf16 %v5568_v44  ;;  %v1563_v30 = vmul.f32 %v6031_v35, %v7859_v34  ;;  %v6089_v6 = vpop.permute.xlu2 %2351 }
 0x1e1   :  { %7867 = vst [vmem:[#allocation18_spill] sm:$0xff] %v6011_v42  ;;  %v6044_v41 = vsub.f32 %v7873_v29, %v1550_v11  ;;  %v6049_v1 = vsub.f32 %v7874_v28, %v1554_v40  ;;  %v1710_v28 = vsel %vm3499_vm9, %v7827_v17, %v1699_v21  ;;  %v1567_v37 = vmul.f32 %v6033_v62, %v7861_v31 }
 0x1e2   :  { %7872 = vst [vmem:[#allocation19_spill] sm:$0xff] %v6029_v46  ;;  %v1700_v11 = vsel %vm597_vm7, %v7878_v24, %v7877_v61  ;;  %v6076_v53 = vmul.f32 %v6008_v13, %v1710_v28  ;;  %v6990_v29 = vunpack.i.h.bf16 %v6029_v46  ;;  %v6991_v17 = vunpack.i.l.bf16 %v6029_v46 }
 0x1e3   :  { %7879 = vst [vmem:[#allocation79_spill] sm:$0xff] %v6063_v15  ;;  %v1714_v10 = vsel %vm3499_vm9, %v7829_v22, %v1700_v11  ;;  %v6083_v40 = vsub.f32 %v1518_v8, %v1563_v30  ;;  %v6085_v61 = vsub.f32 %v1522_v48, %v1567_v37  ;;  %v7883_v48 = vunpack.i.l.bf16 %v5767_v60 }
 0x1e4   :  { %v6079_v24 = vmul.f32 %v6011_v42, %v1714_v10  ;;  %v7882_v10 = vunpack.i.h.bf16 %v5767_v60  ;;  %v1574_v22 = vmul.f32 %v6002_v63, %v7845_v52  ;;  %v6135_v46 = vunpack.c.h.bf16 %v1535_v0 }
 0x1e5   :  { %7880 = vst [vmem:[#allocation77_spill] sm:$0xff] %v6083_v40  ;;  %v1695_v30 = vsel %vm597_vm7, %v6991_v17, %v7883_v48  ;;  %v7892_v0 = vunpack.i.h.bf16 %v6089_v6  ;;  %v7893_v48 = vsub.f32 %v7789_v19, %v5656_v26  ;;  %v7898_v26 = vunpack.i.l.bf16 %v5869_v4 }
 0x1e6   :  { %7881 = vst [vmem:[#allocation21_spill] sm:$0xff] %v6085_v61  ;;  %v1696_v8 = vsel %vm597_vm7, %v6990_v29, %v7882_v10  ;;  %v1723_v28 = vsel %vm3399_vm8, %v7859_v34, %v1695_v30  ;;  %v1578_v10 = vmul.f32 %v6005_v54, %v7847_v25  ;;  %v7888_v30 = vsub.f32 %v5614_v50, %v5945_v18 }
 0x1e7   :  { %v1727_v11 = vsel %vm3399_vm8, %v7861_v31, %v1696_v8  ;;  %v6121_v21 = vmul.f32 %v6036_v51, %v1723_v28  ;;  %v7887_v8 = vsub.f32 %v5610_v5, %v5939_v45  ;;  %v7889_v31 = vunpack.i.l.bf16 %v5673_v27 }
 0x1e8   :  { %v6118_v29 = vmul.f32 %v6039_v39, %v1727_v11  ;;  %v6133_v17 = vsub.f32 %v7888_v30, %v1578_v10  ;;  %v6137_v11 = vunpack.c.h.bf16 %v1537_v38  ;;  %v7890_v5 = vunpack.i.l.bf16 %v6089_v6  ;;  %v2302_v38 = vpop.permute.xlu1 %2301 }
 0x1e9   :  { %7886 = vst [vmem:[#allocation83_spill] sm:$0xff] %v6121_v21  ;;  %v6128_v34 = vsub.f32 %v7887_v8, %v1574_v22  ;;  %v7891_v50 = vunpack.i.h.bf16 %v5673_v27  ;;  %v1555_v8 = vmul.f32 %v6031_v35, %v7782_v12  ;;  %v7924_v21 = vld [vmem:[#allocation61_spill] sm:$0xff] }
 0x1ea   :  { %7885 = vst [vmem:[#allocation22_spill] sm:$0xff] %v6118_v29  ;;  %v1705_v45 = vsel %vm597_vm7, %v7890_v5, %v7889_v31  ;;  %v1556_v31 = vmul.f32 %v6135_v46, %v7806_v16  ;;  %v7922_v29 = vld [vmem:[#allocation60_spill] sm:$0xff] }
 0x1eb   :  { %v1706_v18 = vsel %vm597_vm7, %v7892_v0, %v7891_v50  ;;  %v1734_v22 = vsel %vm3499_vm9, %v7845_v52, %v1705_v45  ;;  %v1559_v50 = vmul.f32 %v6033_v62, %v7779_v32  ;;  %v1560_v52 = vmul.f32 %v6137_v11, %v7805_v43 }
 0x1ec   :  { %v1738_v10 = vsel %vm3499_vm9, %v7847_v25, %v1706_v18  ;;  %v6166_v30 = vmul.f32 %v6008_v13, %v1734_v22  ;;  %v6176_v25 = vunpack.c.h.bf16 %v6013_v49  ;;  %v6179_v45 = vunpack.c.h.bf16 %v6015_v7 }
 0x1ed   :  { %v6169_v5 = vmul.f32 %v6011_v42, %v1738_v10  ;;  %v2304_v0 = vunpack.i.h.bf16 %v2302_v38  ;;  %v2303_v18 = vunpack.i.l.bf16 %v2302_v38  ;;  %v1587_v28 = vsub.f32 %v7893_v48, %v1555_v8 }
 0x1ee   :  { %v7894_v42 = vsub.f32 %v5411_v57, %v5755_v36  ;;  %v7895_v13 = vunpack.i.h.bf16 %v5869_v4  ;;  %v7896_v38 = vsub.f32 %v7787_v59, %v5644_v3  ;;  %v7897_v10 = vsub.f32 %v5413_v2, %v5752_v58  ;;  %v2297_v58 = vpop.permute.xlu0 %2296  ;;  %v7921_v4 = vld [vmem:[#allocation34_spill] sm:$0xff]  ;;  %v7975_v57 = vld [vmem:[#allocation89_spill] sm:$0xff] }
 0x1ef   :  { %v1685_v19 = vsel %vm597_vm7, %v2303_v18, %v7898_v26  ;;  %v7901_v59 = vunpack.i.h.bf16 %v6063_v15 }
 0x1f0   :  { %v1588_v49 = vsub.f32 %v7894_v42, %v1556_v31  ;;  %v1686_v7 = vsel %vm597_vm7, %v2304_v0, %v7895_v13  ;;  %v1591_v22 = vsub.f32 %v7896_v38, %v1559_v50  ;;  %v1592_v14 = vsub.f32 %v7897_v10, %v1560_v52 }
 0x1f1   :  { %v1720_v36 = vsel %vm3646_vm11, %v7805_v43, %v1686_v7  ;;  %v7900_v42 = vunpack.i.l.bf16 %v6063_v15  ;;  %v1694_v2 = vsel %vm597_vm7, %v7901_v59, %v2304_v0  ;;  %v1716_v3 = vsel %vm3646_vm11, %v7806_v16, %v1685_v19 }
 0x1f2   :  { %v1765_v48 = vmul.f32 %v6179_v45, %v1720_v36  ;;  %v1719_v8 = vsel %vm3399_vm8, %v7779_v32, %v1694_v2  ;;  %v1761_v31 = vmul.f32 %v6176_v25, %v1716_v3  ;;  %v1547_v16 = vmul.f32 %v6031_v35, %v7826_v23  ;;  %v7903_v36 = vld [vmem:[#allocation81_spill] sm:$0xff]  ;;  %v7908_v3 = vld [vmem:[#allocation130_spill] sm:$0xff] }
 0x1f3   :  { %v1693_v13 = vsel %vm597_vm7, %v7900_v42, %v2303_v18  ;;  %v1764_v52 = vmul.f32 %v6039_v39, %v1719_v8  ;;  %v1551_v0 = vmul.f32 %v6033_v62, %v7828_v9  ;;  %v2299_v7 = vunpack.i.h.bf16 %v2297_v58 }
 0x1f4   :  { %v1715_v43 = vsel %vm3399_vm8, %v7782_v12, %v1693_v13  ;;  %v1793_v18 = vsub.f32 %v1588_v49, %v1761_v31  ;;  %v1797_v10 = vsub.f32 %v1592_v14, %v1765_v48  ;;  %v2298_v12 = vunpack.i.l.bf16 %v2297_v58  ;;  %v7909_v31 = vld [vmem:[#allocation125_spill] sm:$0xff] }
 0x1f5   :  { %v1760_v50 = vmul.f32 %v6036_v51, %v1715_v43  ;;  %v1796_v26 = vsub.f32 %v1591_v22, %v1764_v52  ;;  %v7902_v32 = vsub.f32 %v7834_v47, %v5864_v55  ;;  %v7904_v42 = vsub.f32 %v7838_v56, %v7903_v36  ;;  %v7910_v52 = vld [vmem:[#allocation115_spill] sm:$0xff] }
 0x1f6   :  { %v7905_v59 = vunpack.i.h.bf16 %v5568_v44  ;;  %v7906_v49 = vunpack.i.l.bf16 %v5568_v44  ;;  %v6251_v47 = vunpack.c.l.bf16 %v7908_v3  ;;  %v2317_v44 = vpop.permute.xlu1 %2316 }
 0x1f7   :  { %v1792_v38 = vsub.f32 %v1587_v28, %v1760_v50  ;;  %v1579_v19 = vsub.f32 %v7902_v32, %v1547_v16  ;;  %v1583_v13 = vsub.f32 %v7904_v42, %v1551_v0  ;;  %v7907_v28 = vld [vmem:[#allocation50_spill] sm:$0xff]  ;;  %v1822_v58 = vpack.c.bf16 %v1797_v10, %v1796_v26  ;;  %v7914_v26 = vld [vmem:[#allocation31_spill] sm:$0xff] }
 0x1f8   :  { %v1692_v2 = vsel %vm597_vm7, %v7905_v59, %v2299_v7  ;;  %v1691_v14 = vsel %vm597_vm7, %v7906_v49, %v2298_v12  ;;  %v6248_v22 = vunpack.c.l.bf16 %v7907_v28  ;;  %v1548_v50 = vmul.f32 %v6135_v46, %v7909_v31  ;;  %v7911_v0 = vld [vmem:[#allocation126_spill] sm:$0xff] }
 0x1f9   :  { %v1820_v55 = vpack.c.bf16 %v1793_v18, %v1792_v38  ;;  %v1711_v56 = vsel %vm3399_vm8, %v7828_v9, %v1692_v2  ;;  %v1707_v48 = vsel %vm3399_vm8, %v7826_v23, %v1691_v14  ;;  %v1552_v18 = vmul.f32 %v6137_v11, %v7911_v0  ;;  %v7912_v9 = vld [vmem:[#allocation46_spill] sm:$0xff]  ;;  %1838 = vst [vmem:[#allocation7 + $0x30] sm:$0xff] %v1822_v58  ;;  %v7916_v14 = vld [vmem:[#allocation145_spill] sm:$0xff] }
 0x1fa   :  { %v1756_v43 = vmul.f32 %v6039_v39, %v1711_v56  ;;  %v1752_v8 = vmul.f32 %v6036_v51, %v1707_v48  ;;  %v1549_v16 = vmul.f32 %v6248_v22, %v7910_v52  ;;  %v1553_v10 = vmul.f32 %v6251_v47, %v7912_v9  ;;  %v7913_v38 = vld [vmem:[#allocation82_spill] sm:$0xff]  ;;  %v7919_v56 = vld [vmem:[#allocation33_spill] sm:$0xff] }
 0x1fb   :  { %1836 = vst [vmem:[#allocation7 + $0x20] sm:$0xff] %v1820_v55  ;;  %v6270_v23 = vunpack.c.l.bf16 %v7913_v38  ;;  %v6273_v32 = vunpack.c.l.bf16 %v7914_v26  ;;  %v2319_v59 = vunpack.i.h.bf16 %v2317_v44  ;;  %v2318_v2 = vunpack.i.l.bf16 %v2317_v44  ;;  %v7915_v49 = vld [vmem:[#allocation102_spill] sm:$0xff]  ;;  %v7918_v55 = vld [vmem:[#allocation56_spill] sm:$0xff] }
 0x1fc   :  { %v1784_v36 = vsub.f32 %v1579_v19, %v1752_v8  ;;  %v1788_v42 = vsub.f32 %v1583_v13, %v1756_v43  ;;  %v7917_v28 = vsub.f32 %v7915_v49, %v7916_v14  ;;  %v7920_v48 = vsub.f32 %v7918_v55, %v7919_v56  ;;  %v7925_v26 = vld [vmem:[#allocation32_spill] sm:$0xff] }
 0x1fd   :  { %v7923_v38 = vsub.f32 %v7921_v4, %v7922_v29  ;;  %v7926_v40 = vsub.f32 %v7924_v21, %v7925_v26  ;;  %v7927_v19 = vunpack.i.h.bf16 %v5975_v20  ;;  %v7928_v44 = vunpack.i.l.bf16 %v5975_v20  ;;  %v2312_v29 = vpop.permute.xlu0 %2311  ;;  %v7934_v26 = vld [vmem:[#allocation16_spill] sm:$0xff]  ;;  %v8020_v21 = vld [vmem:[#allocation78_spill] sm:$0xff] }
 0x1fe   :  { %v1580_v3 = vsub.f32 %v7917_v28, %v1548_v50  ;;  %v1581_v15 = vsub.f32 %v7920_v48, %v1549_v16  ;;  %v1683_v8 = vsel %vm597_vm7, %v2298_v12, %v2318_v2  ;;  %v1684_v4 = vsel %vm597_vm7, %v2299_v7, %v2319_v59 }
 0x1ff   :  { %v1584_v61 = vsub.f32 %v7923_v38, %v1552_v18  ;;  %v1585_v58 = vsub.f32 %v7926_v40, %v1553_v10  ;;  %v1676_v13 = vsel %vm597_vm7, %v2319_v59, %v7927_v19  ;;  %v1675_v43 = vsel %vm597_vm7, %v2318_v2, %v7928_v44  ;;  %v7930_v10 = vld [vmem:[#allocation127_spill] sm:$0xff]  ;;  %v7936_v44 = vld [vmem:[#allocation44_spill] sm:$0xff] }
 0x200   :  { %v1713_v40 = vsel %vm3829_vm13, %v7912_v9, %v1676_v13  ;;  %v1708_v50 = vsel %vm3646_vm11, %v7909_v31, %v1683_v8  ;;  %v1709_v20 = vsel %vm3829_vm13, %v7910_v52, %v1675_v43  ;;  %v1712_v12 = vsel %vm3646_vm11, %v7911_v0, %v1684_v4  ;;  %v7931_v31 = vld [vmem:[#allocation129_spill] sm:$0xff]  ;;  %v7933_v38 = vld [vmem:[#allocation139_spill] sm:$0xff] }
 0x201   :  { %v1758_v16 = vmul.f32 %v6273_v32, %v1713_v40  ;;  %v1753_v7 = vmul.f32 %v6176_v25, %v1708_v50  ;;  %v1754_v18 = vmul.f32 %v6270_v23, %v1709_v20  ;;  %v1757_v9 = vmul.f32 %v6179_v45, %v1712_v12  ;;  %v2332_v50 = vpop.permute.xlu1 %2331  ;;  %v7942_v12 = vld [vmem:[#allocation117_spill] sm:$0xff] }
 0x202   :  { %v1571_v59 = vmul.f32 %v6031_v35, %v7930_v10  ;;  %v1575_v2 = vmul.f32 %v6033_v62, %v7931_v31  ;;  %v2314_v49 = vunpack.i.h.bf16 %v2312_v29  ;;  %v2313_v52 = vunpack.i.l.bf16 %v2312_v29  ;;  %v7937_v35 = vld [vmem:[#allocation124_spill] sm:$0xff] }
 0x203   :  { %v1785_v14 = vsub.f32 %v1580_v3, %v1753_v7  ;;  %v1786_v28 = vsub.f32 %v1581_v15, %v1754_v18  ;;  %v1789_v55 = vsub.f32 %v1584_v61, %v1757_v9  ;;  %v1790_v0 = vsub.f32 %v1585_v58, %v1758_v16  ;;  %v7943_v16 = vld [vmem:[#allocation146_spill] sm:$0xff]  ;;  %v7945_v7 = vld [vmem:[#allocation147_spill] sm:$0xff] }
 0x204   :  { %v7932_v56 = vunpack.i.h.bf16 %v5673_v27  ;;  %v7935_v19 = vsub.f32 %v7933_v38, %v7934_v26  ;;  %v7938_v43 = vsub.f32 %v7936_v44, %v7937_v35  ;;  %v7939_v62 = vunpack.i.l.bf16 %v5673_v27  ;;  %v7956_v44 = vld [vmem:[#allocation148_spill] sm:$0xff] }
 0x205   :  { %v1816_v61 = vpack.c.bf16 %v1785_v14, %v1784_v36  ;;  %v7940_v3 = vsub.f32 %v6044_v41, %v6076_v53  ;;  %v1818_v4 = vpack.c.bf16 %v1789_v55, %v1788_v42  ;;  %v7941_v29 = vsub.f32 %v6049_v1, %v6079_v24  ;;  %v7944_v24 = vld [vmem:[#allocation20_spill] sm:$0xff]  ;;  %v7949_v14 = vld [vmem:[#allocation143_spill] sm:$0xff] }
 0x206   :  { %v1698_v48 = vsel %vm597_vm7, %v7932_v56, %v2314_v49  ;;  %v1603_v13 = vsub.f32 %v7935_v19, %v1571_v59  ;;  %v1607_v8 = vsub.f32 %v7938_v43, %v1575_v2  ;;  %v1697_v15 = vsel %vm597_vm7, %v7939_v62, %v2313_v52  ;;  %v7947_v59 = vld [vmem:[#allocation109_spill] sm:$0xff]  ;;  %v7952_v56 = vld [vmem:[#allocation40_spill] sm:$0xff] }
 0x207   :  { %v1817_v58 = vpack.c.bf16 %v7940_v3, %v1786_v28  ;;  %v1819_v40 = vpack.c.bf16 %v7941_v29, %v1790_v0  ;;  %v1735_v20 = vsel %vm3399_vm8, %v7931_v31, %v1698_v48  ;;  %v1731_v27 = vsel %vm3399_vm8, %v7930_v10, %v1697_v15  ;;  %1832 = vst [vmem:[#allocation7] sm:$0xff] %v1816_v61  ;;  %v7946_v10 = vld [vmem:[#allocation128_spill] sm:$0xff]  ;;  %v7950_v28 = vld [vmem:[#allocation74_spill] sm:$0xff]  ;;  %v7953_v48 = vld [vmem:[#allocation97_spill] sm:$0xff] }
 0x208   :  { %v1572_v36 = vmul.f32 %v6135_v46, %v7942_v12  ;;  %v1573_v41 = vmul.f32 %v6248_v22, %v7943_v16  ;;  %v1780_v53 = vmul.f32 %v6039_v39, %v1735_v20  ;;  %v1776_v1 = vmul.f32 %v6036_v51, %v1731_v27  ;;  %1834 = vst [vmem:[#allocation7 + $0x10] sm:$0xff] %v1818_v4  ;;  %v7955_v19 = vld [vmem:[#allocation144_spill] sm:$0xff]  ;;  %v7960_v27 = vld [vmem:[#allocation23_spill] sm:$0xff] }
 0x209   :  { %v1576_v42 = vmul.f32 %v6137_v11, %v7944_v24  ;;  %v1577_v18 = vmul.f32 %v6251_v47, %v7945_v7  ;;  %1833 = vst [vmem:[#allocation7 + $0x8] sm:$0xff] %v1817_v58  ;;  %v2334_v37 = vunpack.i.h.bf16 %v2332_v50  ;;  %v2333_v9 = vunpack.i.l.bf16 %v2332_v50  ;;  %v2327_v58 = vpop.permute.xlu0 %2326 }
 0x20a   :  { %v7948_v31 = vsub.f32 %v7946_v10, %v7947_v59  ;;  %v7951_v55 = vsub.f32 %v7949_v14, %v7950_v28  ;;  %v1808_v39 = vsub.f32 %v1603_v13, %v1776_v1  ;;  %v1812_v51 = vsub.f32 %v1607_v8, %v1780_v53  ;;  %1835 = vst [vmem:[#allocation7 + $0x18] sm:$0xff] %v1819_v40  ;;  %v7964_v10 = vld [vmem:[#allocation66_spill] sm:$0xff] }
 0x20b   :  { %v7954_v38 = vsub.f32 %v7952_v56, %v7953_v48  ;;  %v7957_v35 = vsub.f32 %v7955_v19, %v7956_v44  ;;  %v7958_v62 = vunpack.i.h.bf16 %v6089_v6  ;;  %v7959_v61 = vunpack.i.l.bf16 %v6089_v6  ;;  %v2347_v48 = vpop.permute.xlu1 %2346  ;;  %v7970_v19 = vld [vmem:[#allocation108_spill] sm:$0xff] }
 0x20c   :  { %v1604_v2 = vsub.f32 %v7948_v31, %v1572_v36  ;;  %v1605_v0 = vsub.f32 %v7951_v55, %v1573_v41  ;;  %v1689_v8 = vsel %vm597_vm7, %v2313_v52, %v2333_v9  ;;  %v1690_v3 = vsel %vm597_vm7, %v2314_v49, %v2334_v37 }
 0x20d   :  { %v1608_v26 = vsub.f32 %v7954_v38, %v1576_v42  ;;  %v1609_v43 = vsub.f32 %v7957_v35, %v1577_v18  ;;  %v1682_v15 = vsel %vm597_vm7, %v2334_v37, %v7958_v62  ;;  %v1681_v13 = vsel %vm597_vm7, %v2333_v9, %v7959_v61  ;;  %v7963_v9 = vld [vmem:[#allocation113_spill] sm:$0xff] }
 0x20e   :  { %v1737_v4 = vsel %vm3829_vm13, %v7945_v7, %v1682_v15  ;;  %v1732_v29 = vsel %vm3646_vm11, %v7942_v12, %v1689_v8  ;;  %v1733_v6 = vsel %vm3829_vm13, %v7943_v16, %v1681_v13  ;;  %v1736_v52 = vsel %vm3646_vm11, %v7944_v24, %v1690_v3  ;;  %v7961_v12 = vld [vmem:[#allocation136_spill] sm:$0xff]  ;;  %v7976_v8 = vld [vmem:[#allocation58_spill] sm:$0xff] }
 0x20f   :  { %v1782_v40 = vmul.f32 %v6273_v32, %v1737_v4  ;;  %v1777_v49 = vmul.f32 %v6176_v25, %v1732_v29  ;;  %v1778_v50 = vmul.f32 %v6270_v23, %v1733_v6  ;;  %v1781_v20 = vmul.f32 %v6179_v45, %v1736_v52  ;;  %v7977_v3 = vld [vmem:[#allocation94_spill] sm:$0xff]  ;;  %v7979_v6 = vld [vmem:[#allocation71_spill] sm:$0xff] }
 0x210   :  { %v1564_v36 = vmul.f32 %v6135_v46, %v7960_v27  ;;  %v1568_v41 = vmul.f32 %v6137_v11, %v7961_v12  ;;  %v2329_v53 = vunpack.i.h.bf16 %v2327_v58  ;;  %v2328_v16 = vunpack.i.l.bf16 %v2327_v58  ;;  %v7980_v52 = vld [vmem:[#allocation123_spill] sm:$0xff] }
 0x211   :  { %v1809_v1 = vsub.f32 %v1604_v2, %v1777_v49  ;;  %v1810_v42 = vsub.f32 %v1605_v0, %v1778_v50  ;;  %v1813_v7 = vsub.f32 %v1608_v26, %v1781_v20  ;;  %v1814_v24 = vsub.f32 %v1609_v43, %v1782_v40  ;;  %v7969_v26 = vld [vmem:[#allocation43_spill] sm:$0xff]  ;;  %v7974_v43 = vld [vmem:[#allocation98_spill] sm:$0xff]  ;;  %v7983_v50 = vld [vmem:[#allocation17_spill] sm:$0xff] }
 0x212   :  { %v7962_v18 = vunpack.i.h.bf16 %v5767_v60  ;;  %v7965_v59 = vsub.f32 %v7963_v9, %v7964_v10  ;;  %v7966_v46 = vunpack.i.l.bf16 %v5767_v60  ;;  %v7967_v2 = vsub.f32 %v6128_v34, %v6166_v30  ;;  %v7982_v49 = vld [vmem:[#allocation59_spill] sm:$0xff] }
 0x213   :  { %v1828_v14 = vpack.c.bf16 %v1809_v1, %v1808_v39  ;;  %v1830_v55 = vpack.c.bf16 %v1813_v7, %v1812_v51  ;;  %v7968_v0 = vsub.f32 %v6133_v17, %v6169_v5  ;;  %v1565_v39 = vmul.f32 %v6248_v22, %v7969_v26  ;;  %v7971_v17 = vld [vmem:[#allocation116_spill] sm:$0xff]  ;;  %v7972_v5 = vld [vmem:[#allocation55_spill] sm:$0xff] }
 0x214   :  { %v1688_v37 = vsel %vm597_vm7, %v7962_v18, %v2329_v53  ;;  %v1596_v31 = vsub.f32 %v7965_v59, %v1564_v36  ;;  %v1687_v11 = vsel %vm597_vm7, %v7966_v46, %v2328_v16  ;;  %v1829_v28 = vpack.c.bf16 %v7967_v2, %v1810_v42  ;;  %v7988_v18 = vld [vmem:[#allocation77_spill] sm:$0xff] }
 0x215   :  { %v1831_v56 = vpack.c.bf16 %v7968_v0, %v1814_v24  ;;  %v1728_v38 = vsel %vm3646_vm11, %v7961_v12, %v1688_v37  ;;  %v1724_v60 = vsel %vm3646_vm11, %v7960_v27, %v1687_v11  ;;  %v1566_v34 = vmul.f32 %v6002_v63, %v7970_v19  ;;  %1844 = vst [vmem:[#allocation7 + $0x60] sm:$0xff] %v1828_v14  ;;  %v7989_v37 = vld [vmem:[#allocation83_spill] sm:$0xff]  ;;  %v7991_v59 = vld [vmem:[#allocation21_spill] sm:$0xff] }
 0x216   :  { %v1773_v30 = vmul.f32 %v6179_v45, %v1728_v38  ;;  %v7973_v51 = vsub.f32 %v7971_v17, %v7972_v5  ;;  %v1769_v35 = vmul.f32 %v6176_v25, %v1724_v60  ;;  %v1569_v62 = vmul.f32 %v6251_v47, %v7974_v43  ;;  %1845 = vst [vmem:[#allocation7 + $0x68] sm:$0xff] %v1829_v28  ;;  %v7995_v0 = vld [vmem:[#allocation141_spill] sm:$0xff]  ;;  %v7996_v38 = vld [vmem:[#allocation138_spill] sm:$0xff] }
 0x217   :  { %v1570_v15 = vmul.f32 %v6005_v54, %v7975_v57  ;;  %v2349_v61 = vunpack.i.h.bf16 %v2347_v48  ;;  %v2348_v13 = vunpack.i.l.bf16 %v2347_v48  ;;  %v7978_v58 = vsub.f32 %v7976_v8, %v7977_v3  ;;  %1846 = vst [vmem:[#allocation7 + $0x70] sm:$0xff] %v1830_v55  ;;  %v2342_v48 = vpop.permute.xlu0 %2341  ;;  %v7997_v60 = vld [vmem:[#allocation122_spill] sm:$0xff]  ;;  %v8000_v17 = vld [vmem:[#allocation41_spill] sm:$0xff] }
 0x218   :  { %v1600_v44 = vsub.f32 %v7973_v51, %v1568_v41  ;;  %v1801_v45 = vsub.f32 %v1596_v31, %v1769_v35  ;;  %v7981_v40 = vsub.f32 %v7979_v6, %v7980_v52  ;;  %v7984_v20 = vsub.f32 %v7982_v49, %v7983_v50  ;;  %1847 = vst [vmem:[#allocation7 + $0x78] sm:$0xff] %v1831_v56  ;;  %v7985_v41 = vld [vmem:[#allocation19_spill] sm:$0xff]  ;;  %v7992_v31 = vld [vmem:[#allocation22_spill] sm:$0xff]  ;;  %v8005_v6 = vld [vmem:[#allocation52_spill] sm:$0xff] }
 0x219   :  { %v1597_v4 = vsub.f32 %v7978_v58, %v1565_v39  ;;  %v1679_v36 = vsel %vm597_vm7, %v2328_v16, %v2348_v13  ;;  %v1680_v12 = vsel %vm597_vm7, %v2329_v53, %v2349_v61  ;;  %v7986_v1 = vunpack.i.l.bf16 %v7985_v41  ;;  %v8001_v35 = vld [vmem:[#allocation42_spill] sm:$0xff]  ;;  %v8003_v58 = vld [vmem:[#allocation120_spill] sm:$0xff]  ;;  %v8009_v49 = vld [vmem:[#allocation119_spill] sm:$0xff] }
 0x21a   :  { %v1805_v29 = vsub.f32 %v1600_v44, %v1773_v30  ;;  %v1598_v25 = vsub.f32 %v7981_v40, %v1566_v34  ;;  %v1601_v27 = vsub.f32 %v7984_v20, %v1569_v62  ;;  %v7987_v7 = vunpack.i.h.bf16 %v7985_v41  ;;  %v7999_v34 = vld [vmem:[#allocation18_spill] sm:$0xff]  ;;  %v8007_v40 = vld [vmem:[#allocation93_spill] sm:$0xff] }
 0x21b   :  { %v1703_v42 = vsel %vm597_vm7, %v2348_v13, %v7986_v1  ;;  %v7990_v9 = vsub.f32 %v7988_v18, %v7989_v37  ;;  %v7993_v16 = vsub.f32 %v7991_v59, %v7992_v31  ;;  %v1725_v53 = vsel %vm3829_vm13, %v7969_v26, %v1679_v36  ;;  %v8002_v3 = vld [vmem:[#allocation118_spill] sm:$0xff]  ;;  %v8010_v50 = vld [vmem:[#allocation121_spill] sm:$0xff]  ;;  %v8016_v59 = vld [vmem:[#allocation47_spill] sm:$0xff] }
 0x21c   :  { %v1704_v24 = vsel %vm597_vm7, %v2349_v61, %v7987_v7  ;;  %v1726_v14 = vsel %vm3499_vm9, %v7970_v19, %v1703_v42  ;;  %v1729_v2 = vsel %vm3829_vm13, %v7974_v43, %v1680_v12  ;;  %v1770_v55 = vmul.f32 %v6270_v23, %v1725_v53  ;;  %v8013_v12 = vld [vmem:[#allocation79_spill] sm:$0xff] }
 0x21d   :  { %v1824_v10 = vpack.c.bf16 %v1801_v45, %v7990_v9  ;;  %v1826_v46 = vpack.c.bf16 %v1805_v29, %v7993_v16  ;;  %v1730_v28 = vsel %vm3499_vm9, %v7975_v57, %v1704_v24  ;;  %v1771_v56 = vmul.f32 %v7995_v0, %v1726_v14  ;;  %v8004_v29 = vld [vmem:[#allocation114_spill] sm:$0xff] }
 0x21e   :  { %v7998_v26 = vsub.f32 %v7996_v38, %v7997_v60  ;;  %v1774_v19 = vmul.f32 %v6273_v32, %v1729_v2  ;;  %v1775_v30 = vmul.f32 %v7999_v34, %v1730_v28  ;;  %v1557_v5 = vmul.f32 %v6248_v22, %v8000_v17 }
 0x21f   :  { %1840 = vst [vmem:[#allocation7 + $0x40] sm:$0xff] %v1824_v10  ;;  %v1802_v51 = vsub.f32 %v1597_v4, %v1770_v55  ;;  %v1803_v44 = vsub.f32 %v1598_v25, %v1771_v56  ;;  %v1561_v43 = vmul.f32 %v6251_v47, %v8001_v35  ;;  %v2344_v61 = vunpack.i.h.bf16 %v2342_v48 }
 0x220   :  { %v1602_v39 = vsub.f32 %v7998_v26, %v1570_v15  ;;  %1842 = vst [vmem:[#allocation7 + $0x50] sm:$0xff] %v1826_v46  ;;  %v1806_v62 = vsub.f32 %v1601_v27, %v1774_v19  ;;  %v2343_v13 = vunpack.i.l.bf16 %v2342_v48  ;;  %v1558_v15 = vmul.f32 %v6002_v63, %v8002_v3  ;;  %v8019_v46 = vld [vmem:[#allocation134_spill] sm:$0xff] }
 0x221   :  { %v1825_v8 = vpack.c.bf16 %v1803_v44, %v1802_v51  ;;  %v1562_v45 = vmul.f32 %v6005_v54, %v8003_v58  ;;  %v8006_v22 = vsub.f32 %v8004_v29, %v8005_v6  ;;  %v8008_v25 = vunpack.i.h.bf16 %v8007_v40 }
 0x222   :  { %v1807_v57 = vsub.f32 %v1602_v39, %v1775_v30  ;;  %v8011_v20 = vsub.f32 %v8009_v49, %v8010_v50  ;;  %v8012_v36 = vunpack.i.l.bf16 %v8007_v40  ;;  %v8014_v41 = vunpack.i.l.bf16 %v8013_v12 }
 0x223   :  { %v1589_v52 = vsub.f32 %v8006_v22, %v1557_v5  ;;  %v1678_v47 = vsel %vm597_vm7, %v8008_v25, %v2344_v61  ;;  %1841 = vst [vmem:[#allocation7 + $0x48] sm:$0xff] %v1825_v8  ;;  %v8015_v42 = vunpack.i.h.bf16 %v8013_v12  ;;  %v8018_v31 = vsub.f32 %v8016_v59, %v8017_v33 }
 0x224   :  { %v1827_v4 = vpack.c.bf16 %v1807_v57, %v1806_v62  ;;  %v1593_v27 = vsub.f32 %v8011_v20, %v1561_v43  ;;  %v1677_v63 = vsel %vm597_vm7, %v8012_v36, %v2343_v13  ;;  %v1721_v54 = vsel %vm3829_vm13, %v8001_v35, %v1678_v47 }
 0x225   :  { %v1701_v1 = vsel %vm597_vm7, %v2343_v13, %v8014_v41  ;;  %v1702_v7 = vsel %vm597_vm7, %v2344_v61, %v8015_v42  ;;  %v1717_v24 = vsel %vm3829_vm13, %v8000_v17, %v1677_v63  ;;  %v1766_v18 = vmul.f32 %v6273_v32, %v1721_v54 }
 0x226   :  { %1843 = vst [vmem:[#allocation7 + $0x58] sm:$0xff] %v1827_v4  ;;  %v1718_v37 = vsel %vm3499_vm9, %v8002_v3, %v1701_v1  ;;  %v1722_v9 = vsel %vm3499_vm9, %v8003_v58, %v1702_v7  ;;  %v1762_v10 = vmul.f32 %v6270_v23, %v1717_v24  ;;  %v1590_v16 = vsub.f32 %v8018_v31, %v1558_v15 }
 0x227   :  { %v8021_v53 = vsub.f32 %v8019_v46, %v8020_v21  ;;  %v1763_v32 = vmul.f32 %v7995_v0, %v1718_v37  ;;  %v1767_v2 = vmul.f32 %v7999_v34, %v1722_v9  ;;  %v1798_v55 = vsub.f32 %v1593_v27, %v1766_v18 }
 0x228   :  { %v1794_v28 = vsub.f32 %v1589_v52, %v1762_v10 }
 0x229   :  { %v1594_v14 = vsub.f32 %v8021_v53, %v1562_v45  ;;  %v1795_v56 = vsub.f32 %v1590_v16, %v1763_v32 }
 0x22b   :  { %v1799_v48 = vsub.f32 %v1594_v14, %v1767_v2  ;;  %v1821_v23 = vpack.c.bf16 %v1795_v56, %v1794_v28 }
 0x22d   :  { %v1823_v11 = vpack.c.bf16 %v1799_v48, %v1798_v55  ;;  %1837 = vst [vmem:[#allocation7 + $0x28] sm:$0xff] %v1821_v23 }
 0x22f   :  { %1839 = vst [vmem:[#allocation7 + $0x38] sm:$0xff] %v1823_v11 }
 0x230   :  { %1860 = dma.vmem_to_hbm [thread:$0]  %s1853_s22, 2048, %s1855_s25, [#allocation4], %s2434_s17, %s2434_s17, %s2435_s18  }
 0x231   :  { %2431 = dma.done.wait [#allocation4], 2048  }
 0x232   :  { %2432 = vsyncadd [#allocation4], 4294965248 }
 0x233   :  { %1865 = vsyncpa [#allocation3], 1 }
 0x234   :  { %1866 = vsyncpa [#allocation6], 1 }
 0x235   :  { %1867 = vsyncpa [#allocation4], 1 }

</bundles_post_ra>
